<compile_context>
chip_gen: v5e
topology: v5e:2x2
jax: 0.10.0
libtpu: 0.0.40
codegen_flags: <defaults>
</compile_context>

<pallas_src>
import math
import numpy as np
import jax
import jax.numpy as jnp
from jax.experimental import pallas as pl
from jax.experimental.pallas import tpu as pltpu


# ----------------------------- CG coefficients ------------------------------ #
def clebsch_gordan(l1, l2, l3, m1, m2, m3):
    if m1 + m2 != m3:
        return 0.0
    if not (abs(l1 - l2) <= l3 <= l1 + l2):
        return 0.0
    if abs(m1) > l1 or abs(m2) > l2 or abs(m3) > l3:
        return 0.0
    f = math.factorial
    pref = math.sqrt((2 * l3 + 1) * f(l3 + l1 - l2) * f(l3 - l1 + l2)
                     * f(l1 + l2 - l3) / f(l1 + l2 + l3 + 1))
    pref *= math.sqrt(f(l3 + m3) * f(l3 - m3) * f(l1 - m1) * f(l1 + m1)
                      * f(l2 - m2) * f(l2 + m2))
    s = 0.0
    for k in range(0, l1 + l2 - l3 + 1):
        d = [k, l1 + l2 - l3 - k, l1 - m1 - k, l2 + m2 - k,
             l3 - l2 + m1 + k, l3 - l1 - m2 + k]
        if any(v < 0 for v in d):
            continue
        den = 1.0
        for v in d:
            den *= f(v)
        s += ((-1) ** k) / den
    return pref * s


def cg_tensor(l1, l2, l3):
    C = np.zeros((2 * l1 + 1, 2 * l2 + 1, 2 * l3 + 1), dtype=np.float32)
    for m1 in range(-l1, l1 + 1):
        for m2 in range(-l2, l2 + 1):
            for m3 in range(-l3, l3 + 1):
                C[m1 + l1, m2 + l2, m3 + l3] = clebsch_gordan(l1, l2, l3, m1, m2, m3)
    return C


def estimate_num_products(nc_a, nc_b):
    lmax_a = len(nc_a) - 1
    lmax_b = len(nc_b) - 1
    out = np.zeros(lmax_a + lmax_b + 1, dtype=int)
    for l1 in range(lmax_a + 1):
        for l2 in range(lmax_b + 1):
            if nc_a[l1] == 0 or nc_b[l2] == 0:
                continue
            for l3 in range(abs(l1 - l2), l1 + l2 + 1):
                out[l3] += nc_a[l1] * nc_b[l2]
    return out


def _pick_node_tile(N, max_tile=256):
    """Largest node tile <= max_tile that divides N and is a multiple of 8."""
    if N <= max_tile:
        return N
    for t in range(max_tile, 7, -8):
        if t % 8 == 0 and N % t == 0:
            return t
    return N


# ------------------------------ fused Pallas kernel -------------------------- #
def _cgmp_fused_kernel(x_tile_ref, x_ri_ref, adj_ref,
                       sel_xx_ref, sel_yxa_ref, sel_yxb_ref, sel_yy_ref, w_ref,
                       o_ref, kr_sc, ki_sc):
    # x_tile_ref: (2, TN, Fx)      node features of this dst tile
    # x_ri_ref:   (N, 2*Fx)        full node features, lane-packed [real | imag]
    # adj_ref:    (e_ch, TN, N)    dense real adjacency rows (dst tile) per edge ch
    # sel_*:      static 0/1 selection matrices expanding features into the
    #             Khatri-Rao column ordering on the MXU (no in-kernel gather)
    # w_ref:      (3, K_total, P_pad)  fused CGxSO3Linear weights [W_r, W_i, W_r+W_i]
    # o_ref:      (2, TN, P_pad)   complex output, all l3 concatenated, lane-dense
    # kr_sc/ki_sc:(TN, K_total)    shared Khatri-Rao scratch (sequential term writes)
    f32 = jnp.float32
    e_ch, TN, N = adj_ref.shape
    Fx = x_tile_ref.shape[2]

    # Node features of this tile, real/imag stacked along rows: (2*TN, Fx).
    x2 = x_tile_ref[...].reshape(2 * TN, Fx)

    # --- ManyEdgeMPLayer fused in: ONE MXU push over all edge channels ---
    adj_stack = adj_ref[...].reshape(e_ch * TN, N)
    y_all = jnp.dot(adj_stack, x_ri_ref[...], preferred_element_type=f32)  # (e_ch*TN, 2Fx)
    # Rearrange to row-stacked (2*TN, e_ch*Fx): real rows then imag rows,
    # lanes grouped by edge channel (matches the y-side selection layout).
    y_r = jnp.concatenate([y_all[e * TN:(e + 1) * TN, 0:Fx] for e in range(e_ch)],
                          axis=-1)
    y_i = jnp.concatenate([y_all[e * TN:(e + 1) * TN, Fx:2 * Fx] for e in range(e_ch)],
                          axis=-1)
    y2 = jnp.concatenate([y_r, y_i], axis=0)                               # (2TN, Fy)

    kxx = sel_xx_ref.shape[1] // 2
    kyx = sel_yxa_ref.shape[1]
    kyy = sel_yy_ref.shape[1] // 2

    def write_term(a_r, a_i, b_r, b_i, koff, kw):
        # complex Khatri-Rao product (VPU), written into the shared K-concat scratch
        kr_sc[:, koff:koff + kw] = a_r * b_r - a_i * b_i
        ki_sc[:, koff:koff + kw] = a_r * b_i + a_i * b_r

    # term xx: one selection matmul [Sa|Sb], real/imag stacked along rows.
    e_xx = jnp.dot(x2, sel_xx_ref[...], preferred_element_type=f32)        # (2TN, 2*kxx)
    write_term(e_xx[0:TN, 0:kxx], e_xx[TN:2 * TN, 0:kxx],
               e_xx[0:TN, kxx:2 * kxx], e_xx[TN:2 * TN, kxx:2 * kxx], 0, kxx)

    # term yx: y-side and x-side selections (different contraction widths).
    e_a = jnp.dot(y2, sel_yxa_ref[...], preferred_element_type=f32)        # (2TN, kyx)
    e_b = jnp.dot(x2, sel_yxb_ref[...], preferred_element_type=f32)        # (2TN, kyx)
    write_term(e_a[0:TN], e_a[TN:2 * TN], e_b[0:TN], e_b[TN:2 * TN], kxx, kyx)

    # term yy: one selection matmul [Sa|Sb].
    e_yy = jnp.dot(y2, sel_yy_ref[...], preferred_element_type=f32)        # (2TN, 2*kyy)
    write_term(e_yy[0:TN, 0:kyy], e_yy[TN:2 * TN, 0:kyy],
               e_yy[0:TN, kyy:2 * kyy], e_yy[TN:2 * TN, kyy:2 * kyy], kxx + kyx, kyy)

    # --- fused CG x SO3Linear contraction: ONE set of Gauss 3-multiply complex
    #     matmuls over the concatenated K of all three terms (deep contraction) ---
    kr = kr_sc[...]
    ki = ki_sc[...]
    t1 = jnp.dot(kr, w_ref[0], preferred_element_type=f32)
    t2 = jnp.dot(ki, w_ref[1], preferred_element_type=f32)
    t3 = jnp.dot(kr + ki, w_ref[2], preferred_element_type=f32)
    o_ref[0] = t1 - t2
    o_ref[1] = t3 - t1 - t2


# --------------------------------- CGMPBlock --------------------------------- #
class CGMPBlockPallas:
    def __init__(self, transformation_dict, num_edge_channels, key, real_edges=True):
        assert real_edges, "only real edge values supported"
        self.tdict = dict(transformation_dict)
        self.n_edge_ch = int(num_edge_channels)
        self.output_ls = sorted(l for l, (_, co) in self.tdict.items() if co > 0)
        lmax_in = max(self.tdict.keys())
        x_ch = np.zeros(lmax_in + 1, dtype=int)
        for l, (ci, _) in self.tdict.items():
            x_ch[l] = ci
        y_ch = self.n_edge_ch * x_ch
        self.x_ch, self.y_ch = x_ch, y_ch
        self.x_ls = [l for l in range(lmax_in + 1) if x_ch[l] > 0]

        # Lane layout of flattened x (and each per-edge-channel block of y):
        # per-l block, lane = xoff[l] + m * C_l + c.
        self.xoff, off = {}, 0
        for l in self.x_ls:
            self.xoff[l] = off
            off += (2 * l + 1) * int(x_ch[l])
        self.Fx = off
        self.Fy = self.n_edge_ch * self.Fx

        # Output column layout, zero-padded to a lane-dense multiple of 128.
        self.poff, off = {}, 0
        for l3 in self.output_ls:
            self.poff[l3] = off
            off += (2 * l3 + 1) * self.tdict[l3][1]
        self.P_total = off
        self.P_pad = ((self.P_total + 127) // 128) * 128

        prods = {
            "id_id": (estimate_num_products(x_ch, x_ch), x_ch, x_ch, "x", "x"),
            "mp_id": (estimate_num_products(y_ch, x_ch), y_ch, x_ch, "y", "x"),
            "mp_mp": (estimate_num_products(y_ch, y_ch), y_ch, y_ch, "y", "y"),
        }
        self.term_ch = {t: (v[1], v[2]) for t, v in prods.items()}

        # Deterministic complex SO3Linear weights (2, nc_prod, nc_out) per (term, l3).
        n_keys = 3 * max(len(self.output_ls), 1)
        keys = jax.random.split(key, n_keys)
        ki = 0
        self.full_w = {}
        for tname, (prod, _, _, _, _) in prods.items():
            for l3 in self.output_ls:
                nc_prod = int(prod[l3])
                nc_out = self.tdict[l3][1]
                if tname == "id_id" and nc_prod == 0:
                    raise Exception("Trying to construct output feature with no ell's "
                                    "from CG product!")
                w = np.asarray(jax.random.normal(keys[ki % n_keys],
                                                 (2, nc_prod, nc_out), jnp.float32))
                self.full_w[(tname, l3)] = (
                    w / np.sqrt(max(nc_prod, 1) * 2.0)).astype(np.float32)
                ki += 1

        # ---- enumerate CG blocks per term; pad each term's K to 128 lanes ----
        self.term_order = ("id_id", "mp_id", "mp_mp")
        term_blocks, self.term_koff, self.term_kpad = {}, {}, {}
        K_total = 0
        for t in self.term_order:
            _, cha, chb, fa, fb = prods[t]
            blocks, koff = [], 0
            for l1 in range(len(cha)):
                c1 = int(cha[l1])
                if c1 == 0:
                    continue
                for l2 in range(len(chb)):
                    c2 = int(chb[l2])
                    if c2 == 0:
                        continue
                    valid = [l3 for l3 in self.output_ls
                             if abs(l1 - l2) <= l3 <= l1 + l2]
                    if not valid:
                        continue
                    Q1, R2 = (2 * l1 + 1) * c1, (2 * l2 + 1) * c2
                    blocks.append((l1, l2, c1, c2, koff, Q1, R2, valid))
                    koff += Q1 * R2
            Kp = max(((koff + 127) // 128) * 128, 128)
            term_blocks[t] = blocks
            self.term_koff[t] = K_total
            self.term_kpad[t] = Kp
            K_total += Kp
        self.K_total = K_total

        # ---- selection matrices and the globally K-concatenated weight slab ----
        F_of = {"x": self.Fx, "y": self.Fy}
        sels = {}
        W = np.zeros((2, K_total, self.P_pad), np.float32)
        for t in self.term_order:
            _, cha, chb, fa, fb = prods[t]
            Kp = self.term_kpad[t]
            goff = self.term_koff[t]
            Sa = np.zeros((F_of[fa], Kp), np.float32)
            Sb = np.zeros((F_of[fb], Kp), np.float32)
            off_l3 = {l3: 0 for l3 in self.output_ls}
            for (l1, l2, c1, c2, kofs, Q1, R2, valid) in term_blocks[t]:
                for q1 in range(Q1):
                    m1, ch1 = divmod(q1, c1)
                    for r2 in range(R2):
                        m2, ch2 = divmod(r2, c2)
                        k = kofs + q1 * R2 + r2
                        Sa[self._lane(fa, l1, m1, ch1), k] = 1.0
                        Sb[self._lane(fb, l2, m2, ch2), k] = 1.0
                for l3 in valid:
                    nc_out = self.tdict[l3][1]
                    o = off_l3[l3]
                    wsl = self.full_w[(t, l3)][:, o:o + c1 * c2, :]
                    off_l3[l3] = o + c1 * c2
                    cg = cg_tensor(l1, l2, l3)                      # (M1, M2, M3)
                    w4 = wsl.reshape(2, c1, c2, nc_out)
                    wc = np.einsum('abm,scdo->sacbdmo', cg, w4)
                    wc = wc.reshape(2, Q1 * R2, (2 * l3 + 1) * nc_out)
                    W[:, goff + kofs:goff + kofs + Q1 * R2,
                      self.poff[l3]:self.poff[l3] + (2 * l3 + 1) * nc_out] = wc
            sels[t] = (Sa, Sb)

        # Fused per-side selection slabs ([Sa|Sb] when both sides share the source)
        # and Gauss 3-multiply weight planes [W_r, W_i, W_r+W_i].
        # TODO(synk): cast these to bf16 for 2-3x MXU throughput once tolerance re-validated.
        self.sel_xx = jnp.asarray(np.concatenate(sels["id_id"], axis=1))
        self.sel_yx_a = jnp.asarray(sels["mp_id"][0])
        self.sel_yx_b = jnp.asarray(sels["mp_id"][1])
        self.sel_yy = jnp.asarray(np.concatenate(sels["mp_mp"], axis=1))
        self.w3 = jnp.asarray(np.concatenate([W, (W[0] + W[1])[None]], axis=0))

    # map (factor type, l, m, channel) -> physical lane of the row-stacked source
    def _lane(self, ftype, l, m, ch):
        C = int(self.x_ch[l])
        if ftype == "y":
            e, c = divmod(ch, C)                     # y channel index = e*C + c
            return e * self.Fx + self.xoff[l] + m * C + c
        return self.xoff[l] + m * C + ch

    def __call__(self, x, edge_vals, edge_idx):
        N = next(iter(x.values())).shape[1]
        e_ch = self.n_edge_ch

        # TODO(synk): irregular per-edge scatter-add stays in XLA glue; a CSR +
        # scalar-prefetch gather in the kernel is the scalable replacement.
        adj = jnp.zeros((e_ch, N, N), jnp.float32)
        adj = adj.at[:, edge_idx[1], edge_idx[0]].add(edge_vals.T)

        x_flat = jnp.concatenate(
            [x[l].reshape(2, N, (2 * l + 1) * int(self.x_ch[l])) for l in self.x_ls],
            axis=-1)                                          # (2, N, Fx)
        x_ri = jnp.concatenate([x_flat[0], x_flat[1]], axis=-1)  # (N, 2*Fx) for MP

        TN = _pick_node_tile(N)
        n_tiles = N // TN

        def const_spec(a):
            nd = a.ndim
            return pl.BlockSpec(a.shape, lambda i, _n=nd: (0,) * _n)

        in_specs = [
            pl.BlockSpec((2, TN, self.Fx), lambda i: (0, i, 0)),   # x tile
            const_spec(x_ri),                                      # full x (MP source)
            pl.BlockSpec((e_ch, TN, N), lambda i: (0, i, 0)),      # adjacency rows
            const_spec(self.sel_xx),
            const_spec(self.sel_yx_a),
            const_spec(self.sel_yx_b),
            const_spec(self.sel_yy),
            const_spec(self.w3),
        ]

        out_pad = pl.pallas_call(
            _cgmp_fused_kernel,
            out_shape=jax.ShapeDtypeStruct((2, N, self.P_pad), jnp.float32),
            grid_spec=pltpu.PrefetchScalarGridSpec(
                num_scalar_prefetch=0,
                grid=(n_tiles,),
                in_specs=in_specs,
                out_specs=pl.BlockSpec((2, TN, self.P_pad), lambda i: (0, i, 0)),
                scratch_shapes=[pltpu.VMEM((TN, self.K_total), jnp.float32),
                                pltpu.VMEM((TN, self.K_total), jnp.float32)]),
            compiler_params=pltpu.CompilerParams(
                dimension_semantics=("parallel",)),
        )(x_flat, x_ri, adj, self.sel_xx, self.sel_yx_a, self.sel_yx_b,
          self.sel_yy, self.w3)

        out = {}
        for l3 in self.output_ls:
            nc_out = self.tdict[l3][1]
            M3 = 2 * l3 + 1
            off = self.poff[l3]
            out[l3] = out_pad[:, :, off:off + M3 * nc_out].reshape(2, N, M3, nc_out)
        return out


# --------------------- pure numpy (float64) reference ------------------------ #
def reference_forward_np(block, x, edge_vals, edge_idx):
    xs = {l: np.asarray(v, np.float64) for l, v in x.items()}
    ev = np.asarray(edge_vals, np.float64)
    ei = np.asarray(edge_idx)
    N = next(iter(xs.values())).shape[1]
    e_ch = block.n_edge_ch
    adj = np.zeros((e_ch, N, N), np.float64)
    for e in range(e_ch):
        np.add.at(adj[e], (ei[1], ei[0]), ev[:, e])
    y = {}
    for l, xl in xs.items():
        C = xl.shape[-1]
        yl = np.einsum('enp,spmc->snmec', adj, xl).reshape(2, N, 2 * l + 1, e_ch * C)
        y[l] = yl
    feats = {"id_id": (xs, xs), "mp_id": (y, xs), "mp_mp": (y, y)}
    out = {}
    for l3 in block.output_ls:
        nc_out = block.tdict[l3][1]
        M3 = 2 * l3 + 1
        acc = np.zeros((2, N, M3, nc_out), np.float64)
        for tname, (a, b) in feats.items():
            cha, chb = block.term_ch[tname]
            w_full = block.full_w[(tname, l3)].astype(np.float64)
            off = 0
            for l1 in range(len(cha)):
                c1 = int(cha[l1])
                if c1 == 0:
                    continue
                for l2 in range(len(chb)):
                    c2 = int(chb[l2])
                    if c2 == 0:
                        continue
                    if not (abs(l1 - l2) <= l3 <= l1 + l2):
                        continue
                    A, B = a[l1], b[l2]
                    cg = cg_tensor(l1, l2, l3).astype(np.float64)
                    pr = (np.einsum('nic,njd->nijcd', A[0], B[0])
                          - np.einsum('nic,njd->nijcd', A[1], B[1]))
                    pi = (np.einsum('nic,njd->nijcd', A[0], B[1])
                          + np.einsum('nic,njd->nijcd', A[1], B[0]))
                    pr3 = np.einsum('ijm,nijcd->nmcd', cg, pr)
                    pi3 = np.einsum('ijm,nijcd->nmcd', cg, pi)
                    w = w_full[:, off:off + c1 * c2, :].reshape(2, c1, c2, nc_out)
                    off += c1 * c2
                    acc[0] += (np.einsum('nmcd,cdo->nmo', pr3, w[0])
                               - np.einsum('nmcd,cdo->nmo', pi3, w[1]))
                    acc[1] += (np.einsum('nmcd,cdo->nmo', pr3, w[1])
                               + np.einsum('nmcd,cdo->nmo', pi3, w[0]))
        out[l3] = acc
    return out


# ----------------------------------- main ------------------------------------ #
if __name__ == "__main__":
    key = jax.random.PRNGKey(0)
    N = 16            # nodes
    E = 40            # edges
    n_edge_ch = 2     # num_edge_channels
    tdict = {0: (4, 4), 1: (4, 4)}   # l -> (channels_in, channels_out)

    k_x, k_ev, k_src, k_dst, k_param = jax.random.split(key, 5)
    x = {l: jax.random.normal(jax.random.fold_in(k_x, l),
                              (2, N, 2 * l + 1, ci), jnp.float32)
         for l, (ci, _) in tdict.items()}
    edge_vals = jax.random.normal(k_ev, (E, n_edge_ch), jnp.float32)
    src = jax.random.randint(k_src, (E,), 0, N, dtype=jnp.int32)
    dst = jax.random.randint(k_dst, (E,), 0, N, dtype=jnp.int32)
    edge_idx = jnp.stack([src, dst], axis=0)

    block = CGMPBlockPallas(tdict, n_edge_ch, k_param)
    out = jax.block_until_ready(block(x, edge_vals, edge_idx))

    ref = reference_forward_np(block, x, edge_vals, edge_idx)
    for l in sorted(out):
        assert out[l].shape == (2, N, 2 * l + 1, tdict[l][1]), out[l].shape
        assert bool(jnp.all(jnp.isfinite(out[l])))
        err = float(jnp.max(jnp.abs(out[l] - jnp.asarray(ref[l], jnp.float32))))
        scale = float(np.max(np.abs(ref[l]))) + 1e-6
        # loose tolerance: MXU f32 matmuls may use reduced-precision passes
        assert err <= 5e-2 * scale, (l, err, scale)
    print("KERNEL_OK")
</pallas_src>

<mosaic_0001>
module attributes {stable_mosaic.version = 11 : i64} {
  func.func @_cgmp_fused_kernel(%arg0: i32, %arg1: memref<2x16x16xf32, #tpu.memory_space<vmem>>, %arg2: memref<16x32xf32, #tpu.memory_space<vmem>>, %arg3: memref<2x16x16xf32, #tpu.memory_space<vmem>>, %arg4: memref<16x512xf32, #tpu.memory_space<vmem>>, %arg5: memref<32x512xf32, #tpu.memory_space<vmem>>, %arg6: memref<16x512xf32, #tpu.memory_space<vmem>>, %arg7: memref<32x2048xf32, #tpu.memory_space<vmem>>, %arg8: memref<3x1792x128xf32, #tpu.memory_space<vmem>>, %arg9: memref<2x16x128xf32, #tpu.memory_space<vmem>>, %arg10: memref<16x1792xf32, #tpu.memory_space<vmem>>, %arg11: memref<16x1792xf32, #tpu.memory_space<vmem>>) attributes {dimension_semantics = [#tpu.dimension_semantics<parallel>], iteration_bounds = array<i64: 1>, scalar_prefetch = 0 : i64, scratch_operands = 2 : i64, tpu.core_type = #tpu.core_type<tc>, window_params = [{transform_indices = @transform_0, window_bounds = array<i64: 2, 16, 16>}, {pipeline_mode = #tpu.pipeline_mode<synchronous>, transform_indices = @transform_1, window_bounds = array<i64: 16, 32>}, {transform_indices = @transform_2, window_bounds = array<i64: 2, 16, 16>}, {pipeline_mode = #tpu.pipeline_mode<synchronous>, transform_indices = @transform_3, window_bounds = array<i64: 16, 512>}, {pipeline_mode = #tpu.pipeline_mode<synchronous>, transform_indices = @transform_4, window_bounds = array<i64: 32, 512>}, {pipeline_mode = #tpu.pipeline_mode<synchronous>, transform_indices = @transform_5, window_bounds = array<i64: 16, 512>}, {pipeline_mode = #tpu.pipeline_mode<synchronous>, transform_indices = @transform_6, window_bounds = array<i64: 32, 2048>}, {pipeline_mode = #tpu.pipeline_mode<synchronous>, transform_indices = @transform_7, window_bounds = array<i64: 3, 1792, 128>}, {transform_indices = @transform_8, window_bounds = array<i64: 2, 16, 128>}]} {
    %c0 = arith.constant 0 : index
    %c0_0 = arith.constant 0 : index
    %c0_1 = arith.constant 0 : index
    %0 = vector.load %arg1[%c0, %c0_0, %c0_1] : memref<2x16x16xf32, #tpu.memory_space<vmem>>, vector<2x16x16xf32>
    %1 = vector.shape_cast %0 : vector<2x16x16xf32> to vector<32x16xf32>
    %c0_2 = arith.constant 0 : index
    %c0_3 = arith.constant 0 : index
    %c0_4 = arith.constant 0 : index
    %2 = vector.load %arg3[%c0_2, %c0_3, %c0_4] : memref<2x16x16xf32, #tpu.memory_space<vmem>>, vector<2x16x16xf32>
    %3 = vector.shape_cast %2 : vector<2x16x16xf32> to vector<32x16xf32>
    %c0_5 = arith.constant 0 : index
    %c0_6 = arith.constant 0 : index
    %4 = vector.load %arg2[%c0_5, %c0_6] : memref<16x32xf32, #tpu.memory_space<vmem>>, vector<16x32xf32>
    %cst = arith.constant dense<0.000000e+00> : vector<32x32xf32>
    %5 = tpu.matmul %3, %4, %cst {dimension_numbers = #tpu.dot_dimension_numbers<[1], [0], [0], [1], [0, 0, 1, 1], [], []>} : vector<32x16xf32>, vector<16x32xf32>, vector<32x32xf32> -> vector<32x32xf32>
    %6 = vector.extract_strided_slice %5 {offsets = [0, 0], sizes = [16, 16], strides = [1, 1]} : vector<32x32xf32> to vector<16x16xf32>
    %7 = vector.extract_strided_slice %5 {offsets = [16, 0], sizes = [16, 16], strides = [1, 1]} : vector<32x32xf32> to vector<16x16xf32>
    %8 = tpu.concatenate %6, %7 in 1 : vector<16x16xf32>, vector<16x16xf32> -> vector<16x32xf32>
    %9 = vector.extract_strided_slice %5 {offsets = [0, 16], sizes = [16, 16], strides = [1, 1]} : vector<32x32xf32> to vector<16x16xf32>
    %10 = vector.extract_strided_slice %5 {offsets = [16, 16], sizes = [16, 16], strides = [1, 1]} : vector<32x32xf32> to vector<16x16xf32>
    %11 = tpu.concatenate %9, %10 in 1 : vector<16x16xf32>, vector<16x16xf32> -> vector<16x32xf32>
    %12 = tpu.concatenate %8, %11 in 0 : vector<16x32xf32>, vector<16x32xf32> -> vector<32x32xf32>
    %c0_7 = arith.constant 0 : index
    %c0_8 = arith.constant 0 : index
    %13 = vector.load %arg4[%c0_7, %c0_8] : memref<16x512xf32, #tpu.memory_space<vmem>>, vector<16x512xf32>
    %cst_9 = arith.constant dense<0.000000e+00> : vector<32x512xf32>
    %14 = tpu.matmul %1, %13, %cst_9 {dimension_numbers = #tpu.dot_dimension_numbers<[1], [0], [0], [1], [0, 0, 1, 1], [], []>} : vector<32x16xf32>, vector<16x512xf32>, vector<32x512xf32> -> vector<32x512xf32>
    %15 = vector.extract_strided_slice %14 {offsets = [0, 0], sizes = [16, 256], strides = [1, 1]} : vector<32x512xf32> to vector<16x256xf32>
    %16 = vector.extract_strided_slice %14 {offsets = [16, 0], sizes = [16, 256], strides = [1, 1]} : vector<32x512xf32> to vector<16x256xf32>
    %17 = vector.extract_strided_slice %14 {offsets = [0, 256], sizes = [16, 256], strides = [1, 1]} : vector<32x512xf32> to vector<16x256xf32>
    %18 = vector.extract_strided_slice %14 {offsets = [16, 256], sizes = [16, 256], strides = [1, 1]} : vector<32x512xf32> to vector<16x256xf32>
    %19 = arith.mulf %15, %17 : vector<16x256xf32>
    %20 = arith.mulf %16, %18 : vector<16x256xf32>
    %21 = arith.subf %19, %20 : vector<16x256xf32>
    %c0_10 = arith.constant 0 : index
    %c0_11 = arith.constant 0 : index
    %22 = vector.load %arg10[%c0_10, %c0_11] : memref<16x1792xf32, #tpu.memory_space<vmem>>, vector<16x256xf32>
    tpu.vector_store %arg10[%c0_10, %c0_11], %21 {strides = array<i32>} : memref<16x1792xf32, #tpu.memory_space<vmem>>, vector<16x256xf32>,
    %23 = arith.mulf %15, %18 : vector<16x256xf32>
    %24 = arith.mulf %16, %17 : vector<16x256xf32>
    %25 = arith.addf %23, %24 : vector<16x256xf32>
    %c0_12 = arith.constant 0 : index
    %c0_13 = arith.constant 0 : index
    %26 = vector.load %arg11[%c0_12, %c0_13] : memref<16x1792xf32, #tpu.memory_space<vmem>>, vector<16x256xf32>
    tpu.vector_store %arg11[%c0_12, %c0_13], %25 {strides = array<i32>} : memref<16x1792xf32, #tpu.memory_space<vmem>>, vector<16x256xf32>,
    %c0_14 = arith.constant 0 : index
    %c0_15 = arith.constant 0 : index
    %27 = vector.load %arg5[%c0_14, %c0_15] : memref<32x512xf32, #tpu.memory_space<vmem>>, vector<32x512xf32>
    %cst_16 = arith.constant dense<0.000000e+00> : vector<32x512xf32>
    %28 = tpu.matmul %12, %27, %cst_16 {dimension_numbers = #tpu.dot_dimension_numbers<[1], [0], [0], [1], [0, 0, 1, 1], [], []>} : vector<32x32xf32>, vector<32x512xf32>, vector<32x512xf32> -> vector<32x512xf32>
    %c0_17 = arith.constant 0 : index
    %c0_18 = arith.constant 0 : index
    %29 = vector.load %arg6[%c0_17, %c0_18] : memref<16x512xf32, #tpu.memory_space<vmem>>, vector<16x512xf32>
    %cst_19 = arith.constant dense<0.000000e+00> : vector<32x512xf32>
    %30 = tpu.matmul %1, %29, %cst_19 {dimension_numbers = #tpu.dot_dimension_numbers<[1], [0], [0], [1], [0, 0, 1, 1], [], []>} : vector<32x16xf32>, vector<16x512xf32>, vector<32x512xf32> -> vector<32x512xf32>
    %31 = vector.extract_strided_slice %28 {offsets = [0, 0], sizes = [16, 512], strides = [1, 1]} : vector<32x512xf32> to vector<16x512xf32>
    %32 = vector.extract_strided_slice %28 {offsets = [16, 0], sizes = [16, 512], strides = [1, 1]} : vector<32x512xf32> to vector<16x512xf32>
    %33 = vector.extract_strided_slice %30 {offsets = [0, 0], sizes = [16, 512], strides = [1, 1]} : vector<32x512xf32> to vector<16x512xf32>
    %34 = vector.extract_strided_slice %30 {offsets = [16, 0], sizes = [16, 512], strides = [1, 1]} : vector<32x512xf32> to vector<16x512xf32>
    %35 = arith.mulf %31, %33 : vector<16x512xf32>
    %36 = arith.mulf %32, %34 : vector<16x512xf32>
    %37 = arith.subf %35, %36 : vector<16x512xf32>
    %c0_20 = arith.constant 0 : index
    %c256 = arith.constant 256 : index
    %38 = vector.load %arg10[%c0_20, %c256] : memref<16x1792xf32, #tpu.memory_space<vmem>>, vector<16x512xf32>
    tpu.vector_store %arg10[%c0_20, %c256], %37 {strides = array<i32>} : memref<16x1792xf32, #tpu.memory_space<vmem>>, vector<16x512xf32>,
    %39 = arith.mulf %31, %34 : vector<16x512xf32>
    %40 = arith.mulf %32, %33 : vector<16x512xf32>
    %41 = arith.addf %39, %40 : vector<16x512xf32>
    %c0_21 = arith.constant 0 : index
    %c256_22 = arith.constant 256 : index
    %42 = vector.load %arg11[%c0_21, %c256_22] : memref<16x1792xf32, #tpu.memory_space<vmem>>, vector<16x512xf32>
    tpu.vector_store %arg11[%c0_21, %c256_22], %41 {strides = array<i32>} : memref<16x1792xf32, #tpu.memory_space<vmem>>, vector<16x512xf32>,
    %c0_23 = arith.constant 0 : index
    %c0_24 = arith.constant 0 : index
    %43 = vector.load %arg7[%c0_23, %c0_24] : memref<32x2048xf32, #tpu.memory_space<vmem>>, vector<32x2048xf32>
    %cst_25 = arith.constant dense<0.000000e+00> : vector<32x2048xf32>
    %44 = tpu.matmul %12, %43, %cst_25 {dimension_numbers = #tpu.dot_dimension_numbers<[1], [0], [0], [1], [0, 0, 1, 1], [], []>} : vector<32x32xf32>, vector<32x2048xf32>, vector<32x2048xf32> -> vector<32x2048xf32>
    %45 = vector.extract_strided_slice %44 {offsets = [0, 0], sizes = [16, 1024], strides = [1, 1]} : vector<32x2048xf32> to vector<16x1024xf32>
    %46 = vector.extract_strided_slice %44 {offsets = [16, 0], sizes = [16, 1024], strides = [1, 1]} : vector<32x2048xf32> to vector<16x1024xf32>
    %47 = vector.extract_strided_slice %44 {offsets = [0, 1024], sizes = [16, 1024], strides = [1, 1]} : vector<32x2048xf32> to vector<16x1024xf32>
    %48 = vector.extract_strided_slice %44 {offsets = [16, 1024], sizes = [16, 1024], strides = [1, 1]} : vector<32x2048xf32> to vector<16x1024xf32>
    %49 = arith.mulf %45, %47 : vector<16x1024xf32>
    %50 = arith.mulf %46, %48 : vector<16x1024xf32>
    %51 = arith.subf %49, %50 : vector<16x1024xf32>
    %c0_26 = arith.constant 0 : index
    %c768 = arith.constant 768 : index
    %52 = vector.load %arg10[%c0_26, %c768] : memref<16x1792xf32, #tpu.memory_space<vmem>>, vector<16x1024xf32>
    tpu.vector_store %arg10[%c0_26, %c768], %51 {strides = array<i32>} : memref<16x1792xf32, #tpu.memory_space<vmem>>, vector<16x1024xf32>,
    %53 = arith.mulf %45, %48 : vector<16x1024xf32>
    %54 = arith.mulf %46, %47 : vector<16x1024xf32>
    %55 = arith.addf %53, %54 : vector<16x1024xf32>
    %c0_27 = arith.constant 0 : index
    %c768_28 = arith.constant 768 : index
    %56 = vector.load %arg11[%c0_27, %c768_28] : memref<16x1792xf32, #tpu.memory_space<vmem>>, vector<16x1024xf32>
    tpu.vector_store %arg11[%c0_27, %c768_28], %55 {strides = array<i32>} : memref<16x1792xf32, #tpu.memory_space<vmem>>, vector<16x1024xf32>,
    %c0_29 = arith.constant 0 : index
    %c0_30 = arith.constant 0 : index
    %57 = vector.load %arg10[%c0_29, %c0_30] : memref<16x1792xf32, #tpu.memory_space<vmem>>, vector<16x1792xf32>
    %c0_31 = arith.constant 0 : index
    %c0_32 = arith.constant 0 : index
    %58 = vector.load %arg11[%c0_31, %c0_32] : memref<16x1792xf32, #tpu.memory_space<vmem>>, vector<16x1792xf32>
    %c0_33 = arith.constant 0 : index
    %c0_34 = arith.constant 0 : index
    %c0_35 = arith.constant 0 : index
    %59 = vector.load %arg8[%c0_33, %c0_34, %c0_35] : memref<3x1792x128xf32, #tpu.memory_space<vmem>>, vector<1x1792x128xf32>
    %60 = vector.shape_cast %59 : vector<1x1792x128xf32> to vector<1792x128xf32>
    %cst_36 = arith.constant dense<0.000000e+00> : vector<16x128xf32>
    %61 = tpu.matmul %57, %60, %cst_36 {dimension_numbers = #tpu.dot_dimension_numbers<[1], [0], [0], [1], [0, 0, 1, 1], [], []>} : vector<16x1792xf32>, vector<1792x128xf32>, vector<16x128xf32> -> vector<16x128xf32>
    %c1 = arith.constant 1 : index
    %c0_37 = arith.constant 0 : index
    %c0_38 = arith.constant 0 : index
    %62 = vector.load %arg8[%c1, %c0_37, %c0_38] : memref<3x1792x128xf32, #tpu.memory_space<vmem>>, vector<1x1792x128xf32>
    %63 = vector.shape_cast %62 : vector<1x1792x128xf32> to vector<1792x128xf32>
    %cst_39 = arith.constant dense<0.000000e+00> : vector<16x128xf32>
    %64 = tpu.matmul %58, %63, %cst_39 {dimension_numbers = #tpu.dot_dimension_numbers<[1], [0], [0], [1], [0, 0, 1, 1], [], []>} : vector<16x1792xf32>, vector<1792x128xf32>, vector<16x128xf32> -> vector<16x128xf32>
    %65 = arith.addf %57, %58 : vector<16x1792xf32>
    %c2 = arith.constant 2 : index
    %c0_40 = arith.constant 0 : index
    %c0_41 = arith.constant 0 : index
    %66 = vector.load %arg8[%c2, %c0_40, %c0_41] : memref<3x1792x128xf32, #tpu.memory_space<vmem>>, vector<1x1792x128xf32>
    %67 = vector.shape_cast %66 : vector<1x1792x128xf32> to vector<1792x128xf32>
    %cst_42 = arith.constant dense<0.000000e+00> : vector<16x128xf32>
    %68 = tpu.matmul %65, %67, %cst_42 {dimension_numbers = #tpu.dot_dimension_numbers<[1], [0], [0], [1], [0, 0, 1, 1], [], []>} : vector<16x1792xf32>, vector<1792x128xf32>, vector<16x128xf32> -> vector<16x128xf32>
    %69 = arith.subf %61, %64 : vector<16x128xf32>
    %c0_43 = arith.constant 0 : index
    %c0_44 = arith.constant 0 : index
    %c0_45 = arith.constant 0 : index
    %70 = vector.load %arg9[%c0_43, %c0_44, %c0_45] : memref<2x16x128xf32, #tpu.memory_space<vmem>>, vector<1x16x128xf32>
    %71 = vector.shape_cast %70 : vector<1x16x128xf32> to vector<16x128xf32>
    %72 = vector.shape_cast %69 : vector<16x128xf32> to vector<1x16x128xf32>
    tpu.vector_store %arg9[%c0_43, %c0_44, %c0_45], %72 {strides = array<i32>} : memref<2x16x128xf32, #tpu.memory_space<vmem>>, vector<1x16x128xf32>,
    %73 = arith.subf %68, %61 : vector<16x128xf32>
    %74 = arith.subf %73, %64 : vector<16x128xf32>
    %c1_46 = arith.constant 1 : index
    %c0_47 = arith.constant 0 : index
    %c0_48 = arith.constant 0 : index
    %75 = vector.load %arg9[%c1_46, %c0_47, %c0_48] : memref<2x16x128xf32, #tpu.memory_space<vmem>>, vector<1x16x128xf32>
    %76 = vector.shape_cast %75 : vector<1x16x128xf32> to vector<16x128xf32>
    %77 = vector.shape_cast %74 : vector<16x128xf32> to vector<1x16x128xf32>
    tpu.vector_store %arg9[%c1_46, %c0_47, %c0_48], %77 {strides = array<i32>} : memref<2x16x128xf32, #tpu.memory_space<vmem>>, vector<1x16x128xf32>,
    return
  }
  func.func @transform_0(%arg0: i32) -> (i32, i32, i32) {
    %c0_i32 = arith.constant 0 : i32
    %c0_i32_0 = arith.constant 0 : i32
    %c0_i32_1 = arith.constant 0 : i32
    return %c0_i32, %arg0, %c0_i32_0 : i32, i32, i32
  }
  func.func @transform_1(%arg0: i32) -> (i32, i32) {
    %c0_i32 = arith.constant 0 : i32
    %c0_i32_0 = arith.constant 0 : i32
    %c0_i32_1 = arith.constant 0 : i32
    return %c0_i32, %c0_i32_0 : i32, i32
  }
  func.func @transform_2(%arg0: i32) -> (i32, i32, i32) {
    %c0_i32 = arith.constant 0 : i32
    %c0_i32_0 = arith.constant 0 : i32
    %c0_i32_1 = arith.constant 0 : i32
    return %c0_i32, %arg0, %c0_i32_0 : i32, i32, i32
  }
  func.func @transform_3(%arg0: i32) -> (i32, i32) {
    %c0_i32 = arith.constant 0 : i32
    %c0_i32_0 = arith.constant 0 : i32
    %c0_i32_1 = arith.constant 0 : i32
    return %c0_i32, %c0_i32_0 : i32, i32
  }
  func.func @transform_4(%arg0: i32) -> (i32, i32) {
    %c0_i32 = arith.constant 0 : i32
    %c0_i32_0 = arith.constant 0 : i32
    %c0_i32_1 = arith.constant 0 : i32
    return %c0_i32, %c0_i32_0 : i32, i32
  }
  func.func @transform_5(%arg0: i32) -> (i32, i32) {
    %c0_i32 = arith.constant 0 : i32
    %c0_i32_0 = arith.constant 0 : i32
    %c0_i32_1 = arith.constant 0 : i32
    return %c0_i32, %c0_i32_0 : i32, i32
  }
  func.func @transform_6(%arg0: i32) -> (i32, i32) {
    %c0_i32 = arith.constant 0 : i32
    %c0_i32_0 = arith.constant 0 : i32
    %c0_i32_1 = arith.constant 0 : i32
    return %c0_i32, %c0_i32_0 : i32, i32
  }
  func.func @transform_7(%arg0: i32) -> (i32, i32, i32) {
    %c0_i32 = arith.constant 0 : i32
    %c0_i32_0 = arith.constant 0 : i32
    %c0_i32_1 = arith.constant 0 : i32
    %c0_i32_2 = arith.constant 0 : i32
    return %c0_i32, %c0_i32_0, %c0_i32_1 : i32, i32, i32
  }
  func.func @transform_8(%arg0: i32) -> (i32, i32, i32) {
    %c0_i32 = arith.constant 0 : i32
    %c0_i32_0 = arith.constant 0 : i32
    %c0_i32_1 = arith.constant 0 : i32
    return %c0_i32, %arg0, %c0_i32_0 : i32, i32, i32
  }
}

</mosaic_0001>

<bundles_post_ra>
// kernel: tpu_custom_call.1
= control target key start
LH: loop header
LB: loop body
LE: loop exit
PB: predicated region body
PF: predicated region fallthrough
CT: control target
= control target key end

     0   :  { %13 = vsyncpa [#allocation5], 0  ;;  %s4605_s0 = inlined_call_operand.hbm [shape: f32[2,16,16], index: 0, kind: input, shape index: {}]   ;;  %s4606_s1 = inlined_call_operand.hbm [shape: f32[16,32], index: 1, kind: input, shape index: {}]   ;;  %s4607_s2 = inlined_call_operand.hbm [shape: f32[2,16,16], index: 2, kind: input, shape index: {}]   ;;  %s4608_s3 = inlined_call_operand.hbm [shape: f32[16,512], index: 3, kind: input, shape index: {}]   ;;  %s4609_s4 = inlined_call_operand.hbm [shape: f32[32,512], index: 4, kind: input, shape index: {}]   ;;  %s4610_s5 = inlined_call_operand.hbm [shape: f32[16,512], index: 5, kind: input, shape index: {}]   ;;  %s4611_s6 = inlined_call_operand.hbm [shape: f32[32,2048], index: 6, kind: input, shape index: {}]   ;;  %s4612_s7 = inlined_call_operand.hbm [shape: f32[3,1792,128], index: 7, kind: input, shape index: {}]   ;;  %s4613_s8 = inlined_call_operand.hbm [shape: f32[2,16,128], index: 8, kind: output, shape index: {}]  }
   0x1   :  { %14 = vsyncpa [#allocation8], 0 }
   0x2   :  { %15 = vsyncpa [#allocation11], 0 }
   0x3   :  { %16 = vsyncpa [#allocation14], 0 }
   0x4   :  { %17 = vsyncpa [#allocation17], 0 }
   0x5   :  { %18 = vsyncpa [#allocation6], 0  ;;  %s36_s29 = sshll.u32 %s4606_s1, 4  ;;  %s3508_s30 = smov [#allocation7]   ;;  %s37_s29 = int_to_ptr.hbm [resolvable:$true] %s36_s29 }
   0x6   :  { %s38_s9 = sshll.u32 %s3508_s30, 4  ;;  %s62_s12 = sshll.u32 %s4608_s3, 4  ;;  %s39_s9 = int_to_ptr.vmem [resolvable:$true] %s38_s9  ;;  %s63_s12 = int_to_ptr.hbm [resolvable:$true] %s62_s12 }
   0x7   :  { %s3509_s13 = smov 128   ;;  %s3510_s14 = smov 8  }
   0x8   :  { %44 = dma.hbm_to_vmem [thread:$0]  %s37_s29, 256, %s39_s9, [#allocation8], %s3509_s13, %s3509_s13, %s3510_s14  }
   0x9   :  { %s3511_s15 = smov [#allocation10]   ;;  %s3512_s17 = smov 512  }
   0xa   :  { %s64_s16 = sshll.u32 %s3511_s15, 4  ;;  %s3513_s1 = smov 32   ;;  %s65_s16 = int_to_ptr.vmem [resolvable:$true] %s64_s16 }
   0xb   :  { %70 = dma.hbm_to_vmem [thread:$0]  %s63_s12, 1024, %s65_s16, [#allocation11], %s3512_s17, %s3512_s17, %s3513_s1  }
   0xc   :  { %s88_s3 = sshll.u32 %s4610_s5, 4  ;;  %s3514_s20 = smov [#allocation13]   ;;  %s89_s3 = int_to_ptr.hbm [resolvable:$true] %s88_s3 }
   0xd   :  { %s90_s21 = sshll.u32 %s3514_s20, 4  ;;  %s23_s24 = sshll.u32 %s4605_s0, 4  ;;  %s91_s21 = int_to_ptr.vmem [resolvable:$true] %s90_s21  ;;  %s24_s24 = int_to_ptr.hbm [resolvable:$true] %s23_s24 }
   0xe   :  { %96 = dma.hbm_to_vmem [thread:$0]  %s89_s3, 1024, %s91_s21, [#allocation14], %s3512_s17, %s3512_s17, %s3513_s1  }
   0xf   :  { %s3515_s25 = smov [#allocation4]   ;;  %s49_s29 = sshll.u32 %s4607_s2, 4  ;;  %s50_s29 = int_to_ptr.hbm [resolvable:$true] %s49_s29 }
  0x10   :  { %s25_s26 = sshll.u32 %s3515_s25, 4  ;;  %s75_s0 = sshll.u32 %s4609_s4, 4  ;;  %s26_s26 = int_to_ptr.vmem [resolvable:$true] %s25_s26  ;;  %s76_s0 = int_to_ptr.hbm [resolvable:$true] %s75_s0 }
  0x11   :  { %31 = dma.hbm_to_vmem [thread:$0]  %s24_s24, 512, %s26_s26, [#allocation5], %s3509_s13, %s3509_s13, %s3510_s14  }
  0x12   :  { %s3516_s9 = smov [#allocation9]   ;;  %s3517_s11 = smov [#allocation12]  }
  0x13   :  { %s51_s10 = sshll.u32 %s3516_s9, 4  ;;  %s77_s2 = sshll.u32 %s3517_s11, 4  ;;  %s52_s10 = int_to_ptr.vmem [resolvable:$true] %s51_s10  ;;  %s78_s2 = int_to_ptr.vmem [resolvable:$true] %s77_s2 }
  0x14   :  { %57 = dma.hbm_to_vmem [thread:$0]  %s50_s29, 512, %s52_s10, [#allocation8], %s3509_s13, %s3509_s13, %s3510_s14  }
  0x15   :  { %s101_s16 = sshll.u32 %s4611_s6, 4  ;;  %s3518_s4 = smov [#allocation15]   ;;  %s102_s16 = int_to_ptr.hbm [resolvable:$true] %s101_s16 }
  0x16   :  { %83 = dma.hbm_to_vmem [thread:$0]  %s76_s0, 2048, %s78_s2, [#allocation11], %s3512_s17, %s3512_s17, %s3513_s1  }
  0x17   :  { %s103_s18 = sshll.u32 %s3518_s4, 4  ;;  %s114_s20 = sshll.u32 %s4612_s7, 4  ;;  %s104_s18 = int_to_ptr.vmem [resolvable:$true] %s103_s18  ;;  %s115_s20 = int_to_ptr.hbm [resolvable:$true] %s114_s20 }
  0x18   :  { %s3519_s21 = smov 2048   ;;  %s3520_s22 = smov [#allocation16]  }
  0x19   :  { %109 = dma.hbm_to_vmem [thread:$0]  %s102_s16, 8192, %s104_s18, [#allocation14], %s3519_s21, %s3519_s21, %s3509_s13  }
  0x1a   :  { %s116_s23 = sshll.u32 %s3520_s22, 4  ;;  %s117_s23 = int_to_ptr.vmem [resolvable:$true] %s116_s23 }
  0x1b   :  { %122 = dma.hbm_to_vmem [thread:$0]  %s115_s20, 86016, %s117_s23, [#allocation17], %s3509_s13, %s3509_s13, %s3510_s14  }
  0x1c   :  { %3496 = dma.done.wait [#allocation5], 512  }
  0x1d   :  { %3497 = vsyncadd [#allocation5], 4294966784 }
  0x1e   :  { %3498 = dma.done.wait [#allocation8], 768  }
  0x1f   :  { %3499 = vsyncadd [#allocation8], 4294966528 }
  0x20   :  { %3500 = dma.done.wait [#allocation11], 3072  }
  0x21   :  { %3501 = vsyncadd [#allocation11], 4294964224 }
  0x22   :  { %3502 = dma.done.wait [#allocation14], 9216  }
  0x23   :  { %3503 = vsyncadd [#allocation14], 4294958080 }
  0x24   :  { %3504 = dma.done.wait [#allocation17], 86016  }
  0x25   :  { %3505 = vsyncadd [#allocation17], 4294881280  ;;  %v164_v0 = vld [vmem:[#allocation7 + $0x8] sm:$0xff]  ;;  %v163_v1 = vld [vmem:[#allocation7] sm:$0xff]  ;;  %vm165_vm0 = vcmask 130048   ;;  %s3521_s6 = smov 112  }
  0x26   :  { %192 = vmatpush.msra.mxu0 %v164_v0  ;;  %3258 = vmatpush.msra.mxu3 %v164_v0  ;;  %v159_v2 = vld [vmem:[#allocation9] sm:$0xff]  ;;  %v160_v3 = vld [vmem:[#allocation9 + $0x8] sm:$0xff]  ;;  %v161_v4 = vld [vmem:[#allocation9 + $0x10] sm:$0xff]  ;;  %s3522_s7 = smov 16   ;;  %vm411_vm1 = vcmask 261120   ;;  %s3523_s17 = smov [#allocation18]  }
  0x27   :  { %v162_v5 = vld [vmem:[#allocation9 + $0x18] sm:$0xff]  ;;  %v231_v6 = vld [vmem:[#allocation10 + $0x20] sm:$0xff]  ;;  %v233_v8 = vld [vmem:[#allocation10 + $0x30] sm:$0xff]  ;;  %s3123_s1 = sshll.u32 %s3523_s17, 4  ;;  %s3125_s26 = sshll.u32 %s4613_s8, 4  ;;  %s3124_s1 = int_to_ptr.vmem [resolvable:$true] %s3123_s1  ;;  %s3126_s26 = int_to_ptr.hbm [resolvable:$true] %s3125_s26 }
  0x28   :  { %193 = vmatpush.msra.mxu0 %v163_v1  ;;  %3259 = vmatpush.msra.mxu3 %v163_v1  ;;  %v227_v7 = vld [vmem:[#allocation10] sm:$0xff]  ;;  %v3619_v9 = vld [vmem:[#allocation4] sm:$0xff]  ;;  %v232_v11 = vld [vmem:[#allocation10 + $0x28] sm:$0xff] }
  0x29   :  { %3142 = vmatmul.msk.f32.vlgmr.msra.gmra.mxu0 %vm165_vm0, %v159_v2  ;;  %3143 = vmatmul.msk.f32.vlgmr.msra.gmra.mxu3 %vm165_vm0, %v160_v3  ;;  %v229_v10 = vld [vmem:[#allocation10 + $0x10] sm:$0xff]  ;;  %v228_v12 = vld [vmem:[#allocation10 + $0x8] sm:$0xff]  ;;  %v3625_v13 = vld [vmem:[#allocation4 + $0x8] sm:$0xff] }
  0x2a   :  { %261 = vmatpush.msrb.mxu0 %v231_v6  ;;  %319 = vmatpush.msrb.mxu3 %v233_v8  ;;  %v234_v14 = vld [vmem:[#allocation10 + $0x38] sm:$0xff]  ;;  %v3638_v17 = vld [vmem:[#allocation4 + $0x10] sm:$0xff]  ;;  %v3651_v19 = vld [vmem:[#allocation4 + $0x18] sm:$0xff] }
  0x2b   :  { %3260 = vmatpush.msra.mxu1 %v231_v6  ;;  %3262 = vmatpush.msra.mxu2 %v232_v11  ;;  %v230_v15 = vld [vmem:[#allocation10 + $0x18] sm:$0xff]  ;;  %v407_v22 = vld [vmem:[#allocation12 + $0x60] sm:$0xff]  ;;  %v408_v23 = vld [vmem:[#allocation12 + $0x68] sm:$0xff] }
  0x2c   :  { %262 = vmatpush.msrb.mxu0 %v227_v7  ;;  %320 = vmatpush.msrb.mxu3 %v229_v10  ;;  %v409_v24 = vld [vmem:[#allocation12 + $0x70] sm:$0xff]  ;;  %v410_v25 = vld [vmem:[#allocation12 + $0x78] sm:$0xff]  ;;  %v403_v26 = vld [vmem:[#allocation12 + $0x40] sm:$0xff] }
  0x2d   :  { %3261 = vmatpush.msra.mxu1 %v227_v7  ;;  %3263 = vmatpush.msra.mxu2 %v228_v12  ;;  %v404_v27 = vld [vmem:[#allocation12 + $0x48] sm:$0xff]  ;;  %v405_v28 = vld [vmem:[#allocation12 + $0x50] sm:$0xff]  ;;  %v406_v29 = vld [vmem:[#allocation12 + $0x58] sm:$0xff] }
  0x2e   :  { %290 = vmatpush.msra.mxu0 %v232_v11  ;;  %3147 = vmatmul.msk.f32.vlgmr.msra.gmra.mxu1 %vm165_vm0, %v3625_v13  ;;  %v399_v30 = vld [vmem:[#allocation12 + $0x20] sm:$0xff]  ;;  %v400_v31 = vld [vmem:[#allocation12 + $0x28] sm:$0xff]  ;;  %v401_v32 = vld [vmem:[#allocation12 + $0x30] sm:$0xff] }
  0x2f   :  { %3151 = vmatmul.msk.f32.vlgmr.msra.gmra.mxu2 %vm165_vm0, %v3625_v13  ;;  %436 = vmatpush.msrb.mxu1 %v407_v22  ;;  %v402_v33 = vld [vmem:[#allocation12 + $0x38] sm:$0xff]  ;;  %v395_v34 = vld [vmem:[#allocation12] sm:$0xff]  ;;  %v396_v35 = vld [vmem:[#allocation12 + $0x8] sm:$0xff] }
  0x30   :  { %291 = vmatpush.msra.mxu0 %v228_v12  ;;  %465 = vmatpush.msrb.mxu2 %v408_v23  ;;  %v397_v36 = vld [vmem:[#allocation12 + $0x10] sm:$0xff]  ;;  %v398_v37 = vld [vmem:[#allocation12 + $0x18] sm:$0xff]  ;;  %v544_v38 = vld [vmem:[#allocation13 + $0x20] sm:$0xff] }
  0x31   :  { %3144 = vmatmul.msk.f32.gmra.mxu3 %vm165_vm0, %v161_v4  ;;  %3146 = vmatmul.msk.f32.vlgmr.msrb.gmra.mxu0 %vm165_vm0, %v3619_v9  ;;  %v545_v39 = vld [vmem:[#allocation13 + $0x28] sm:$0xff]  ;;  %v546_v40 = vld [vmem:[#allocation13 + $0x30] sm:$0xff]  ;;  %v547_v41 = vld [vmem:[#allocation13 + $0x38] sm:$0xff] }
  0x32   :  { %348 = vmatpush.msrb.mxu0 %v234_v14  ;;  %494 = vmatpush.msra.mxu3 %v409_v24  ;;  %v540_v42 = vld [vmem:[#allocation13] sm:$0xff]  ;;  %v541_v43 = vld [vmem:[#allocation13 + $0x8] sm:$0xff]  ;;  %v542_v44 = vld [vmem:[#allocation13 + $0x10] sm:$0xff] }
  0x33   :  { %437 = vmatpush.msrb.mxu1 %v403_v26  ;;  %466 = vmatpush.msrb.mxu2 %v404_v27  ;;  %v543_v45 = vld [vmem:[#allocation13 + $0x18] sm:$0xff]  ;;  %v776_v54 = vld [vmem:[#allocation15 + $0x180] sm:$0xff]  ;;  %v777_v55 = vld [vmem:[#allocation15 + $0x188] sm:$0xff] }
  0x34   :  { %349 = vmatpush.msrb.mxu0 %v230_v15  ;;  %495 = vmatpush.msra.mxu3 %v405_v28  ;;  %v778_v56 = vld [vmem:[#allocation15 + $0x190] sm:$0xff]  ;;  %v779_v57 = vld [vmem:[#allocation15 + $0x198] sm:$0xff]  ;;  %v760_v58 = vld [vmem:[#allocation15 + $0x100] sm:$0xff] }
  0x35   :  { %438 = vmatpush.msrb.mxu1 %v399_v30  ;;  %467 = vmatpush.msrb.mxu2 %v400_v31  ;;  %v761_v59 = vld [vmem:[#allocation15 + $0x108] sm:$0xff]  ;;  %v762_v60 = vld [vmem:[#allocation15 + $0x110] sm:$0xff]  ;;  %v763_v61 = vld [vmem:[#allocation15 + $0x118] sm:$0xff] }
  0x36   :  { %3148 = vmatmul.msk.f32.gmra.mxu1 %vm165_vm0, %v3638_v17  ;;  %496 = vmatpush.msra.mxu3 %v401_v32  ;;  %v744_v62 = vld [vmem:[#allocation15 + $0x80] sm:$0xff]  ;;  %v745_v63 = vld [vmem:[#allocation15 + $0x88] sm:$0xff]  ;;  %v746_v0 = vld [vmem:[#allocation15 + $0x90] sm:$0xff] }
  0x37   :  { %3152 = vmatmul.msk.f32.gmra.mxu2 %vm165_vm0, %v3638_v17  ;;  %439 = vmatpush.msrb.mxu1 %v395_v34  ;;  %v747_v1 = vld [vmem:[#allocation15 + $0x98] sm:$0xff]  ;;  %v728_v2 = vld [vmem:[#allocation15] sm:$0xff]  ;;  %v729_v3 = vld [vmem:[#allocation15 + $0x8] sm:$0xff] }
  0x38   :  { %468 = vmatpush.msrb.mxu2 %v396_v35  ;;  %497 = vmatpush.msra.mxu3 %v397_v36  ;;  %v730_v4 = vld [vmem:[#allocation15 + $0x10] sm:$0xff]  ;;  %v780_v6 = vld [vmem:[#allocation15 + $0x1a0] sm:$0xff]  ;;  %v781_v7 = vld [vmem:[#allocation15 + $0x1a8] sm:$0xff] }
  0x39   :  { %3145 = vmatmul.msk.f32.gmra.mxu3 %vm165_vm0, %v162_v5  ;;  %3150 = vmatmul.msk.f32.vlgmr.msra.gmra.mxu0 %vm165_vm0, %v3619_v9  ;;  %v731_v5 = vld [vmem:[#allocation15 + $0x18] sm:$0xff]  ;;  %v782_v8 = vld [vmem:[#allocation15 + $0x1b0] sm:$0xff]  ;;  %v764_v10 = vld [vmem:[#allocation15 + $0x120] sm:$0xff] }
  0x3a   :  { %523 = vmatpush.msra.mxu0 %v410_v25  ;;  %562 = vmatpush.msra.mxu1 %v544_v38  ;;  %v765_v11 = vld [vmem:[#allocation15 + $0x128] sm:$0xff]  ;;  %v766_v12 = vld [vmem:[#allocation15 + $0x130] sm:$0xff]  ;;  %v748_v14 = vld [vmem:[#allocation15 + $0xa0] sm:$0xff] }
  0x3b   :  { %591 = vmatpush.msra.mxu2 %v545_v39  ;;  %v749_v15 = vld [vmem:[#allocation15 + $0xa8] sm:$0xff]  ;;  %v784_v24 = vld [vmem:[#allocation15 + $0x1c0] sm:$0xff]  ;;  %v786_v26 = vld [vmem:[#allocation15 + $0x1d0] sm:$0xff] }
  0x3c   :  { %524 = vmatpush.msra.mxu0 %v406_v29  ;;  %563 = vmatpush.msra.mxu1 %v540_v42  ;;  %v785_v25 = vld [vmem:[#allocation15 + $0x1c8] sm:$0xff]  ;;  %v787_v28 = vld [vmem:[#allocation15 + $0x1d8] sm:$0xff]  ;;  %v768_v29 = vld [vmem:[#allocation15 + $0x140] sm:$0xff] }
  0x3d   :  { %592 = vmatpush.msra.mxu2 %v541_v43  ;;  %v769_v30 = vld [vmem:[#allocation15 + $0x148] sm:$0xff]  ;;  %v770_v31 = vld [vmem:[#allocation15 + $0x150] sm:$0xff]  ;;  %v771_v32 = vld [vmem:[#allocation15 + $0x158] sm:$0xff] }
  0x3e   :  { %3149 = vmatmul.msk.f32.gmra.mxu1 %vm165_vm0, %v3651_v19  ;;  %525 = vmatpush.msra.mxu0 %v402_v33  ;;  %v752_v33 = vld [vmem:[#allocation15 + $0xc0] sm:$0xff]  ;;  %v753_v34 = vld [vmem:[#allocation15 + $0xc8] sm:$0xff]  ;;  %v754_v35 = vld [vmem:[#allocation15 + $0xd0] sm:$0xff] }
  0x3f   :  { %3153 = vmatmul.msk.f32.gmra.mxu2 %vm165_vm0, %v3651_v19  ;;  %v755_v36 = vld [vmem:[#allocation15 + $0xd8] sm:$0xff]  ;;  %v737_v38 = vld [vmem:[#allocation15 + $0x48] sm:$0xff] }
  0x40   :  { %526 = vmatpush.msra.mxu0 %v398_v37  ;;  %v736_v37 = vld [vmem:[#allocation15 + $0x40] sm:$0xff] }
  0x41   :  { %3154 = vmatmul.msk.f32.vlgmr.msrb.gmra.mxu3 %vm165_vm0, %v3619_v9  ;;  %3158 = vmatmul.msk.f32.vlgmr.msrb.gmra.mxu0 %vm165_vm0, %v3619_v9 }
  0x42   :  { %620 = vmatpush.msrb.mxu3 %v546_v40  ;;  %649 = vmatpush.msrb.mxu0 %v547_v41  ;;  %v738_v40 = vld [vmem:[#allocation15 + $0x50] sm:$0xff]  ;;  %v739_v41 = vld [vmem:[#allocation15 + $0x58] sm:$0xff] }
  0x44   :  { %621 = vmatpush.msrb.mxu3 %v542_v44  ;;  %650 = vmatpush.msrb.mxu0 %v543_v45 }
  0x49   :  { %3155 = vmatmul.msk.f32.gmra.mxu3 %vm165_vm0, %v3625_v13  ;;  %3159 = vmatmul.msk.f32.gmra.mxu0 %vm165_vm0, %v3625_v13 }
  0x51   :  { %3156 = vmatmul.msk.f32.gmra.mxu3 %vm165_vm0, %v3638_v17  ;;  %3160 = vmatmul.msk.f32.gmra.mxu0 %vm165_vm0, %v3638_v17 }
  0x59   :  { %3157 = vmatmul.msk.f32.gmra.mxu3 %vm165_vm0, %v3651_v19  ;;  %3161 = vmatmul.msk.f32.gmra.mxu0 %vm165_vm0, %v3651_v19 }
  0xa6   :  { %v3631_v16 = vpop.f32.mrf.mxu0 }
  0xa7   :  { %219 = vrot.lane.b32.xlu1 %v3631_v16, %s3521_s6 }
  0xab   :  { %v3799_v42 = vpop.f32.mrf.mxu1 }
  0xac   :  { %v3642_v18 = vpop.f32.mrf.mxu3 }
  0xae   :  { %v3759_v22 = vpop.f32.mrf.mxu0 }
  0xaf   :  { %221 = vrot.lane.b32.xlu1 %v3642_v18, %s3521_s6 }
  0xb2   :  { %v3807_v44 = vpop.f32.mrf.mxu2 }
  0xb3   :  { %4686 = vst [vmem:[#allocation26_spill] sm:$0xff] %v3807_v44 }
  0xb4   :  { %v3655_v20 = vpop.f32.mrf.mxu3 }
  0xb5   :  { %209 = vrot.lane.b32.xlu0 %v3655_v20, %s3522_s7 }
  0xb6   :  { %v3769_v23 = vpop.f32.mrf.mxu0 }
  0xb7   :  { %4685 = vst [vmem:[#allocation25_spill] sm:$0xff] %v3769_v23 }
  0xbc   :  { %v3664_v21 = vpop.f32.mrf.mxu3 }
  0xbd   :  { %211 = vrot.lane.b32.xlu0 %v3664_v21, %s3522_s7 }
  0xbe   :  { %v3787_v27 = vpop.f32.mrf.mxu0 }
  0xc4   :  { %v3789_v39 = vpop.f32.mrf.mxu3 }
  0xc6   :  { %v3801_v43 = vpop.f32.mrf.mxu0 }
  0xcc   :  { %v3813_v45 = vpop.f32.mrf.mxu3 }
 0x119   :  { %v220_v50 = vpop.permute.xlu1 %219 }
 0x11a   :  { %v3697_v51 = vsel %vm165_vm0, %v220_v50, %v3655_v20  ;;  %v734_v20 = vld [vmem:[#allocation15 + $0x30] sm:$0xff]  ;;  %v3815_v50 = vpop.f32.mrf.mxu1 }
 0x121   :  { %v222_v52 = vpop.permute.xlu1 %221 }
 0x122   :  { %v3709_v53 = vsel %vm165_vm0, %v222_v52, %v3664_v21  ;;  %v735_v21 = vld [vmem:[#allocation15 + $0x38] sm:$0xff]  ;;  %v772_v52 = vld [vmem:[#allocation15 + $0x160] sm:$0xff] }
 0x127   :  { %v210_v46 = vpop.permute.xlu0 %209 }
 0x128   :  { %v3673_v47 = vsel %vm165_vm0, %v3631_v16, %v210_v46  ;;  %v750_v16 = vld [vmem:[#allocation15 + $0xb0] sm:$0xff]  ;;  %v788_v46 = vld [vmem:[#allocation15 + $0x1e0] sm:$0xff] }
 0x129   :  { %3162 = vmatmul.msk.f32.vlgmr.msrb.gmra.mxu1 %vm411_vm1, %v3673_v47  ;;  %3166 = vmatmul.msk.f32.vlgmr.msrb.gmra.mxu2 %vm411_vm1, %v3673_v47 }
 0x12a   :  { %3170 = vmatmul.msk.f32.vlgmr.msra.gmra.mxu3 %vm411_vm1, %v3673_v47  ;;  %3174 = vmatmul.msk.f32.vlgmr.msra.gmra.mxu0 %vm411_vm1, %v3673_v47 }
 0x12b   :  { %804 = vmatpush.msrb.mxu1 %v776_v54  ;;  %833 = vmatpush.msrb.mxu2 %v777_v55  ;;  %v773_v54 = vld [vmem:[#allocation15 + $0x168] sm:$0xff]  ;;  %v3817_v55 = vpop.f32.mrf.mxu0 }
 0x12c   :  { %862 = vmatpush.msra.mxu3 %v778_v56  ;;  %891 = vmatpush.msra.mxu0 %v779_v57  ;;  %4687 = vst [vmem:[#allocation27_spill] sm:$0xff] %v3817_v55  ;;  %v756_v56 = vld [vmem:[#allocation15 + $0xe0] sm:$0xff]  ;;  %v757_v57 = vld [vmem:[#allocation15 + $0xe8] sm:$0xff] }
 0x12d   :  { %805 = vmatpush.msrb.mxu1 %v760_v58  ;;  %834 = vmatpush.msrb.mxu2 %v761_v59  ;;  %v740_v58 = vld [vmem:[#allocation15 + $0x60] sm:$0xff]  ;;  %v741_v59 = vld [vmem:[#allocation15 + $0x68] sm:$0xff] }
 0x12e   :  { %863 = vmatpush.msra.mxu3 %v762_v60  ;;  %892 = vmatpush.msra.mxu0 %v763_v61  ;;  %v3827_v60 = vpop.f32.mrf.mxu2  ;;  %v3829_v61 = vpop.f32.mrf.mxu3 }
 0x12f   :  { %v212_v48 = vpop.permute.xlu0 %211  ;;  %806 = vmatpush.msrb.mxu1 %v744_v62  ;;  %835 = vmatpush.msrb.mxu2 %v745_v63  ;;  %v3831_v62 = vpop.f32.mrf.mxu1 }
 0x130   :  { %v3685_v49 = vsel %vm165_vm0, %v3642_v18, %v212_v48  ;;  %864 = vmatpush.msra.mxu3 %v746_v0  ;;  %893 = vmatpush.msra.mxu0 %v747_v1  ;;  %v732_v18 = vld [vmem:[#allocation15 + $0x20] sm:$0xff]  ;;  %v789_v48 = vld [vmem:[#allocation15 + $0x1e8] sm:$0xff]  ;;  %v790_v0 = vld [vmem:[#allocation15 + $0x1f0] sm:$0xff] }
 0x131   :  { %3163 = vmatmul.msk.f32.gmra.mxu1 %vm411_vm1, %v3685_v49  ;;  %3167 = vmatmul.msk.f32.gmra.mxu2 %vm411_vm1, %v3685_v49  ;;  %v791_v1 = vld [vmem:[#allocation15 + $0x1f8] sm:$0xff] }
 0x132   :  { %3171 = vmatmul.msk.f32.gmra.mxu3 %vm411_vm1, %v3685_v49  ;;  %3175 = vmatmul.msk.f32.gmra.mxu0 %vm411_vm1, %v3685_v49 }
 0x133   :  { %807 = vmatpush.msrb.mxu1 %v728_v2  ;;  %836 = vmatpush.msrb.mxu2 %v729_v3  ;;  %v3833_v63 = vpop.f32.mrf.mxu0  ;;  %v774_v3 = vld [vmem:[#allocation15 + $0x170] sm:$0xff] }
 0x134   :  { %865 = vmatpush.msra.mxu3 %v730_v4  ;;  %894 = vmatpush.msra.mxu0 %v731_v5  ;;  %4688 = vst [vmem:[#allocation28_spill] sm:$0xff] %v3833_v63  ;;  %v775_v4 = vld [vmem:[#allocation15 + $0x178] sm:$0xff] }
 0x136   :  { %v3843_v2 = vpop.f32.mrf.mxu2  ;;  %v3845_v5 = vpop.f32.mrf.mxu3 }
 0x139   :  { %3164 = vmatmul.msk.f32.gmra.mxu1 %vm411_vm1, %v3697_v51  ;;  %3168 = vmatmul.msk.f32.gmra.mxu2 %vm411_vm1, %v3697_v51 }
 0x13a   :  { %3172 = vmatmul.msk.f32.gmra.mxu3 %vm411_vm1, %v3697_v51  ;;  %3176 = vmatmul.msk.f32.gmra.mxu0 %vm411_vm1, %v3697_v51 }
 0x141   :  { %3165 = vmatmul.msk.f32.gmra.mxu1 %vm411_vm1, %v3709_v53  ;;  %3169 = vmatmul.msk.f32.gmra.mxu2 %vm411_vm1, %v3709_v53 }
 0x142   :  { %3173 = vmatmul.msk.f32.gmra.mxu3 %vm411_vm1, %v3709_v53  ;;  %3177 = vmatmul.msk.f32.gmra.mxu0 %vm411_vm1, %v3709_v53 }
 0x149   :  { %3178 = vmatmul.msk.f32.vlgmr.msra.gmra.mxu1 %vm165_vm0, %v3619_v9  ;;  %3182 = vmatmul.msk.f32.vlgmr.msra.gmra.mxu2 %vm165_vm0, %v3619_v9 }
 0x14a   :  { %3186 = vmatmul.msk.f32.vlgmr.msrb.gmra.mxu3 %vm165_vm0, %v3619_v9  ;;  %3190 = vmatmul.msk.f32.vlgmr.msrb.gmra.mxu0 %vm165_vm0, %v3619_v9  ;;  %v783_v9 = vld [vmem:[#allocation15 + $0x1b8] sm:$0xff] }
 0x14b   :  { %920 = vmatpush.msra.mxu1 %v780_v6  ;;  %949 = vmatpush.msra.mxu2 %v781_v7  ;;  %v758_v7 = vld [vmem:[#allocation15 + $0xf0] sm:$0xff] }
 0x14c   :  { %978 = vmatpush.msrb.mxu3 %v782_v8  ;;  %1007 = vmatpush.msrb.mxu0 %v783_v9  ;;  %v759_v8 = vld [vmem:[#allocation15 + $0xf8] sm:$0xff] }
 0x14d   :  { %921 = vmatpush.msra.mxu1 %v764_v10  ;;  %950 = vmatpush.msra.mxu2 %v765_v11  ;;  %v1455_v10 = vld [vmem:[#allocation16 + $0x78] sm:$0xff] }
 0x14e   :  { %979 = vmatpush.msrb.mxu3 %v766_v12  ;;  %v1471_v11 = vld [vmem:[#allocation16 + $0xf8] sm:$0xff]  ;;  %v742_v12 = vld [vmem:[#allocation15 + $0x70] sm:$0xff] }
 0x14f   :  { %922 = vmatpush.msra.mxu1 %v748_v14  ;;  %951 = vmatpush.msra.mxu2 %v749_v15  ;;  %v1454_v14 = vld [vmem:[#allocation16 + $0x70] sm:$0xff] }
 0x150   :  { %980 = vmatpush.msrb.mxu3 %v750_v16  ;;  %v1470_v15 = vld [vmem:[#allocation16 + $0xf0] sm:$0xff]  ;;  %v1487_v16 = vld [vmem:[#allocation16 + $0x178] sm:$0xff] }
 0x151   :  { %3179 = vmatmul.msk.f32.gmra.mxu1 %vm165_vm0, %v3625_v13  ;;  %3183 = vmatmul.msk.f32.gmra.mxu2 %vm165_vm0, %v3625_v13 }
 0x152   :  { %3187 = vmatmul.msk.f32.gmra.mxu3 %vm165_vm0, %v3625_v13  ;;  %3191 = vmatmul.msk.f32.gmra.mxu0 %vm165_vm0, %v3625_v13  ;;  %v767_v13 = vld [vmem:[#allocation15 + $0x138] sm:$0xff] }
 0x153   :  { %1008 = vmatpush.msrb.mxu0 %v767_v13  ;;  %923 = vmatpush.msra.mxu1 %v732_v18  ;;  %v743_v13 = vld [vmem:[#allocation15 + $0x78] sm:$0xff] }
 0x154   :  { %981 = vmatpush.msrb.mxu3 %v734_v20  ;;  %v1469_v20 = vld [vmem:[#allocation16 + $0xe8] sm:$0xff] }
 0x159   :  { %3180 = vmatmul.msk.f32.gmra.mxu1 %vm165_vm0, %v3638_v17  ;;  %3184 = vmatmul.msk.f32.gmra.mxu2 %vm165_vm0, %v3638_v17 }
 0x15a   :  { %3188 = vmatmul.msk.f32.gmra.mxu3 %vm165_vm0, %v3638_v17  ;;  %3192 = vmatmul.msk.f32.gmra.mxu0 %vm165_vm0, %v3638_v17  ;;  %v751_v17 = vld [vmem:[#allocation15 + $0xb8] sm:$0xff] }
 0x15b   :  { %1009 = vmatpush.msrb.mxu0 %v751_v17  ;;  %v1503_v17 = vld [vmem:[#allocation16 + $0x1f8] sm:$0xff] }
 0x15d   :  { %1010 = vmatpush.msrb.mxu0 %v735_v21 }
 0x161   :  { %3181 = vmatmul.msk.f32.gmra.mxu1 %vm165_vm0, %v3651_v19  ;;  %3185 = vmatmul.msk.f32.gmra.mxu2 %vm165_vm0, %v3651_v19 }
 0x162   :  { %3189 = vmatmul.msk.f32.gmra.mxu3 %vm165_vm0, %v3651_v19  ;;  %3193 = vmatmul.msk.f32.gmra.mxu0 %vm165_vm0, %v3651_v19  ;;  %v733_v19 = vld [vmem:[#allocation15 + $0x28] sm:$0xff] }
 0x163   :  { %952 = vmatpush.msra.mxu2 %v733_v19  ;;  %v1453_v19 = vld [vmem:[#allocation16 + $0x68] sm:$0xff] }
 0x169   :  { %3194 = vmatmul.msk.f32.vlgmr.msrb.gmra.mxu1 %vm411_vm1, %v3673_v47  ;;  %3198 = vmatmul.msk.f32.vlgmr.msrb.gmra.mxu2 %vm411_vm1, %v3673_v47 }
 0x16a   :  { %3202 = vmatmul.msk.f32.vlgmr.msra.gmra.mxu3 %vm411_vm1, %v3673_v47  ;;  %3206 = vmatmul.msk.f32.vlgmr.msra.gmra.mxu0 %vm411_vm1, %v3673_v47 }
 0x16b   :  { %1036 = vmatpush.msrb.mxu1 %v784_v24  ;;  %1065 = vmatpush.msrb.mxu2 %v785_v25  ;;  %v1486_v24 = vld [vmem:[#allocation16 + $0x170] sm:$0xff] }
 0x16c   :  { %1094 = vmatpush.msra.mxu3 %v786_v26  ;;  %1123 = vmatpush.msra.mxu0 %v787_v28  ;;  %v1502_v25 = vld [vmem:[#allocation16 + $0x1f0] sm:$0xff] }
 0x16d   :  { %1037 = vmatpush.msrb.mxu1 %v768_v29  ;;  %1066 = vmatpush.msrb.mxu2 %v769_v30  ;;  %v1452_v29 = vld [vmem:[#allocation16 + $0x60] sm:$0xff] }
 0x16e   :  { %1095 = vmatpush.msra.mxu3 %v770_v31  ;;  %1124 = vmatpush.msra.mxu0 %v771_v32  ;;  %v1468_v30 = vld [vmem:[#allocation16 + $0xe0] sm:$0xff]  ;;  %v1485_v31 = vld [vmem:[#allocation16 + $0x168] sm:$0xff] }
 0x16f   :  { %1038 = vmatpush.msrb.mxu1 %v752_v33  ;;  %1067 = vmatpush.msrb.mxu2 %v753_v34  ;;  %v1501_v32 = vld [vmem:[#allocation16 + $0x1e8] sm:$0xff]  ;;  %v1451_v33 = vld [vmem:[#allocation16 + $0x58] sm:$0xff] }
 0x170   :  { %1096 = vmatpush.msra.mxu3 %v754_v35  ;;  %1125 = vmatpush.msra.mxu0 %v755_v36  ;;  %v1467_v34 = vld [vmem:[#allocation16 + $0xd8] sm:$0xff]  ;;  %v1484_v35 = vld [vmem:[#allocation16 + $0x160] sm:$0xff] }
 0x171   :  { %3195 = vmatmul.msk.f32.gmra.mxu1 %vm411_vm1, %v3685_v49  ;;  %3199 = vmatmul.msk.f32.gmra.mxu2 %vm411_vm1, %v3685_v49  ;;  %v1500_v36 = vld [vmem:[#allocation16 + $0x1e0] sm:$0xff] }
 0x172   :  { %3203 = vmatmul.msk.f32.gmra.mxu3 %vm411_vm1, %v3685_v49  ;;  %3207 = vmatmul.msk.f32.gmra.mxu0 %vm411_vm1, %v3685_v49 }
 0x173   :  { %1039 = vmatpush.msrb.mxu1 %v736_v37  ;;  %1068 = vmatpush.msrb.mxu2 %v737_v38  ;;  %v1450_v38 = vld [vmem:[#allocation16 + $0x50] sm:$0xff] }
 0x174   :  { %1097 = vmatpush.msra.mxu3 %v738_v40  ;;  %1126 = vmatpush.msra.mxu0 %v739_v41  ;;  %v1466_v40 = vld [vmem:[#allocation16 + $0xd0] sm:$0xff] }
 0x179   :  { %3196 = vmatmul.msk.f32.gmra.mxu1 %vm411_vm1, %v3697_v51  ;;  %3200 = vmatmul.msk.f32.gmra.mxu2 %vm411_vm1, %v3697_v51 }
 0x17a   :  { %3204 = vmatmul.msk.f32.gmra.mxu3 %vm411_vm1, %v3697_v51  ;;  %3208 = vmatmul.msk.f32.gmra.mxu0 %vm411_vm1, %v3697_v51 }
 0x181   :  { %3197 = vmatmul.msk.f32.gmra.mxu1 %vm411_vm1, %v3709_v53  ;;  %3201 = vmatmul.msk.f32.gmra.mxu2 %vm411_vm1, %v3709_v53 }
 0x182   :  { %3205 = vmatmul.msk.f32.gmra.mxu3 %vm411_vm1, %v3709_v53  ;;  %3209 = vmatmul.msk.f32.gmra.mxu0 %vm411_vm1, %v3709_v53 }
 0x189   :  { %3210 = vmatmul.msk.f32.vlgmr.msra.gmra.mxu1 %vm411_vm1, %v3673_v47  ;;  %3214 = vmatmul.msk.f32.vlgmr.msra.gmra.mxu2 %vm411_vm1, %v3673_v47 }
 0x18a   :  { %3218 = vmatmul.msk.f32.vlgmr.msrb.gmra.mxu3 %vm411_vm1, %v3673_v47  ;;  %3222 = vmatmul.msk.f32.vlgmr.msrb.gmra.mxu0 %vm411_vm1, %v3673_v47 }
 0x18b   :  { %1152 = vmatpush.msra.mxu1 %v788_v46  ;;  %1181 = vmatpush.msra.mxu2 %v789_v48  ;;  %v1483_v46 = vld [vmem:[#allocation16 + $0x158] sm:$0xff] }
 0x18c   :  { %1210 = vmatpush.msrb.mxu3 %v790_v0  ;;  %1239 = vmatpush.msrb.mxu0 %v791_v1  ;;  %v1499_v48 = vld [vmem:[#allocation16 + $0x1d8] sm:$0xff]  ;;  %v1448_v0 = vld [vmem:[#allocation16 + $0x40] sm:$0xff] }
 0x18d   :  { %1153 = vmatpush.msra.mxu1 %v772_v52  ;;  %1182 = vmatpush.msra.mxu2 %v773_v54  ;;  %v1464_v1 = vld [vmem:[#allocation16 + $0xc0] sm:$0xff] }
 0x18e   :  { %1211 = vmatpush.msrb.mxu3 %v774_v3  ;;  %1240 = vmatpush.msrb.mxu0 %v775_v4  ;;  %v1481_v3 = vld [vmem:[#allocation16 + $0x148] sm:$0xff] }
 0x18f   :  { %1154 = vmatpush.msra.mxu1 %v756_v56  ;;  %1183 = vmatpush.msra.mxu2 %v757_v57  ;;  %v1449_v56 = vld [vmem:[#allocation16 + $0x48] sm:$0xff] }
 0x190   :  { %1212 = vmatpush.msrb.mxu3 %v758_v7  ;;  %1241 = vmatpush.msrb.mxu0 %v759_v8  ;;  %v1465_v57 = vld [vmem:[#allocation16 + $0xc8] sm:$0xff]  ;;  %v1447_v8 = vld [vmem:[#allocation16 + $0x38] sm:$0xff] }
 0x191   :  { %3211 = vmatmul.msk.f32.gmra.mxu1 %vm411_vm1, %v3685_v49  ;;  %3215 = vmatmul.msk.f32.gmra.mxu2 %vm411_vm1, %v3685_v49  ;;  %v1497_v4 = vld [vmem:[#allocation16 + $0x1c8] sm:$0xff] }
 0x192   :  { %3219 = vmatmul.msk.f32.gmra.mxu3 %vm411_vm1, %v3685_v49  ;;  %3223 = vmatmul.msk.f32.gmra.mxu0 %vm411_vm1, %v3685_v49 }
 0x193   :  { %1155 = vmatpush.msra.mxu1 %v740_v58  ;;  %1184 = vmatpush.msra.mxu2 %v741_v59  ;;  %v1482_v58 = vld [vmem:[#allocation16 + $0x150] sm:$0xff] }
 0x194   :  { %1213 = vmatpush.msrb.mxu3 %v742_v12  ;;  %1242 = vmatpush.msrb.mxu0 %v743_v13  ;;  %v1498_v59 = vld [vmem:[#allocation16 + $0x1d0] sm:$0xff]  ;;  %v1480_v12 = vld [vmem:[#allocation16 + $0x140] sm:$0xff] }
 0x195   :  { %v1496_v13 = vld [vmem:[#allocation16 + $0x1c0] sm:$0xff] }
 0x199   :  { %3212 = vmatmul.msk.f32.gmra.mxu1 %vm411_vm1, %v3697_v51  ;;  %3216 = vmatmul.msk.f32.gmra.mxu2 %vm411_vm1, %v3697_v51 }
 0x19a   :  { %3220 = vmatmul.msk.f32.gmra.mxu3 %vm411_vm1, %v3697_v51  ;;  %3224 = vmatmul.msk.f32.gmra.mxu0 %vm411_vm1, %v3697_v51 }
 0x1a1   :  { %3213 = vmatmul.msk.f32.gmra.mxu1 %vm411_vm1, %v3709_v53  ;;  %3217 = vmatmul.msk.f32.gmra.mxu2 %vm411_vm1, %v3709_v53 }
 0x1a2   :  { %3221 = vmatmul.msk.f32.gmra.mxu3 %vm411_vm1, %v3709_v53  ;;  %3225 = vmatmul.msk.f32.gmra.mxu0 %vm411_vm1, %v3709_v53 }
 0x1a6   :  { %v3847_v6 = vpop.f32.mrf.mxu1 }
 0x1a7   :  { %v3849_v9 = vpop.f32.mrf.mxu0 }
 0x1a8   :  { %4689 = vst [vmem:[#allocation29_spill] sm:$0xff] %v3849_v9 }
 0x1a9   :  { %3226 = vmatmul.msk.f32.vlgmr.msrb.gmra.mxu1 %vm411_vm1, %v3673_v47  ;;  %3230 = vmatmul.msk.f32.vlgmr.msrb.gmra.mxu2 %vm411_vm1, %v3673_v47 }
 0x1aa   :  { %3234 = vmatmul.msk.f32.vlgmr.msra.gmra.mxu3 %vm411_vm1, %v3673_v47  ;;  %3238 = vmatmul.msk.f32.vlgmr.msra.gmra.mxu0 %vm411_vm1, %v3673_v47 }
 0x1ab   :  { %1664 = vmatpush.msrb.mxu1 %v1455_v10  ;;  %1687 = vmatpush.msrb.mxu2 %v1471_v11  ;;  %v1463_v10 = vld [vmem:[#allocation16 + $0xb8] sm:$0xff] }
 0x1ac   :  { %v3859_v18 = vpop.f32.mrf.mxu2  ;;  %1710 = vmatpush.msra.mxu3 %v1487_v16  ;;  %1733 = vmatpush.msra.mxu0 %v1503_v17  ;;  %v1446_v16 = vld [vmem:[#allocation16 + $0x30] sm:$0xff] }
 0x1ad   :  { %v3861_v21 = vpop.f32.mrf.mxu3  ;;  %1665 = vmatpush.msrb.mxu1 %v1454_v14  ;;  %1688 = vmatpush.msrb.mxu2 %v1470_v15  ;;  %v1462_v17 = vld [vmem:[#allocation16 + $0xb0] sm:$0xff] }
 0x1ae   :  { %4690 = vst [vmem:[#allocation30_spill] sm:$0xff] %v3861_v21  ;;  %v3863_v26 = vpop.f32.mrf.mxu1  ;;  %1711 = vmatpush.msra.mxu3 %v1486_v24  ;;  %1734 = vmatpush.msra.mxu0 %v1502_v25  ;;  %v1445_v24 = vld [vmem:[#allocation16 + $0x28] sm:$0xff] }
 0x1af   :  { %v3865_v28 = vpop.f32.mrf.mxu0  ;;  %1666 = vmatpush.msrb.mxu1 %v1453_v19  ;;  %1689 = vmatpush.msrb.mxu2 %v1469_v20  ;;  %v1479_v19 = vld [vmem:[#allocation16 + $0x138] sm:$0xff]  ;;  %v1461_v25 = vld [vmem:[#allocation16 + $0xa8] sm:$0xff] }
 0x1b0   :  { %4691 = vst [vmem:[#allocation31_spill] sm:$0xff] %v3865_v28  ;;  %1712 = vmatpush.msra.mxu3 %v1485_v31  ;;  %1735 = vmatpush.msra.mxu0 %v1501_v32  ;;  %v1495_v20 = vld [vmem:[#allocation16 + $0x1b8] sm:$0xff]  ;;  %v1444_v32 = vld [vmem:[#allocation16 + $0x20] sm:$0xff] }
 0x1b1   :  { %3227 = vmatmul.msk.f32.gmra.mxu1 %vm411_vm1, %v3685_v49  ;;  %3231 = vmatmul.msk.f32.gmra.mxu2 %vm411_vm1, %v3685_v49 }
 0x1b2   :  { %3235 = vmatmul.msk.f32.gmra.mxu3 %vm411_vm1, %v3685_v49  ;;  %3239 = vmatmul.msk.f32.gmra.mxu0 %vm411_vm1, %v3685_v49 }
 0x1b3   :  { %1667 = vmatpush.msrb.mxu1 %v1452_v29  ;;  %1690 = vmatpush.msrb.mxu2 %v1468_v30  ;;  %v1478_v29 = vld [vmem:[#allocation16 + $0x130] sm:$0xff] }
 0x1b4   :  { %v3875_v37 = vpop.f32.mrf.mxu2  ;;  %1713 = vmatpush.msra.mxu3 %v1484_v35  ;;  %1736 = vmatpush.msra.mxu0 %v1500_v36  ;;  %v1494_v30 = vld [vmem:[#allocation16 + $0x1b0] sm:$0xff]  ;;  %v1477_v35 = vld [vmem:[#allocation16 + $0x128] sm:$0xff] }
 0x1b5   :  { %v3877_v41 = vpop.f32.mrf.mxu3  ;;  %1668 = vmatpush.msrb.mxu1 %v1451_v33  ;;  %1691 = vmatpush.msrb.mxu2 %v1467_v34  ;;  %v1460_v33 = vld [vmem:[#allocation16 + $0xa0] sm:$0xff]  ;;  %v1493_v36 = vld [vmem:[#allocation16 + $0x1a8] sm:$0xff] }
 0x1b6   :  { %4692 = vst [vmem:[#allocation32_spill] sm:$0xff] %v3877_v41  ;;  %v3879_v52 = vpop.f32.mrf.mxu1  ;;  %1714 = vmatpush.msra.mxu3 %v1483_v46  ;;  %1737 = vmatpush.msra.mxu0 %v1499_v48  ;;  %v1443_v46 = vld [vmem:[#allocation16 + $0x18] sm:$0xff] }
 0x1b7   :  { %v3881_v54 = vpop.f32.mrf.mxu0  ;;  %1669 = vmatpush.msrb.mxu1 %v1450_v38  ;;  %1692 = vmatpush.msrb.mxu2 %v1466_v40  ;;  %v1459_v48 = vld [vmem:[#allocation16 + $0x98] sm:$0xff] }
 0x1b8   :  { %4693 = vst [vmem:[#allocation33_spill] sm:$0xff] %v3881_v54  ;;  %1715 = vmatpush.msra.mxu3 %v1482_v58  ;;  %1738 = vmatpush.msra.mxu0 %v1498_v59  ;;  %v1442_v58 = vld [vmem:[#allocation16 + $0x10] sm:$0xff] }
 0x1b9   :  { %3228 = vmatmul.msk.f32.gmra.mxu1 %vm411_vm1, %v3697_v51  ;;  %3232 = vmatmul.msk.f32.gmra.mxu2 %vm411_vm1, %v3697_v51  ;;  %v1458_v59 = vld [vmem:[#allocation16 + $0x90] sm:$0xff] }
 0x1ba   :  { %3236 = vmatmul.msk.f32.gmra.mxu3 %vm411_vm1, %v3697_v51  ;;  %3240 = vmatmul.msk.f32.gmra.mxu0 %vm411_vm1, %v3697_v51 }
 0x1bb   :  { %1670 = vmatpush.msrb.mxu1 %v1449_v56  ;;  %1693 = vmatpush.msrb.mxu2 %v1465_v57  ;;  %v1476_v56 = vld [vmem:[#allocation16 + $0x120] sm:$0xff] }
 0x1bc   :  { %v3891_v7 = vpop.f32.mrf.mxu2  ;;  %1716 = vmatpush.msra.mxu3 %v1481_v3  ;;  %1739 = vmatpush.msra.mxu0 %v1497_v4  ;;  %v1492_v57 = vld [vmem:[#allocation16 + $0x1a0] sm:$0xff]  ;;  %v1441_v4 = vld [vmem:[#allocation16 + $0x8] sm:$0xff] }
 0x1bd   :  { %v3893_v11 = vpop.f32.mrf.mxu3  ;;  %1671 = vmatpush.msrb.mxu1 %v1448_v0  ;;  %1694 = vmatpush.msrb.mxu2 %v1464_v1  ;;  %v1475_v0 = vld [vmem:[#allocation16 + $0x118] sm:$0xff] }
 0x1be   :  { %4694 = vst [vmem:[#allocation34_spill] sm:$0xff] %v3893_v11  ;;  %v3895_v14 = vpop.f32.mrf.mxu1  ;;  %1717 = vmatpush.msra.mxu3 %v1480_v12  ;;  %1740 = vmatpush.msra.mxu0 %v1496_v13  ;;  %v1491_v1 = vld [vmem:[#allocation16 + $0x198] sm:$0xff]  ;;  %v1474_v12 = vld [vmem:[#allocation16 + $0x110] sm:$0xff] }
 0x1bf   :  { %v3897_v15 = vpop.f32.mrf.mxu0  ;;  %1672 = vmatpush.msrb.mxu1 %v1447_v8  ;;  %1695 = vmatpush.msrb.mxu2 %v1463_v10  ;;  %v1457_v8 = vld [vmem:[#allocation16 + $0x88] sm:$0xff]  ;;  %v1490_v13 = vld [vmem:[#allocation16 + $0x190] sm:$0xff] }
 0x1c0   :  { %4695 = vst [vmem:[#allocation35_spill] sm:$0xff] %v3897_v15  ;;  %1718 = vmatpush.msra.mxu3 %v1479_v19  ;;  %1741 = vmatpush.msra.mxu0 %v1495_v20  ;;  %v1456_v19 = vld [vmem:[#allocation16 + $0x80] sm:$0xff]  ;;  %v1519_v20 = vld [vmem:[#allocation16 + $0x278] sm:$0xff] }
 0x1c1   :  { %3229 = vmatmul.msk.f32.gmra.mxu1 %vm411_vm1, %v3709_v53  ;;  %3233 = vmatmul.msk.f32.gmra.mxu2 %vm411_vm1, %v3709_v53 }
 0x1c2   :  { %3237 = vmatmul.msk.f32.gmra.mxu3 %vm411_vm1, %v3709_v53  ;;  %3241 = vmatmul.msk.f32.gmra.mxu0 %vm411_vm1, %v3709_v53 }
 0x1c3   :  { %1673 = vmatpush.msrb.mxu1 %v1446_v16  ;;  %1696 = vmatpush.msrb.mxu2 %v1462_v17  ;;  %v1440_v17 = vld [vmem:[#allocation16] sm:$0xff] }
 0x1c4   :  { %v3907_v31 = vpop.f32.mrf.mxu2  ;;  %1719 = vmatpush.msra.mxu3 %v1478_v29  ;;  %1742 = vmatpush.msra.mxu0 %v1494_v30  ;;  %v1489_v29 = vld [vmem:[#allocation16 + $0x188] sm:$0xff]  ;;  %v1518_v30 = vld [vmem:[#allocation16 + $0x270] sm:$0xff] }
 0x1c5   :  { %v3909_v34 = vpop.f32.mrf.mxu3  ;;  %1674 = vmatpush.msrb.mxu1 %v1445_v24  ;;  %1697 = vmatpush.msrb.mxu2 %v1461_v25  ;;  %v1535_v24 = vld [vmem:[#allocation16 + $0x2f8] sm:$0xff]  ;;  %v1473_v25 = vld [vmem:[#allocation16 + $0x108] sm:$0xff] }
 0x1c6   :  { %4696 = vst [vmem:[#allocation36_spill] sm:$0xff] %v3909_v34  ;;  %v3911_v38 = vpop.f32.mrf.mxu1  ;;  %1720 = vmatpush.msra.mxu3 %v1477_v35  ;;  %1743 = vmatpush.msra.mxu0 %v1493_v36  ;;  %v1472_v35 = vld [vmem:[#allocation16 + $0x100] sm:$0xff] }
 0x1c7   :  { %v3913_v40 = vpop.f32.mrf.mxu0  ;;  %1675 = vmatpush.msrb.mxu1 %v1444_v32  ;;  %1698 = vmatpush.msrb.mxu2 %v1460_v33  ;;  %v1534_v32 = vld [vmem:[#allocation16 + $0x2f0] sm:$0xff]  ;;  %v1488_v36 = vld [vmem:[#allocation16 + $0x180] sm:$0xff] }
 0x1c8   :  { %4697 = vst [vmem:[#allocation37_spill] sm:$0xff] %v3913_v40  ;;  %1721 = vmatpush.msra.mxu3 %v1476_v56  ;;  %1744 = vmatpush.msra.mxu0 %v1492_v57  ;;  %v1533_v56 = vld [vmem:[#allocation16 + $0x2e8] sm:$0xff] }
 0x1c9   :  { %3242 = vmatmul.msk.f32.vlgmr.msra.gmra.mxu1 %vm411_vm1, %v3673_v47  ;;  %3246 = vmatmul.msk.f32.vlgmr.msra.gmra.mxu2 %vm411_vm1, %v3673_v47 }
 0x1ca   :  { %3250 = vmatmul.msk.f32.vlgmr.msrb.gmra.mxu3 %vm411_vm1, %v3673_v47  ;;  %3254 = vmatmul.msk.f32.vlgmr.msrb.gmra.mxu0 %vm411_vm1, %v3673_v47 }
 0x1cb   :  { %1676 = vmatpush.msrb.mxu1 %v1443_v46  ;;  %1699 = vmatpush.msrb.mxu2 %v1459_v48  ;;  %v1517_v48 = vld [vmem:[#allocation16 + $0x268] sm:$0xff] }
 0x1cc   :  { %v3923_v3 = vpop.f32.mrf.mxu2  ;;  %1722 = vmatpush.msra.mxu3 %v1475_v0  ;;  %1745 = vmatpush.msra.mxu0 %v1491_v1  ;;  %v1516_v0 = vld [vmem:[#allocation16 + $0x260] sm:$0xff] }
 0x1cd   :  { %v3925_v10 = vpop.f32.mrf.mxu3  ;;  %1677 = vmatpush.msrb.mxu1 %v1442_v58  ;;  %1700 = vmatpush.msrb.mxu2 %v1458_v59  ;;  %v1532_v1 = vld [vmem:[#allocation16 + $0x2e0] sm:$0xff] }
 0x1ce   :  { %4698 = vst [vmem:[#allocation38_spill] sm:$0xff] %v3925_v10  ;;  %v3927_v16 = vpop.f32.mrf.mxu1  ;;  %1723 = vmatpush.msra.mxu3 %v1474_v12  ;;  %1746 = vmatpush.msra.mxu0 %v1490_v13  ;;  %v1531_v12 = vld [vmem:[#allocation16 + $0x2d8] sm:$0xff] }
 0x1cf   :  { %v3929_v47 = vpop.f32.mrf.mxu0  ;;  %1678 = vmatpush.msrb.mxu1 %v1441_v4  ;;  %1701 = vmatpush.msrb.mxu2 %v1457_v8  ;;  %v1515_v8 = vld [vmem:[#allocation16 + $0x258] sm:$0xff] }
 0x1d0   :  { %4699 = vst [vmem:[#allocation39_spill] sm:$0xff] %v3929_v47  ;;  %1724 = vmatpush.msra.mxu3 %v1473_v25  ;;  %1747 = vmatpush.msra.mxu0 %v1489_v29  ;;  %v1530_v25 = vld [vmem:[#allocation16 + $0x2d0] sm:$0xff] }
 0x1d1   :  { %3243 = vmatmul.msk.f32.gmra.mxu1 %vm411_vm1, %v3685_v49  ;;  %3247 = vmatmul.msk.f32.gmra.mxu2 %vm411_vm1, %v3685_v49 }
 0x1d2   :  { %3251 = vmatmul.msk.f32.gmra.mxu3 %vm411_vm1, %v3685_v49  ;;  %3255 = vmatmul.msk.f32.gmra.mxu0 %vm411_vm1, %v3685_v49  ;;  %v704_v49 = vmul.f32 %v3911_v38, %v3879_v52 }
 0x1d3   :  { %1679 = vmatpush.msrb.mxu1 %v1440_v17  ;;  %1702 = vmatpush.msrb.mxu2 %v1456_v19  ;;  %v1514_v17 = vld [vmem:[#allocation16 + $0x250] sm:$0xff]  ;;  %v705_v19 = vmul.f32 %v3923_v3, %v3891_v7 }
 0x1d4   :  { %v3939_v33 = vpop.f32.mrf.mxu2  ;;  %1725 = vmatpush.msra.mxu3 %v1472_v35  ;;  %1748 = vmatpush.msra.mxu0 %v1488_v36  ;;  %v1513_v36 = vld [vmem:[#allocation16 + $0x248] sm:$0xff] }
 0x1d5   :  { %1756 = vmatpush.msra.mxu1 %v1519_v20  ;;  %1779 = vmatpush.msra.mxu2 %v1535_v24  ;;  %v3941_v46 = vpop.f32.mrf.mxu3 }
 0x1d6   :  { %4700 = vst [vmem:[#allocation40_spill] sm:$0xff] %v3941_v46  ;;  %v571_v57 = vpop.f32.mrf.mxu1 }
 0x1d7   :  { %1757 = vmatpush.msra.mxu1 %v1518_v30  ;;  %1780 = vmatpush.msra.mxu2 %v1534_v32  ;;  %v696_v58 = vmul.f32 %v571_v57, %v3847_v6  ;;  %v3946_v59 = vpop.f32.mrf.mxu0 }
 0x1d8   :  { %4701 = vst [vmem:[#allocation41_spill] sm:$0xff] %v3946_v59 }
 0x1d9   :  { %1758 = vmatpush.msra.mxu1 %v1517_v48  ;;  %1781 = vmatpush.msra.mxu2 %v1533_v56  ;;  %v3948_v4 = vadd.f32 %v704_v49, %v696_v58  ;;  %v1529_v48 = vld [vmem:[#allocation16 + $0x2c8] sm:$0xff]  ;;  %v1551_v56 = vld [vmem:[#allocation16 + $0x378] sm:$0xff]  ;;  %v363_v58 = vmul.f32 %v3789_v39, %v3759_v22 }
 0x1da   :  { %3244 = vmatmul.msk.f32.gmra.mxu1 %vm411_vm1, %v3697_v51  ;;  %3248 = vmatmul.msk.f32.gmra.mxu2 %vm411_vm1, %v3697_v51 }
 0x1db   :  { %4702 = vst [vmem:[#allocation42_spill] sm:$0xff] %v3948_v4  ;;  %3252 = vmatmul.msk.f32.gmra.mxu3 %vm411_vm1, %v3697_v51  ;;  %3256 = vmatmul.msk.f32.gmra.mxu0 %vm411_vm1, %v3697_v51  ;;  %v708_v51 = vmul.f32 %v3927_v16, %v3895_v14  ;;  %v709_v4 = vmul.f32 %v3939_v33, %v3907_v31 }
 0x1dc   :  { %1759 = vmatpush.msra.mxu1 %v1516_v0  ;;  %1782 = vmatpush.msra.mxu2 %v1532_v1  ;;  %v600_v13 = vpop.f32.mrf.mxu2  ;;  %v1512_v0 = vld [vmem:[#allocation16 + $0x240] sm:$0xff] }
 0x1dd   :  { %v697_v20 = vmul.f32 %v600_v13, %v3859_v18  ;;  %v3961_v24 = vpop.f32.mrf.mxu3  ;;  %v1528_v1 = vld [vmem:[#allocation16 + $0x2c0] sm:$0xff]  ;;  %1802 = vmatpush.msrb.mxu3 %v1551_v56 }
 0x1de   :  { %4703 = vst [vmem:[#allocation43_spill] sm:$0xff] %v3961_v24  ;;  %1760 = vmatpush.msra.mxu1 %v1515_v8  ;;  %1783 = vmatpush.msra.mxu2 %v1531_v12  ;;  %v3963_v29 = vpop.f32.mrf.mxu1  ;;  %v364_v8 = vmul.f32 %v3787_v27, %v3769_v23  ;;  %v367_v12 = vmul.f32 %v3829_v61, %v3815_v50 }
 0x1df   :  { %v3967_v30 = vadd.f32 %v705_v19, %v697_v20  ;;  %v700_v32 = vmul.f32 %v3963_v29, %v3863_v26  ;;  %v3971_v35 = vpop.f32.mrf.mxu0  ;;  %v1550_v19 = vld [vmem:[#allocation16 + $0x370] sm:$0xff]  ;;  %v672_v20 = vmul.f32 %v571_v57, %v3879_v52  ;;  %v664_v52 = vmul.f32 %v3911_v38, %v3847_v6 }
 0x1e0   :  { %4705 = vst [vmem:[#allocation45_spill] sm:$0xff] %v3971_v35  ;;  %1761 = vmatpush.msra.mxu1 %v1514_v17  ;;  %1784 = vmatpush.msra.mxu2 %v1530_v25  ;;  %v368_v17 = vmul.f32 %v3817_v55, %v3827_v60  ;;  %v673_v25 = vmul.f32 %v600_v13, %v3891_v7  ;;  %v1566_v13 = vld [vmem:[#allocation16 + $0x3f0] sm:$0xff] }
 0x1e1   :  { %4704 = vst [vmem:[#allocation44_spill] sm:$0xff] %v3967_v30  ;;  %v3977_v49 = vadd.f32 %v708_v51, %v700_v32  ;;  %v1527_v32 = vld [vmem:[#allocation16 + $0x2b8] sm:$0xff]  ;;  %v665_v7 = vmul.f32 %v3923_v3, %v3859_v18  ;;  %1803 = vmatpush.msrb.mxu3 %v1550_v19  ;;  %v1510_v18 = vld [vmem:[#allocation16 + $0x230] sm:$0xff]  ;;  %v1548_v3 = vld [vmem:[#allocation16 + $0x360] sm:$0xff] }
 0x1e2   :  { %3245 = vmatmul.msk.f32.gmra.mxu1 %vm411_vm1, %v3709_v53  ;;  %3249 = vmatmul.msk.f32.gmra.mxu2 %vm411_vm1, %v3709_v53  ;;  %v4006_v56 = vsub.f32 %v364_v8, %v368_v17  ;;  %v1526_v38 = vld [vmem:[#allocation16 + $0x2b0] sm:$0xff]  ;;  %v366_v8 = vmul.f32 %v3801_v43, %v3807_v44  ;;  %v370_v17 = vmul.f32 %v3833_v63, %v3843_v2  ;;  %v1547_v19 = vld [vmem:[#allocation16 + $0x358] sm:$0xff] }
 0x1e3   :  { %4706 = vst [vmem:[#allocation46_spill] sm:$0xff] %v3977_v49  ;;  %3253 = vmatmul.msk.f32.gmra.mxu3 %vm411_vm1, %v3709_v53  ;;  %3257 = vmatmul.msk.f32.gmra.mxu0 %vm411_vm1, %v3709_v53  ;;  %v1511_v53 = vld [vmem:[#allocation16 + $0x238] sm:$0xff]  ;;  %v4014_v6 = vsub.f32 %v665_v7, %v673_v25  ;;  %v676_v25 = vmul.f32 %v3963_v29, %v3895_v14 }
 0x1e4   :  { %1762 = vmatpush.msra.mxu1 %v1513_v36  ;;  %1785 = vmatpush.msra.mxu2 %v1529_v48  ;;  %v603_v51 = vpop.f32.mrf.mxu2  ;;  %v1567_v49 = vld [vmem:[#allocation16 + $0x3f8] sm:$0xff]  ;;  %v1549_v36 = vld [vmem:[#allocation16 + $0x368] sm:$0xff]  ;;  %v4004_v48 = vsub.f32 %v363_v58, %v367_v12  ;;  %4709 = vst [vmem:[#allocation49_spill] sm:$0xff] %v4006_v56  ;;  %v365_v58 = vmul.f32 %v3813_v45, %v3799_v42 }
 0x1e5   :  { %v701_v30 = vmul.f32 %v603_v51, %v3875_v37  ;;  %v3996_v23 = vpop.f32.mrf.mxu3  ;;  %1825 = vmatpush.msrb.mxu0 %v1567_v49  ;;  %4713 = vst [vmem:[#allocation53_spill] sm:$0xff] %v4014_v6  ;;  %1804 = vmatpush.msrb.mxu3 %v1549_v36  ;;  %v1565_v49 = vld [vmem:[#allocation16 + $0x3e8] sm:$0xff]  ;;  %v369_v12 = vmul.f32 %v3845_v5, %v3831_v62  ;;  %v1508_v36 = vld [vmem:[#allocation16 + $0x220] sm:$0xff]  ;;  %v2050_v44 = vld [vmem:[#allocation16 + $0x8f8] sm:$0xff] }
 0x1e6   :  { %4707 = vst [vmem:[#allocation47_spill] sm:$0xff] %v3996_v23  ;;  %1763 = vmatpush.msra.mxu1 %v1512_v0  ;;  %1786 = vmatpush.msra.mxu2 %v1528_v1  ;;  %v4002_v57 = vpop.f32.mrf.mxu1  ;;  %v4012_v1 = vsub.f32 %v664_v52, %v672_v20  ;;  %v1564_v20 = vld [vmem:[#allocation16 + $0x3e0] sm:$0xff]  ;;  %v669_v14 = vmul.f32 %v3939_v33, %v3875_v37  ;;  %v1545_v37 = vld [vmem:[#allocation16 + $0x348] sm:$0xff]  ;;  %v1562_v33 = vld [vmem:[#allocation16 + $0x3d0] sm:$0xff] }
 0x1e7   :  { %4708 = vst [vmem:[#allocation48_spill] sm:$0xff] %v4004_v48  ;;  %v4008_v55 = vpop.f32.mrf.mxu0  ;;  %v4010_v0 = vadd.f32 %v709_v4, %v701_v30  ;;  %1826 = vmatpush.msrb.mxu0 %v1566_v13  ;;  %v1509_v4 = vld [vmem:[#allocation16 + $0x228] sm:$0xff]  ;;  %v1524_v52 = vld [vmem:[#allocation16 + $0x2a0] sm:$0xff]  ;;  %1805 = vmatpush.msrb.mxu3 %v1548_v3  ;;  %v1546_v13 = vld [vmem:[#allocation16 + $0x350] sm:$0xff]  ;;  %v4045_v3 = vsub.f32 %v366_v8, %v370_v17 }
 0x1e8   :  { %4710 = vst [vmem:[#allocation50_spill] sm:$0xff] %v4008_v55  ;;  %1764 = vmatpush.msra.mxu1 %v1511_v53  ;;  %1787 = vmatpush.msra.mxu2 %v1527_v32  ;;  %v1525_v30 = vld [vmem:[#allocation16 + $0x2a8] sm:$0xff]  ;;  %v677_v53 = vmul.f32 %v603_v51, %v3907_v31  ;;  %v4043_v51 = vsub.f32 %v365_v58, %v369_v12  ;;  %v1506_v58 = vld [vmem:[#allocation16 + $0x210] sm:$0xff]  ;;  %v1544_v8 = vld [vmem:[#allocation16 + $0x340] sm:$0xff] }
 0x1e9   :  { %4711 = vst [vmem:[#allocation51_spill] sm:$0xff] %v4010_v0  ;;  %1827 = vmatpush.msrb.mxu0 %v1565_v49  ;;  %1806 = vmatpush.msrb.mxu3 %v1547_v19  ;;  %v1561_v12 = vld [vmem:[#allocation16 + $0x3c8] sm:$0xff]  ;;  %v675_v17 = vmul.f32 %v3946_v59, %v3881_v54  ;;  %v674_v19 = vmul.f32 %v3961_v24, %v3893_v11  ;;  %v1644_v54 = vld [vmem:[#allocation16 + $0x660] sm:$0xff]  ;;  %v1643_v59 = vld [vmem:[#allocation16 + $0x658] sm:$0xff] }
 0x1ea   :  { %4712 = vst [vmem:[#allocation52_spill] sm:$0xff] %v4012_v1  ;;  %1680 = vmatmul.f32.vlgmr.msrb.gmra.mxu1 %v4004_v48  ;;  %1703 = vmatmul.f32.vlgmr.msrb.gmra.mxu2 %v4006_v56  ;;  %v1556_v48 = vld [vmem:[#allocation16 + $0x3a0] sm:$0xff]  ;;  %v1590_v56 = vld [vmem:[#allocation16 + $0x4b0] sm:$0xff] }
 0x1eb   :  { %1726 = vmatmul.f32.vlgmr.msra.gmra.mxu3 %v4012_v1  ;;  %1749 = vmatmul.f32.vlgmr.msra.gmra.mxu0 %v4014_v6  ;;  %4716 = vst [vmem:[#allocation56_spill] sm:$0xff] %v4043_v51  ;;  %v1559_v6 = vld [vmem:[#allocation16 + $0x3b8] sm:$0xff]  ;;  %v1580_v1 = vld [vmem:[#allocation16 + $0x460] sm:$0xff]  ;;  %v1638_v0 = vld [vmem:[#allocation16 + $0x630] sm:$0xff] }
 0x1ec   :  { %1765 = vmatpush.msra.mxu1 %v1510_v18  ;;  %1788 = vmatpush.msra.mxu2 %v1526_v38  ;;  %v4031_v32 = vpop.f32.mrf.mxu2  ;;  %v1563_v18 = vld [vmem:[#allocation16 + $0x3d8] sm:$0xff]  ;;  %v668_v38 = vmul.f32 %v3927_v16, %v3863_v26  ;;  %4717 = vst [vmem:[#allocation57_spill] sm:$0xff] %v4045_v3  ;;  %v1640_v24 = vld [vmem:[#allocation16 + $0x640] sm:$0xff] }
 0x1ed   :  { %v4033_v7 = vpop.f32.mrf.mxu3  ;;  %1828 = vmatpush.msrb.mxu0 %v1564_v20  ;;  %v1507_v26 = vld [vmem:[#allocation16 + $0x218] sm:$0xff]  ;;  %1807 = vmatpush.msrb.mxu3 %v1546_v13  ;;  %v1560_v13 = vld [vmem:[#allocation16 + $0x3c0] sm:$0xff] }
 0x1ee   :  { %4714 = vst [vmem:[#allocation54_spill] sm:$0xff] %v4033_v7  ;;  %1766 = vmatpush.msra.mxu1 %v1509_v4  ;;  %1789 = vmatpush.msra.mxu2 %v1525_v30  ;;  %v4039_v29 = vpop.f32.mrf.mxu1  ;;  %v4047_v49 = vsub.f32 %v668_v38, %v676_v25  ;;  %v4049_v4 = vsub.f32 %v669_v14, %v677_v53  ;;  %v1523_v16 = vld [vmem:[#allocation16 + $0x298] sm:$0xff]  ;;  %v1522_v30 = vld [vmem:[#allocation16 + $0x290] sm:$0xff]  ;;  %v1505_v25 = vld [vmem:[#allocation16 + $0x208] sm:$0xff] }
 0x1ef   :  { %v4041_v31 = vpop.f32.mrf.mxu0  ;;  %1829 = vmatpush.msrb.mxu0 %v1563_v18  ;;  %v1521_v53 = vld [vmem:[#allocation16 + $0x288] sm:$0xff]  ;;  %1808 = vmatpush.msrb.mxu3 %v1545_v37  ;;  %v667_v18 = vmul.f32 %v3913_v40, %v3849_v9  ;;  %v666_v38 = vmul.f32 %v3925_v10, %v3861_v21  ;;  %v1624_v40 = vld [vmem:[#allocation16 + $0x5c0] sm:$0xff]  ;;  %v1658_v9 = vld [vmem:[#allocation16 + $0x6d0] sm:$0xff] }
 0x1f0   :  { %4715 = vst [vmem:[#allocation55_spill] sm:$0xff] %v4041_v31  ;;  %1767 = vmatpush.msra.mxu1 %v1508_v36  ;;  %1790 = vmatpush.msra.mxu2 %v1524_v52  ;;  %v1543_v52 = vld [vmem:[#allocation16 + $0x338] sm:$0xff]  ;;  %v1642_v10 = vld [vmem:[#allocation16 + $0x650] sm:$0xff] }
 0x1f1   :  { %4718 = vst [vmem:[#allocation58_spill] sm:$0xff] %v4047_v49  ;;  %1830 = vmatpush.msrb.mxu0 %v1562_v33  ;;  %1809 = vmatpush.msrb.mxu3 %v1544_v8  ;;  %v4071_v33 = vsub.f32 %v667_v18, %v675_v17  ;;  %v1598_v8 = vld [vmem:[#allocation16 + $0x4f0] sm:$0xff]  ;;  %v1541_v17 = vld [vmem:[#allocation16 + $0x328] sm:$0xff] }
 0x1f2   :  { %4719 = vst [vmem:[#allocation59_spill] sm:$0xff] %v4049_v4  ;;  %1683 = vmatmul.f32.gmra.mxu1 %v4043_v51  ;;  %1706 = vmatmul.f32.gmra.mxu2 %v4045_v3  ;;  %v1581_v18 = vld [vmem:[#allocation16 + $0x468] sm:$0xff]  ;;  %v1579_v51 = vld [vmem:[#allocation16 + $0x458] sm:$0xff]  ;;  %v1654_v21 = vld [vmem:[#allocation16 + $0x6b0] sm:$0xff] }
 0x1f3   :  { %1729 = vmatmul.f32.gmra.mxu3 %v4047_v49  ;;  %1752 = vmatmul.f32.gmra.mxu0 %v4049_v4  ;;  %4723 = vst [vmem:[#allocation63_spill] sm:$0xff] %v4071_v33  ;;  %v1583_v4 = vld [vmem:[#allocation16 + $0x478] sm:$0xff]  ;;  %v1542_v49 = vld [vmem:[#allocation16 + $0x330] sm:$0xff] }
 0x1f4   :  { %1768 = vmatpush.msra.mxu1 %v1507_v26  ;;  %1791 = vmatpush.msra.mxu2 %v1523_v16  ;;  %v4059_v20 = vpop.f32.mrf.mxu2  ;;  %v1504_v26 = vld [vmem:[#allocation16 + $0x200] sm:$0xff]  ;;  %v1539_v3 = vld [vmem:[#allocation16 + $0x318] sm:$0xff] }
 0x1f5   :  { %v4061_v36 = vpop.f32.mrf.mxu3  ;;  %v1520_v16 = vld [vmem:[#allocation16 + $0x280] sm:$0xff]  ;;  %1831 = vmatpush.msrb.mxu0 %v1561_v12  ;;  %1810 = vmatpush.msrb.mxu3 %v1543_v52  ;;  %v1582_v12 = vld [vmem:[#allocation16 + $0x470] sm:$0xff] }
 0x1f6   :  { %4720 = vst [vmem:[#allocation60_spill] sm:$0xff] %v4061_v36  ;;  %1769 = vmatpush.msra.mxu1 %v1506_v58  ;;  %1792 = vmatpush.msra.mxu2 %v1522_v30  ;;  %v4067_v14 = vpop.f32.mrf.mxu1  ;;  %v4073_v58 = vsub.f32 %v666_v38, %v674_v19  ;;  %v1599_v30 = vld [vmem:[#allocation16 + $0x4f8] sm:$0xff]  ;;  %v679_v19 = vmul.f32 %v3971_v35, %v3897_v15  ;;  %v1573_v15 = vld [vmem:[#allocation16 + $0x428] sm:$0xff] }
 0x1f7   :  { %4721 = vst [vmem:[#allocation61_spill] sm:$0xff] %v4067_v14  ;;  %v4069_v37 = vpop.f32.mrf.mxu0  ;;  %1832 = vmatpush.msrb.mxu0 %v1560_v13  ;;  %v1597_v13 = vld [vmem:[#allocation16 + $0x4e8] sm:$0xff]  ;;  %1811 = vmatpush.msrb.mxu3 %v1542_v49 }
 0x1f8   :  { %4722 = vst [vmem:[#allocation62_spill] sm:$0xff] %v4069_v37  ;;  %1770 = vmatpush.msra.mxu1 %v1505_v25  ;;  %1793 = vmatpush.msra.mxu2 %v1521_v53  ;;  %v1558_v25 = vld [vmem:[#allocation16 + $0x3b0] sm:$0xff]  ;;  %v678_v53 = vmul.f32 %v3996_v23, %v3909_v34  ;;  %v1629_v35 = vld [vmem:[#allocation16 + $0x5e8] sm:$0xff]  ;;  %v1647_v23 = vld [vmem:[#allocation16 + $0x678] sm:$0xff] }
 0x1f9   :  { %4724 = vst [vmem:[#allocation64_spill] sm:$0xff] %v4073_v58  ;;  %1833 = vmatpush.msrb.mxu0 %v1559_v6  ;;  %1812 = vmatpush.msrb.mxu3 %v1541_v17  ;;  %v1594_v17 = vld [vmem:[#allocation16 + $0x4d0] sm:$0xff]  ;;  %v1569_v34 = vld [vmem:[#allocation16 + $0x408] sm:$0xff] }
 0x1fa   :  { %1771 = vmatpush.msra.mxu1 %v1504_v26  ;;  %1794 = vmatpush.msra.mxu2 %v1520_v16  ;;  %v1540_v26 = vld [vmem:[#allocation16 + $0x320] sm:$0xff]  ;;  %v671_v16 = vmul.f32 %v3929_v47, %v3865_v28  ;;  %v1574_v47 = vld [vmem:[#allocation16 + $0x430] sm:$0xff] }
 0x1fb   :  { %1772 = vmatmul.f32.vlgmr.msra.gmra.mxu1 %v4073_v58  ;;  %1795 = vmatmul.f32.vlgmr.msra.gmra.mxu2 %v4071_v33  ;;  %v1596_v33 = vld [vmem:[#allocation16 + $0x4e0] sm:$0xff]  ;;  %v1586_v28 = vld [vmem:[#allocation16 + $0x490] sm:$0xff] }
 0x1fc   :  { %1871 = vmatpush.msrb.mxu2 %v1599_v30  ;;  %1848 = vmatpush.msrb.mxu1 %v1583_v4  ;;  %v4081_v52 = vpop.f32.mrf.mxu2  ;;  %v1557_v4 = vld [vmem:[#allocation16 + $0x3a8] sm:$0xff]  ;;  %v670_v30 = vmul.f32 %v3941_v46, %v3877_v41  ;;  %v1570_v46 = vld [vmem:[#allocation16 + $0x410] sm:$0xff]  ;;  %v1607_v41 = vld [vmem:[#allocation16 + $0x538] sm:$0xff] }
 0x1fd   :  { %v4083_v38 = vpop.f32.mrf.mxu3  ;;  %1834 = vmatpush.msrb.mxu0 %v1558_v25  ;;  %1813 = vmatpush.msrb.mxu3 %v1540_v26  ;;  %v1578_v25 = vld [vmem:[#allocation16 + $0x450] sm:$0xff] }
 0x1fe   :  { %4725 = vst [vmem:[#allocation65_spill] sm:$0xff] %v4083_v38  ;;  %1872 = vmatpush.msrb.mxu2 %v1598_v8  ;;  %1849 = vmatpush.msrb.mxu1 %v1582_v12  ;;  %v4089_v58 = vpop.f32.mrf.mxu1  ;;  %v4093_v6 = vsub.f32 %v670_v30, %v678_v53  ;;  %v4095_v8 = vsub.f32 %v671_v16, %v679_v19  ;;  %v1595_v12 = vld [vmem:[#allocation16 + $0x4d8] sm:$0xff]  ;;  %v1538_v53 = vld [vmem:[#allocation16 + $0x310] sm:$0xff]  ;;  %v1577_v16 = vld [vmem:[#allocation16 + $0x448] sm:$0xff] }
 0x1ff   :  { %4726 = vst [vmem:[#allocation66_spill] sm:$0xff] %v4089_v58  ;;  %v4091_v49 = vpop.f32.mrf.mxu0  ;;  %1835 = vmatpush.msrb.mxu0 %v1557_v4  ;;  %1814 = vmatpush.msrb.mxu3 %v1539_v3  ;;  %v1554_v26 = vld [vmem:[#allocation16 + $0x390] sm:$0xff]  ;;  %v1592_v30 = vld [vmem:[#allocation16 + $0x4c0] sm:$0xff]  ;;  %v1591_v3 = vld [vmem:[#allocation16 + $0x4b8] sm:$0xff] }
 0x200   :  { %4727 = vst [vmem:[#allocation67_spill] sm:$0xff] %v4091_v49  ;;  %1873 = vmatpush.msrb.mxu2 %v1597_v13  ;;  %1850 = vmatpush.msrb.mxu1 %v1581_v18  ;;  %v1555_v13 = vld [vmem:[#allocation16 + $0x398] sm:$0xff]  ;;  %v1593_v18 = vld [vmem:[#allocation16 + $0x4c8] sm:$0xff] }
 0x201   :  { %4728 = vst [vmem:[#allocation68_spill] sm:$0xff] %v4093_v6  ;;  %1836 = vmatpush.msrb.mxu0 %v1556_v48  ;;  %1815 = vmatpush.msrb.mxu3 %v1538_v53  ;;  %v1575_v48 = vld [vmem:[#allocation16 + $0x438] sm:$0xff]  ;;  %v1614_v53 = vld [vmem:[#allocation16 + $0x570] sm:$0xff] }
 0x202   :  { %4729 = vst [vmem:[#allocation69_spill] sm:$0xff] %v4095_v8  ;;  %1874 = vmatpush.msrb.mxu2 %v1596_v33  ;;  %1851 = vmatpush.msrb.mxu1 %v1580_v1  ;;  %v1537_v1 = vld [vmem:[#allocation16 + $0x308] sm:$0xff] }
 0x203   :  { %1775 = vmatmul.f32.gmra.mxu1 %v4093_v6  ;;  %1798 = vmatmul.f32.gmra.mxu2 %v4095_v8  ;;  %v1576_v6 = vld [vmem:[#allocation16 + $0x440] sm:$0xff]  ;;  %v1553_v8 = vld [vmem:[#allocation16 + $0x388] sm:$0xff] }
 0x204   :  { %1875 = vmatpush.msrb.mxu2 %v1595_v12  ;;  %1852 = vmatpush.msrb.mxu1 %v1579_v51  ;;  %v4099_v19 = vpop.f32.mrf.mxu2  ;;  %v1536_v12 = vld [vmem:[#allocation16 + $0x300] sm:$0xff] }
 0x205   :  { %v4101_v33 = vpop.f32.mrf.mxu3  ;;  %1837 = vmatpush.msrb.mxu0 %v1555_v13  ;;  %1816 = vmatpush.msrb.mxu3 %v1537_v1  ;;  %v1631_v13 = vld [vmem:[#allocation16 + $0x5f8] sm:$0xff] }
 0x206   :  { %4730 = vst [vmem:[#allocation70_spill] sm:$0xff] %v4101_v33  ;;  %1876 = vmatpush.msrb.mxu2 %v1594_v17  ;;  %1853 = vmatpush.msrb.mxu1 %v1578_v25  ;;  %v4103_v4 = vpop.f32.mrf.mxu1  ;;  %v1615_v17 = vld [vmem:[#allocation16 + $0x578] sm:$0xff]  ;;  %v1552_v25 = vld [vmem:[#allocation16 + $0x380] sm:$0xff] }
 0x207   :  { %4731 = vst [vmem:[#allocation71_spill] sm:$0xff] %v4103_v4  ;;  %v4105_v51 = vpop.f32.mrf.mxu0  ;;  %1838 = vmatpush.msrb.mxu0 %v1554_v26  ;;  %1817 = vmatpush.msrb.mxu3 %v1536_v12  ;;  %v1630_v26 = vld [vmem:[#allocation16 + $0x5f0] sm:$0xff]  ;;  %v1588_v12 = vld [vmem:[#allocation16 + $0x4a0] sm:$0xff] }
 0x208   :  { %1877 = vmatpush.msrb.mxu2 %v1593_v18  ;;  %1854 = vmatpush.msrb.mxu1 %v1577_v16  ;;  %v1589_v16 = vld [vmem:[#allocation16 + $0x4a8] sm:$0xff] }
 0x209   :  { %1839 = vmatpush.msrb.mxu0 %v1553_v8  ;;  %1894 = vmatpush.msra.mxu3 %v1615_v17  ;;  %v1572_v8 = vld [vmem:[#allocation16 + $0x420] sm:$0xff]  ;;  %v1587_v17 = vld [vmem:[#allocation16 + $0x498] sm:$0xff] }
 0x20a   :  { %1878 = vmatpush.msrb.mxu2 %v1592_v30  ;;  %1855 = vmatpush.msrb.mxu1 %v1576_v6  ;;  %v1613_v6 = vld [vmem:[#allocation16 + $0x568] sm:$0xff] }
 0x20b   :  { %1840 = vmatpush.msrb.mxu0 %v1552_v25  ;;  %1895 = vmatpush.msra.mxu3 %v1614_v53  ;;  %v1571_v25 = vld [vmem:[#allocation16 + $0x418] sm:$0xff]  ;;  %v1610_v53 = vld [vmem:[#allocation16 + $0x550] sm:$0xff] }
 0x20c   :  { %1879 = vmatpush.msrb.mxu2 %v1591_v3  ;;  %1856 = vmatpush.msrb.mxu1 %v1575_v48  ;;  %v4107_v18 = vpop.f32.mrf.mxu2  ;;  %v1612_v48 = vld [vmem:[#allocation16 + $0x560] sm:$0xff] }
 0x20d   :  { %v4109_v1 = vpop.f32.mrf.mxu3  ;;  %1917 = vmatpush.msra.mxu0 %v1631_v13  ;;  %1896 = vmatpush.msra.mxu3 %v1613_v6  ;;  %v1627_v13 = vld [vmem:[#allocation16 + $0x5d8] sm:$0xff] }
 0x20e   :  { %1880 = vmatpush.msrb.mxu2 %v1590_v56  ;;  %1857 = vmatpush.msrb.mxu1 %v1574_v47  ;;  %v4111_v30 = vpop.f32.mrf.mxu1  ;;  %v1611_v47 = vld [vmem:[#allocation16 + $0x558] sm:$0xff]  ;;  %v1628_v56 = vld [vmem:[#allocation16 + $0x5e0] sm:$0xff] }
 0x20f   :  { %v4113_v3 = vpop.f32.mrf.mxu0  ;;  %1918 = vmatpush.msra.mxu0 %v1630_v26  ;;  %1897 = vmatpush.msra.mxu3 %v1612_v48  ;;  %v1609_v26 = vld [vmem:[#allocation16 + $0x548] sm:$0xff]  ;;  %v1584_v48 = vld [vmem:[#allocation16 + $0x480] sm:$0xff] }
 0x210   :  { %1881 = vmatpush.msrb.mxu2 %v1589_v16  ;;  %1858 = vmatpush.msrb.mxu1 %v1573_v15  ;;  %v1585_v15 = vld [vmem:[#allocation16 + $0x488] sm:$0xff] }
 0x211   :  { %1919 = vmatpush.msra.mxu0 %v1629_v35  ;;  %1898 = vmatpush.msra.mxu3 %v1611_v47  ;;  %v1568_v35 = vld [vmem:[#allocation16 + $0x400] sm:$0xff] }
 0x212   :  { %1882 = vmatpush.msrb.mxu2 %v1588_v12  ;;  %1859 = vmatpush.msrb.mxu1 %v1572_v8  ;;  %v1626_v12 = vld [vmem:[#allocation16 + $0x5d0] sm:$0xff]  ;;  %v1608_v47 = vld [vmem:[#allocation16 + $0x540] sm:$0xff] }
 0x213   :  { %1920 = vmatpush.msra.mxu0 %v1628_v56  ;;  %1899 = vmatpush.msra.mxu3 %v1610_v53  ;;  %v1625_v56 = vld [vmem:[#allocation16 + $0x5c8] sm:$0xff] }
 0x214   :  { %1883 = vmatpush.msrb.mxu2 %v1587_v17  ;;  %1860 = vmatpush.msrb.mxu1 %v1571_v25  ;;  %v4115_v16 = vpop.f32.mrf.mxu2  ;;  %v1663_v25 = vld [vmem:[#allocation16 + $0x6f8] sm:$0xff]  ;;  %v1661_v53 = vld [vmem:[#allocation16 + $0x6e8] sm:$0xff] }
 0x215   :  { %v4117_v6 = vpop.f32.mrf.mxu3  ;;  %1921 = vmatpush.msra.mxu0 %v1627_v13  ;;  %1900 = vmatpush.msra.mxu3 %v1609_v26  ;;  %v1645_v13 = vld [vmem:[#allocation16 + $0x668] sm:$0xff]  ;;  %v1623_v26 = vld [vmem:[#allocation16 + $0x5b8] sm:$0xff] }
 0x216   :  { %1884 = vmatpush.msrb.mxu2 %v1586_v28  ;;  %1861 = vmatpush.msrb.mxu1 %v1570_v46  ;;  %v4119_v8 = vpop.f32.mrf.mxu1  ;;  %v1662_v28 = vld [vmem:[#allocation16 + $0x6f0] sm:$0xff] }
 0x217   :  { %4732 = vst [vmem:[#allocation72_spill] sm:$0xff] %v4119_v8  ;;  %v4121_v17 = vpop.f32.mrf.mxu0  ;;  %1922 = vmatpush.msra.mxu0 %v1626_v12  ;;  %v1646_v46 = vld [vmem:[#allocation16 + $0x670] sm:$0xff]  ;;  %1901 = vmatpush.msra.mxu3 %v1608_v47 }
 0x218   :  { %1885 = vmatpush.msrb.mxu2 %v1585_v15  ;;  %1862 = vmatpush.msrb.mxu1 %v1569_v34  ;;  %v1606_v34 = vld [vmem:[#allocation16 + $0x530] sm:$0xff] }
 0x219   :  { %1923 = vmatpush.msra.mxu0 %v1625_v56  ;;  %1902 = vmatpush.msra.mxu3 %v1607_v41  ;;  %v1659_v56 = vld [vmem:[#allocation16 + $0x6d8] sm:$0xff] }
 0x21a   :  { %1886 = vmatpush.msrb.mxu2 %v1584_v48  ;;  %1863 = vmatpush.msrb.mxu1 %v1568_v35  ;;  %v1660_v48 = vld [vmem:[#allocation16 + $0x6e0] sm:$0xff]  ;;  %v1603_v41 = vld [vmem:[#allocation16 + $0x518] sm:$0xff] }
 0x21b   :  { %1924 = vmatpush.msra.mxu0 %v1624_v40  ;;  %1903 = vmatpush.msra.mxu3 %v1606_v34  ;;  %v1620_v40 = vld [vmem:[#allocation16 + $0x5a0] sm:$0xff]  ;;  %v1602_v34 = vld [vmem:[#allocation16 + $0x510] sm:$0xff] }
 0x21c   :  { %1963 = vmatpush.msra.mxu2 %v1663_v25  ;;  %1940 = vmatpush.msra.mxu1 %v1647_v23  ;;  %v4123_v15 = vpop.f32.mrf.mxu2  ;;  %v1605_v23 = vld [vmem:[#allocation16 + $0x528] sm:$0xff]  ;;  %v1622_v25 = vld [vmem:[#allocation16 + $0x5b0] sm:$0xff] }
 0x21d   :  { %v4125_v12 = vpop.f32.mrf.mxu3  ;;  %1925 = vmatpush.msra.mxu0 %v1623_v26  ;;  %1904 = vmatpush.msra.mxu3 %v1605_v23 }
 0x21e   :  { %1964 = vmatpush.msra.mxu2 %v1662_v28  ;;  %1941 = vmatpush.msra.mxu1 %v1646_v46  ;;  %v4127_v35 = vpop.f32.mrf.mxu1  ;;  %v1604_v28 = vld [vmem:[#allocation16 + $0x520] sm:$0xff]  ;;  %v1621_v46 = vld [vmem:[#allocation16 + $0x5a8] sm:$0xff] }
 0x21f   :  { %v4129_v47 = vpop.f32.mrf.mxu0  ;;  %1926 = vmatpush.msra.mxu0 %v1622_v25  ;;  %1905 = vmatpush.msra.mxu3 %v1604_v28  ;;  %v1618_v25 = vld [vmem:[#allocation16 + $0x590] sm:$0xff]  ;;  %v1655_v28 = vld [vmem:[#allocation16 + $0x6b8] sm:$0xff] }
 0x220   :  { %1965 = vmatpush.msra.mxu2 %v1661_v53  ;;  %1942 = vmatpush.msra.mxu1 %v1645_v13  ;;  %v1657_v53 = vld [vmem:[#allocation16 + $0x6c8] sm:$0xff] }
 0x221   :  { %v1641_v13 = vld [vmem:[#allocation16 + $0x648] sm:$0xff]  ;;  %1927 = vmatpush.msra.mxu0 %v1621_v46  ;;  %1906 = vmatpush.msra.mxu3 %v1603_v41  ;;  %v1639_v46 = vld [vmem:[#allocation16 + $0x638] sm:$0xff]  ;;  %v1616_v41 = vld [vmem:[#allocation16 + $0x580] sm:$0xff] }
 0x222   :  { %1966 = vmatpush.msra.mxu2 %v1660_v48  ;;  %1943 = vmatpush.msra.mxu1 %v1644_v54  ;;  %v1619_v54 = vld [vmem:[#allocation16 + $0x598] sm:$0xff]  ;;  %v1656_v48 = vld [vmem:[#allocation16 + $0x6c0] sm:$0xff] }
 0x223   :  { %1928 = vmatpush.msra.mxu0 %v1620_v40  ;;  %1907 = vmatpush.msra.mxu3 %v1602_v34  ;;  %v1653_v40 = vld [vmem:[#allocation16 + $0x6a8] sm:$0xff] }
 0x224   :  { %1967 = vmatpush.msra.mxu2 %v1659_v56  ;;  %1944 = vmatpush.msra.mxu1 %v1643_v59  ;;  %v4131_v11 = vpop.f32.mrf.mxu2  ;;  %v1601_v59 = vld [vmem:[#allocation16 + $0x508] sm:$0xff] }
 0x225   :  { %v4133_v26 = vpop.f32.mrf.mxu3  ;;  %1929 = vmatpush.msra.mxu0 %v1619_v54  ;;  %1908 = vmatpush.msra.mxu3 %v1601_v59  ;;  %v1636_v54 = vld [vmem:[#allocation16 + $0x620] sm:$0xff] }
 0x226   :  { %1968 = vmatpush.msra.mxu2 %v1658_v9  ;;  %1945 = vmatpush.msra.mxu1 %v1642_v10  ;;  %v4135_v23 = vpop.f32.mrf.mxu1  ;;  %v1600_v9 = vld [vmem:[#allocation16 + $0x500] sm:$0xff]  ;;  %v1617_v10 = vld [vmem:[#allocation16 + $0x588] sm:$0xff] }
 0x227   :  { %4733 = vst [vmem:[#allocation73_spill] sm:$0xff] %v4135_v23  ;;  %v4137_v56 = vpop.f32.mrf.mxu0  ;;  %1930 = vmatpush.msra.mxu0 %v1618_v25  ;;  %1909 = vmatpush.msra.mxu3 %v1600_v9  ;;  %v1651_v25 = vld [vmem:[#allocation16 + $0x698] sm:$0xff]  ;;  %v1634_v9 = vld [vmem:[#allocation16 + $0x610] sm:$0xff] }
 0x228   :  { %1969 = vmatpush.msra.mxu2 %v1657_v53  ;;  %1946 = vmatpush.msra.mxu1 %v1641_v13  ;;  %4734 = vst [vmem:[#allocation74_spill] sm:$0xff] %v4137_v56  ;;  %v1637_v53 = vld [vmem:[#allocation16 + $0x628] sm:$0xff] }
 0x229   :  { %1931 = vmatpush.msra.mxu0 %v1617_v10 }
 0x22a   :  { %1970 = vmatpush.msra.mxu2 %v1656_v48  ;;  %1947 = vmatpush.msra.mxu1 %v1640_v24  ;;  %v1652_v24 = vld [vmem:[#allocation16 + $0x6a0] sm:$0xff] }
 0x22b   :  { %1932 = vmatpush.msra.mxu0 %v1616_v41 }
 0x22c   :  { %1971 = vmatpush.msra.mxu2 %v1655_v28  ;;  %1948 = vmatpush.msra.mxu1 %v1639_v46  ;;  %v4139_v13 = vpop.f32.mrf.mxu2  ;;  %v1635_v28 = vld [vmem:[#allocation16 + $0x618] sm:$0xff]  ;;  %v1650_v46 = vld [vmem:[#allocation16 + $0x690] sm:$0xff] }
 0x22d   :  { %v4141_v34 = vpop.f32.mrf.mxu3 }
 0x22e   :  { %1972 = vmatpush.msra.mxu2 %v1654_v21  ;;  %1949 = vmatpush.msra.mxu1 %v1638_v0  ;;  %4735 = vst [vmem:[#allocation75_spill] sm:$0xff] %v4141_v34  ;;  %v4143_v48 = vpop.f32.mrf.mxu1  ;;  %v1649_v21 = vld [vmem:[#allocation16 + $0x688] sm:$0xff] }
 0x22f   :  { %4736 = vst [vmem:[#allocation76_spill] sm:$0xff] %v4143_v48  ;;  %v4145_v59 = vpop.f32.mrf.mxu0  ;;  %v1633_v0 = vld [vmem:[#allocation16 + $0x608] sm:$0xff] }
 0x230   :  { %1973 = vmatpush.msra.mxu2 %v1653_v40  ;;  %1950 = vmatpush.msra.mxu1 %v1637_v53  ;;  %4737 = vst [vmem:[#allocation77_spill] sm:$0xff] %v4145_v59  ;;  %v1648_v40 = vld [vmem:[#allocation16 + $0x680] sm:$0xff] }
 0x231   :  { %v1632_v53 = vld [vmem:[#allocation16 + $0x600] sm:$0xff] }
 0x232   :  { %1974 = vmatpush.msra.mxu2 %v1652_v24  ;;  %1951 = vmatpush.msra.mxu1 %v1636_v54  ;;  %v1256_v24 = vmul.f32 %v4135_v23, %v4002_v57  ;;  %v2001_v23 = vld [vmem:[#allocation16 + $0x770] sm:$0xff] }
 0x234   :  { %1975 = vmatpush.msra.mxu2 %v1651_v25  ;;  %1952 = vmatpush.msra.mxu1 %v1635_v28  ;;  %v4147_v10 = vpop.f32.mrf.mxu2  ;;  %v1259_v28 = vmul.f32 %v4137_v56, %v4008_v55  ;;  %v2049_v56 = vld [vmem:[#allocation16 + $0x8f0] sm:$0xff]  ;;  %v1999_v55 = vld [vmem:[#allocation16 + $0x760] sm:$0xff] }
 0x235   :  { %v4149_v41 = vpop.f32.mrf.mxu3 }
 0x236   :  { %1976 = vmatpush.msra.mxu2 %v1650_v46  ;;  %1953 = vmatpush.msra.mxu1 %v1634_v9  ;;  %4738 = vst [vmem:[#allocation78_spill] sm:$0xff] %v4149_v41  ;;  %v4151_v63 = vpop.f32.mrf.mxu1 }
 0x237   :  { %v1272_v54 = vmul.f32 %v4151_v63, %v4067_v14  ;;  %v4157_v25 = vpop.f32.mrf.mxu0 }
 0x238   :  { %1977 = vmatpush.msra.mxu2 %v1649_v21  ;;  %1954 = vmatpush.msra.mxu1 %v1633_v0  ;;  %4739 = vst [vmem:[#allocation79_spill] sm:$0xff] %v4157_v25  ;;  %v1275_v46 = vmul.f32 %v4157_v25, %v4069_v37  ;;  %v2002_v21 = vld [vmem:[#allocation16 + $0x778] sm:$0xff]  ;;  %v1257_v37 = vmul.f32 %v4139_v13, %v4031_v32 }
 0x239   :  { %v4163_v9 = vsub.f32 %v1256_v24, %v1272_v54  ;;  %v2000_v24 = vld [vmem:[#allocation16 + $0x768] sm:$0xff]  ;;  %v1258_v54 = vmul.f32 %v4141_v34, %v4033_v7  ;;  %v1267_v34 = vmul.f32 %v4145_v59, %v4041_v31  ;;  %v2034_v7 = vld [vmem:[#allocation16 + $0x878] sm:$0xff] }
 0x23a   :  { %1978 = vmatpush.msra.mxu2 %v1648_v40  ;;  %1955 = vmatpush.msra.mxu1 %v1632_v53  ;;  %v4165_v0 = vsub.f32 %v1259_v28, %v1275_v46  ;;  %v1998_v59 = vld [vmem:[#allocation16 + $0x758] sm:$0xff]  ;;  %v2044_v31 = vld [vmem:[#allocation16 + $0x8c8] sm:$0xff] }
 0x23b   :  { %4740 = vst [vmem:[#allocation80_spill] sm:$0xff] %v4163_v9  ;;  %1818 = vmatmul.f32.vlgmr.msrb.gmra.mxu3 %v4163_v9 }
 0x23c   :  { %4741 = vst [vmem:[#allocation81_spill] sm:$0xff] %v4165_v0  ;;  %1887 = vmatmul.f32.vlgmr.msrb.gmra.mxu2 %v4165_v0  ;;  %v4169_v14 = vpop.f32.mrf.mxu2  ;;  %2211 = vmatpush.msrb.mxu3 %v2002_v21  ;;  %v2048_v21 = vld [vmem:[#allocation16 + $0x8e8] sm:$0xff]  ;;  %v1264_v0 = vmul.f32 %v4143_v48, %v4039_v29 }
 0x23d   :  { %v1273_v40 = vmul.f32 %v4169_v14, %v4081_v52  ;;  %v4175_v53 = vpop.f32.mrf.mxu3  ;;  %2280 = vmatpush.msrb.mxu2 %v2050_v44 }
 0x23e   :  { %4742 = vst [vmem:[#allocation82_spill] sm:$0xff] %v4175_v53  ;;  %v1274_v28 = vmul.f32 %v4175_v53, %v4083_v38  ;;  %v4181_v46 = vpop.f32.mrf.mxu1  ;;  %2212 = vmatpush.msrb.mxu3 %v2001_v23  ;;  %v2018_v53 = vld [vmem:[#allocation16 + $0x7f8] sm:$0xff] }
 0x23f   :  { %4743 = vst [vmem:[#allocation83_spill] sm:$0xff] %v4181_v46  ;;  %v4185_v9 = vsub.f32 %v1257_v37, %v1273_v40  ;;  %v1280_v25 = vmul.f32 %v4181_v46, %v4089_v58  ;;  %v4189_v44 = vpop.f32.mrf.mxu0  ;;  %2281 = vmatpush.msrb.mxu2 %v2049_v56  ;;  %v2047_v37 = vld [vmem:[#allocation16 + $0x8e0] sm:$0xff] }
 0x240   :  { %4745 = vst [vmem:[#allocation85_spill] sm:$0xff] %v4189_v44  ;;  %v4193_v38 = vsub.f32 %v1258_v54, %v1274_v28  ;;  %v1283_v23 = vmul.f32 %v4189_v44, %v4091_v49  ;;  %2213 = vmatpush.msrb.mxu3 %v2000_v24  ;;  %v2017_v54 = vld [vmem:[#allocation16 + $0x7f0] sm:$0xff]  ;;  %v2015_v49 = vld [vmem:[#allocation16 + $0x7e0] sm:$0xff] }
 0x241   :  { %4744 = vst [vmem:[#allocation84_spill] sm:$0xff] %v4185_v9  ;;  %2282 = vmatpush.msrb.mxu2 %v2048_v21  ;;  %1841 = vmatmul.f32.vlgmr.msrb.gmra.mxu0 %v4185_v9  ;;  %v4198_v40 = vsub.f32 %v1264_v0, %v1280_v25  ;;  %v2033_v28 = vld [vmem:[#allocation16 + $0x870] sm:$0xff]  ;;  %v2046_v21 = vld [vmem:[#allocation16 + $0x8d8] sm:$0xff]  ;;  %v1265_v25 = vmul.f32 %v4147_v10, %v4059_v20  ;;  %v2032_v0 = vld [vmem:[#allocation16 + $0x868] sm:$0xff] }
 0x242   :  { %4746 = vst [vmem:[#allocation86_spill] sm:$0xff] %v4193_v38  ;;  %1864 = vmatmul.f32.vlgmr.msrb.gmra.mxu1 %v4193_v38  ;;  %2214 = vmatpush.msrb.mxu3 %v1999_v55  ;;  %v4201_v56 = vsub.f32 %v1267_v34, %v1283_v23  ;;  %v1997_v9 = vld [vmem:[#allocation16 + $0x750] sm:$0xff]  ;;  %v2007_v58 = vld [vmem:[#allocation16 + $0x7a0] sm:$0xff] }
 0x243   :  { %4747 = vst [vmem:[#allocation87_spill] sm:$0xff] %v4198_v40  ;;  %2234 = vmatpush.msrb.mxu0 %v2018_v53  ;;  %2257 = vmatpush.msrb.mxu1 %v2034_v7  ;;  %v2016_v7 = vld [vmem:[#allocation16 + $0x7e8] sm:$0xff]  ;;  %v1266_v53 = vmul.f32 %v4149_v41, %v4061_v36  ;;  %v1989_v36 = vld [vmem:[#allocation16 + $0x710] sm:$0xff]  ;;  %v2023_v46 = vld [vmem:[#allocation16 + $0x820] sm:$0xff] }
 0x244   :  { %4748 = vst [vmem:[#allocation88_spill] sm:$0xff] %v4201_v56  ;;  %2283 = vmatpush.msrb.mxu2 %v2047_v37  ;;  %1821 = vmatmul.f32.gmra.mxu3 %v4198_v40  ;;  %v4204_v24 = vpop.f32.mrf.mxu2  ;;  %v2045_v40 = vld [vmem:[#allocation16 + $0x8d0] sm:$0xff] }
 0x245   :  { %1890 = vmatmul.f32.gmra.mxu2 %v4201_v56  ;;  %v1281_v55 = vmul.f32 %v4204_v24, %v4099_v19  ;;  %v4211_v34 = vpop.f32.mrf.mxu3  ;;  %2215 = vmatpush.msrb.mxu3 %v1998_v59  ;;  %v1996_v56 = vld [vmem:[#allocation16 + $0x748] sm:$0xff]  ;;  %v2031_v59 = vld [vmem:[#allocation16 + $0x860] sm:$0xff] }
 0x246   :  { %4749 = vst [vmem:[#allocation89_spill] sm:$0xff] %v4211_v34  ;;  %v1282_v23 = vmul.f32 %v4211_v34, %v4101_v33  ;;  %2235 = vmatpush.msrb.mxu0 %v2017_v54  ;;  %2258 = vmatpush.msrb.mxu1 %v2033_v28  ;;  %v4217_v37 = vpop.f32.mrf.mxu1  ;;  %v1995_v54 = vld [vmem:[#allocation16 + $0x740] sm:$0xff]  ;;  %v2014_v28 = vld [vmem:[#allocation16 + $0x7d8] sm:$0xff] }
 0x247   :  { %4750 = vst [vmem:[#allocation90_spill] sm:$0xff] %v4217_v37  ;;  %2284 = vmatpush.msrb.mxu2 %v2046_v21  ;;  %v4219_v38 = vpop.f32.mrf.mxu0  ;;  %2216 = vmatpush.msrb.mxu3 %v1997_v9  ;;  %v4221_v44 = vsub.f32 %v1265_v25, %v1281_v55  ;;  %v2030_v33 = vld [vmem:[#allocation16 + $0x858] sm:$0xff]  ;;  %v2043_v9 = vld [vmem:[#allocation16 + $0x8c0] sm:$0xff]  ;;  %v2013_v55 = vld [vmem:[#allocation16 + $0x7d0] sm:$0xff] }
 0x248   :  { %2236 = vmatpush.msrb.mxu0 %v2016_v7  ;;  %2259 = vmatpush.msrb.mxu1 %v2032_v0  ;;  %v4223_v41 = vsub.f32 %v1266_v53, %v1282_v23  ;;  %v1994_v21 = vld [vmem:[#allocation16 + $0x738] sm:$0xff]  ;;  %v2029_v7 = vld [vmem:[#allocation16 + $0x850] sm:$0xff]  ;;  %v2012_v0 = vld [vmem:[#allocation16 + $0x7c8] sm:$0xff]  ;;  %v1343_v48 = vmul.f32 %v4219_v38, %v4121_v17 }
 0x249   :  { %4751 = vst [vmem:[#allocation91_spill] sm:$0xff] %v4221_v44  ;;  %2285 = vmatpush.msrb.mxu2 %v2045_v40  ;;  %2217 = vmatpush.msrb.mxu3 %v1996_v56  ;;  %v1993_v56 = vld [vmem:[#allocation16 + $0x730] sm:$0xff]  ;;  %v2028_v53 = vld [vmem:[#allocation16 + $0x848] sm:$0xff] }
 0x24a   :  { %4752 = vst [vmem:[#allocation92_spill] sm:$0xff] %v4223_v41  ;;  %2237 = vmatpush.msrb.mxu0 %v2015_v49  ;;  %2260 = vmatpush.msrb.mxu1 %v2031_v59  ;;  %v2042_v49 = vld [vmem:[#allocation16 + $0x8b8] sm:$0xff]  ;;  %v2041_v59 = vld [vmem:[#allocation16 + $0x8b0] sm:$0xff] }
 0x24b   :  { %2286 = vmatpush.msrb.mxu2 %v2044_v31  ;;  %1844 = vmatmul.f32.gmra.mxu0 %v4221_v44  ;;  %v1991_v44 = vld [vmem:[#allocation16 + $0x720] sm:$0xff] }
 0x24c   :  { %1867 = vmatmul.f32.gmra.mxu1 %v4223_v41  ;;  %2218 = vmatpush.msrb.mxu3 %v1995_v54  ;;  %v4227_v25 = vpop.f32.mrf.mxu2  ;;  %v1992_v54 = vld [vmem:[#allocation16 + $0x728] sm:$0xff] }
 0x24d   :  { %2238 = vmatpush.msrb.mxu0 %v2014_v28  ;;  %2261 = vmatpush.msrb.mxu1 %v2030_v33  ;;  %v4229_v40 = vpop.f32.mrf.mxu3  ;;  %v2011_v28 = vld [vmem:[#allocation16 + $0x7c0] sm:$0xff]  ;;  %v2040_v41 = vld [vmem:[#allocation16 + $0x8a8] sm:$0xff] }
 0x24e   :  { %2287 = vmatpush.msrb.mxu2 %v2043_v9  ;;  %2219 = vmatpush.msrb.mxu3 %v1994_v21  ;;  %v4231_v31 = vpop.f32.mrf.mxu1  ;;  %v2027_v33 = vld [vmem:[#allocation16 + $0x840] sm:$0xff]  ;;  %v2010_v9 = vld [vmem:[#allocation16 + $0x7b8] sm:$0xff] }
 0x24f   :  { %2239 = vmatpush.msrb.mxu0 %v2013_v55  ;;  %2262 = vmatpush.msrb.mxu1 %v2029_v7  ;;  %v4233_v23 = vpop.f32.mrf.mxu0  ;;  %v2026_v21 = vld [vmem:[#allocation16 + $0x838] sm:$0xff]  ;;  %v2039_v55 = vld [vmem:[#allocation16 + $0x8a0] sm:$0xff] }
 0x250   :  { %2288 = vmatpush.msrb.mxu2 %v2042_v49  ;;  %2220 = vmatpush.msrb.mxu3 %v1993_v56  ;;  %v1990_v7 = vld [vmem:[#allocation16 + $0x718] sm:$0xff]  ;;  %v2009_v49 = vld [vmem:[#allocation16 + $0x7b0] sm:$0xff] }
 0x251   :  { %2240 = vmatpush.msrb.mxu0 %v2012_v0  ;;  %2263 = vmatpush.msrb.mxu1 %v2028_v53  ;;  %v2025_v56 = vld [vmem:[#allocation16 + $0x830] sm:$0xff]  ;;  %v2038_v53 = vld [vmem:[#allocation16 + $0x898] sm:$0xff] }
 0x252   :  { %2289 = vmatpush.msrb.mxu2 %v2041_v59  ;;  %2221 = vmatpush.msrb.mxu3 %v1992_v54  ;;  %v2008_v54 = vld [vmem:[#allocation16 + $0x7a8] sm:$0xff] }
 0x253   :  { %2241 = vmatpush.msrb.mxu0 %v2011_v28  ;;  %2264 = vmatpush.msrb.mxu1 %v2027_v33  ;;  %v2024_v28 = vld [vmem:[#allocation16 + $0x828] sm:$0xff] }
 0x254   :  { %2290 = vmatpush.msrb.mxu2 %v2040_v41  ;;  %2222 = vmatpush.msrb.mxu3 %v1991_v44  ;;  %v4235_v34 = vpop.f32.mrf.mxu2  ;;  %v1260_v41 = vmul.f32 %v4217_v37, %v4103_v4  ;;  %v1987_v37 = vld [vmem:[#allocation16 + $0x700] sm:$0xff] }
 0x255   :  { %2242 = vmatpush.msrb.mxu0 %v2010_v9  ;;  %2265 = vmatpush.msrb.mxu1 %v2026_v21  ;;  %v4237_v0 = vpop.f32.mrf.mxu3  ;;  %v2037_v9 = vld [vmem:[#allocation16 + $0x890] sm:$0xff]  ;;  %v1988_v21 = vld [vmem:[#allocation16 + $0x708] sm:$0xff] }
 0x256   :  { %2291 = vmatpush.msrb.mxu2 %v2039_v55  ;;  %2223 = vmatpush.msrb.mxu3 %v1990_v7 }
 0x257   :  { %v4239_v59 = vpop.f32.mrf.mxu1  ;;  %2243 = vmatpush.msrb.mxu0 %v2009_v49  ;;  %2266 = vmatpush.msrb.mxu1 %v2025_v56  ;;  %v1263_v49 = vmul.f32 %v4219_v38, %v4105_v51  ;;  %v2036_v56 = vld [vmem:[#allocation16 + $0x888] sm:$0xff]  ;;  %v2066_v38 = vld [vmem:[#allocation16 + $0x978] sm:$0xff] }
 0x258   :  { %4753 = vst [vmem:[#allocation93_spill] sm:$0xff] %v4239_v59  ;;  %v1276_v44 = vmul.f32 %v4239_v59, %v4119_v8  ;;  %v1250_v33 = vpop.f32.mrf.mxu0  ;;  %2292 = vmatpush.msrb.mxu2 %v2038_v53  ;;  %2224 = vmatpush.msrb.mxu3 %v1989_v36  ;;  %v2006_v53 = vld [vmem:[#allocation16 + $0x798] sm:$0xff]  ;;  %v2035_v36 = vld [vmem:[#allocation16 + $0x880] sm:$0xff] }
 0x259   :  { %v1279_v55 = vmul.f32 %v1250_v33, %v4121_v17  ;;  %v1327_v7 = vmul.f32 %v1250_v33, %v4105_v51  ;;  %2244 = vmatpush.msrb.mxu0 %v2008_v54  ;;  %2267 = vmatpush.msrb.mxu1 %v2024_v28  ;;  %v2022_v17 = vld [vmem:[#allocation16 + $0x818] sm:$0xff]  ;;  %v2065_v33 = vld [vmem:[#allocation16 + $0x970] sm:$0xff] }
 0x25a   :  { %v4251_v8 = vsub.f32 %v1260_v41, %v1276_v44  ;;  %2293 = vmatpush.msrb.mxu2 %v2037_v9  ;;  %2225 = vmatpush.msrb.mxu3 %v1988_v21  ;;  %v2114_v54 = vld [vmem:[#allocation16 + $0xaf8] sm:$0xff]  ;;  %v2005_v41 = vld [vmem:[#allocation16 + $0x790] sm:$0xff]  ;;  %v1342_v44 = vmul.f32 %v4229_v40, %v4125_v12  ;;  %v1261_v21 = vmul.f32 %v4227_v25, %v4107_v18 }
 0x25b   :  { %v4253_v59 = vadd.f32 %v1343_v48, %v1327_v7  ;;  %v4255_v4 = vsub.f32 %v1263_v49, %v1279_v55  ;;  %2245 = vmatpush.msrb.mxu0 %v2007_v58  ;;  %2268 = vmatpush.msrb.mxu1 %v2023_v46  ;;  %v2113_v55 = vld [vmem:[#allocation16 + $0xaf0] sm:$0xff]  ;;  %v2004_v49 = vld [vmem:[#allocation16 + $0x788] sm:$0xff] }
 0x25c   :  { %4754 = vst [vmem:[#allocation94_spill] sm:$0xff] %v4251_v8  ;;  %2294 = vmatpush.msrb.mxu2 %v2036_v56  ;;  %2226 = vmatpush.msrb.mxu3 %v1987_v37  ;;  %v2021_v37 = vld [vmem:[#allocation16 + $0x810] sm:$0xff]  ;;  %v1262_v56 = vmul.f32 %v4229_v40, %v4109_v1  ;;  %v1351_v40 = vmul.f32 %v4233_v23, %v4129_v47 }
 0x25d   :  { %4755 = vst [vmem:[#allocation95_spill] sm:$0xff] %v4255_v4  ;;  %v4257_v51 = vpop.f32.mrf.mxu2  ;;  %2246 = vmatpush.msrb.mxu0 %v2006_v53  ;;  %2269 = vmatpush.msrb.mxu1 %v2022_v17  ;;  %v2020_v17 = vld [vmem:[#allocation16 + $0x808] sm:$0xff] }
 0x25e   :  { %v1277_v48 = vmul.f32 %v4257_v51, %v4123_v15  ;;  %v1221_v28 = vpop.f32.mrf.mxu3  ;;  %2295 = vmatpush.msrb.mxu2 %v2035_v36  ;;  %1910 = vmatmul.f32.vlgmr.msra.gmra.mxu3 %v4251_v8  ;;  %v2064_v36 = vld [vmem:[#allocation16 + $0x968] sm:$0xff] }
 0x25f   :  { %v1278_v58 = vmul.f32 %v1221_v28, %v4125_v12  ;;  %v1326_v46 = vmul.f32 %v1221_v28, %v4109_v1  ;;  %v4266_v9 = vpop.f32.mrf.mxu1  ;;  %1979 = vmatmul.f32.vlgmr.msra.gmra.mxu2 %v4255_v4  ;;  %2303 = vmatpush.msra.mxu3 %v2066_v38  ;;  %v1268_v28 = vmul.f32 %v4231_v31, %v4111_v30  ;;  %v2112_v8 = vld [vmem:[#allocation16 + $0xae8] sm:$0xff]  ;;  %v2003_v1 = vld [vmem:[#allocation16 + $0x780] sm:$0xff] }
 0x260   :  { %v1253_v7 = vpop.f32.mrf.mxu0  ;;  %2372 = vmatpush.msra.mxu2 %v2114_v54  ;;  %2247 = vmatpush.msrb.mxu0 %v2005_v41  ;;  %v1284_v53 = vmul.f32 %v4266_v9, %v4127_v35  ;;  %v4279_v4 = vsub.f32 %v1261_v21, %v1277_v48  ;;  %v1271_v48 = vmul.f32 %v4233_v23, %v4113_v3 }
 0x261   :  { %v4273_v12 = vadd.f32 %v1342_v44, %v1326_v46  ;;  %2270 = vmatpush.msrb.mxu1 %v2021_v37  ;;  %2304 = vmatpush.msra.mxu3 %v2065_v33  ;;  %v1287_v38 = vmul.f32 %v1253_v7, %v4129_v47  ;;  %v4284_v54 = vsub.f32 %v1262_v56, %v1278_v58  ;;  %v2019_v44 = vld [vmem:[#allocation16 + $0x800] sm:$0xff]  ;;  %v2082_v47 = vld [vmem:[#allocation16 + $0x9f8] sm:$0xff] }
 0x262   :  { %2373 = vmatpush.msra.mxu2 %v2113_v55  ;;  %v1335_v41 = vmul.f32 %v1253_v7, %v4113_v3  ;;  %2248 = vmatpush.msrb.mxu0 %v2004_v49  ;;  %v2063_v46 = vld [vmem:[#allocation16 + $0x960] sm:$0xff]  ;;  %v4289_v37 = vsub.f32 %v1268_v28, %v1284_v53  ;;  %v2098_v58 = vld [vmem:[#allocation16 + $0xa78] sm:$0xff]  ;;  %v1350_v23 = vmul.f32 %v4237_v0, %v4133_v26  ;;  %v2081_v53 = vld [vmem:[#allocation16 + $0x9f0] sm:$0xff] }
 0x263   :  { %2271 = vmatpush.msrb.mxu1 %v2020_v17  ;;  %2305 = vmatpush.msra.mxu3 %v2064_v36  ;;  %v4295_v55 = vsub.f32 %v1271_v48, %v1287_v38  ;;  %v2111_v7 = vld [vmem:[#allocation16 + $0xae0] sm:$0xff]  ;;  %v2062_v49 = vld [vmem:[#allocation16 + $0x958] sm:$0xff]  ;;  %v2097_v17 = vld [vmem:[#allocation16 + $0xa70] sm:$0xff] }
 0x264   :  { %v4291_v33 = vadd.f32 %v1351_v40, %v1335_v41  ;;  %2374 = vmatpush.msra.mxu2 %v2112_v8  ;;  %2249 = vmatpush.msrb.mxu0 %v2003_v1  ;;  %v2110_v28 = vld [vmem:[#allocation16 + $0xad8] sm:$0xff]  ;;  %v2061_v40 = vld [vmem:[#allocation16 + $0x950] sm:$0xff]  ;;  %v1269_v41 = vmul.f32 %v4235_v34, %v4115_v16  ;;  %v2096_v48 = vld [vmem:[#allocation16 + $0xa68] sm:$0xff] }
 0x265   :  { %v4293_v21 = vpop.f32.mrf.mxu2  ;;  %2272 = vmatpush.msrb.mxu1 %v2019_v44  ;;  %1933 = vmatmul.f32.vlgmr.msra.gmra.mxu0 %v4279_v4  ;;  %v2080_v44 = vld [vmem:[#allocation16 + $0x9e8] sm:$0xff] }
 0x266   :  { %v1224_v3 = vpop.f32.mrf.mxu3  ;;  %1956 = vmatmul.f32.vlgmr.msra.gmra.mxu1 %v4284_v54  ;;  %2306 = vmatpush.msra.mxu3 %v2063_v46  ;;  %v1285_v36 = vmul.f32 %v4293_v21, %v4131_v11  ;;  %v1270_v46 = vmul.f32 %v4237_v0, %v4117_v6 }
 0x267   :  { %v1334_v8 = vmul.f32 %v1224_v3, %v4117_v6  ;;  %v1681_v56 = vpop.f32.mrf.mxu1  ;;  %2326 = vmatpush.msra.mxu0 %v2082_v47  ;;  %2349 = vmatpush.msra.mxu1 %v2098_v58  ;;  %v1286_v38 = vmul.f32 %v1224_v3, %v4133_v26  ;;  %v2109_v47 = vld [vmem:[#allocation16 + $0xad0] sm:$0xff]  ;;  %v2060_v58 = vld [vmem:[#allocation16 + $0x948] sm:$0xff]  ;;  %v2095_v3 = vld [vmem:[#allocation16 + $0xa60] sm:$0xff] }
 0x268   :  { %2375 = vmatpush.msra.mxu2 %v2111_v7  ;;  %1913 = vmatmul.f32.gmra.mxu3 %v4289_v37  ;;  %v4313_v26 = vsub.f32 %v1269_v41, %v1285_v36  ;;  %v2079_v7 = vld [vmem:[#allocation16 + $0x9e0] sm:$0xff]  ;;  %v2108_v6 = vld [vmem:[#allocation16 + $0xac8] sm:$0xff]  ;;  %v2078_v36 = vld [vmem:[#allocation16 + $0x9d8] sm:$0xff] }
 0x269   :  { %v4306_v1 = vadd.f32 %v1350_v23, %v1334_v8  ;;  %1982 = vmatmul.f32.gmra.mxu2 %v4295_v55  ;;  %2307 = vmatpush.msra.mxu3 %v2062_v49  ;;  %v383_v23 = vmul.f32 %v3789_v39, %v3815_v50  ;;  %v379_v49 = vmul.f32 %v3829_v61, %v3759_v22  ;;  %v2107_v22 = vld [vmem:[#allocation16 + $0xac0] sm:$0xff]  ;;  %v1750_v61 = vpop.f32.mrf.mxu0 }
 0x26a   :  { %2327 = vmatpush.msra.mxu0 %v2081_v53  ;;  %2350 = vmatpush.msra.mxu1 %v2097_v17  ;;  %v4319_v8 = vsub.f32 %v1270_v46, %v1286_v38  ;;  %v2059_v53 = vld [vmem:[#allocation16 + $0x940] sm:$0xff]  ;;  %v2058_v38 = vld [vmem:[#allocation16 + $0x938] sm:$0xff] }
 0x26b   :  { %2376 = vmatpush.msra.mxu2 %v2110_v28  ;;  %2308 = vmatpush.msra.mxu3 %v2061_v40  ;;  %v2094_v28 = vld [vmem:[#allocation16 + $0xa58] sm:$0xff]  ;;  %v4322_v50 = vadd.f32 %v383_v23, %v379_v49 }
 0x26c   :  { %2328 = vmatpush.msra.mxu0 %v2080_v44  ;;  %2351 = vmatpush.msra.mxu1 %v2096_v48  ;;  %v2093_v44 = vld [vmem:[#allocation16 + $0xa50] sm:$0xff]  ;;  %v2106_v46 = vld [vmem:[#allocation16 + $0xab8] sm:$0xff] }
 0x26d   :  { %v1704_v0 = vpop.f32.mrf.mxu2  ;;  %2377 = vmatpush.msra.mxu2 %v2109_v47  ;;  %2309 = vmatpush.msra.mxu3 %v2060_v58  ;;  %v2057_v47 = vld [vmem:[#allocation16 + $0x930] sm:$0xff]  ;;  %v384_v58 = vmul.f32 %v3787_v27, %v3827_v60  ;;  %v4758_v49 = vld [vmem:[#allocation44_spill] sm:$0xff]  ;;  %v385_v27 = vmul.f32 %v3813_v45, %v3831_v62  ;;  %v381_v60 = vmul.f32 %v3845_v5, %v3799_v42  ;;  %v2103_v45 = vld [vmem:[#allocation16 + $0xaa0] sm:$0xff] }
 0x26e   :  { %v1705_v17 = vadd.f32 %v1704_v0, %v1681_v56  ;;  %2329 = vmatpush.msra.mxu0 %v2079_v7  ;;  %2352 = vmatpush.msra.mxu1 %v2095_v3  ;;  %v1727_v40 = vpop.f32.mrf.mxu3  ;;  %v2077_v56 = vld [vmem:[#allocation16 + $0x9d0] sm:$0xff]  ;;  %v4756_v7 = vld [vmem:[#allocation25_spill] sm:$0xff]  ;;  %v2092_v0 = vld [vmem:[#allocation16 + $0xa48] sm:$0xff] }
 0x26f   :  { %v1684_v41 = vpop.f32.mrf.mxu1  ;;  %2378 = vmatpush.msra.mxu2 %v2108_v6  ;;  %1936 = vmatmul.f32.gmra.mxu0 %v4313_v26  ;;  %v4757_v3 = vld [vmem:[#allocation27_spill] sm:$0xff]  ;;  %v2076_v6 = vld [vmem:[#allocation16 + $0x9c8] sm:$0xff]  ;;  %v4339_v5 = vadd.f32 %v385_v27, %v381_v60 }
 0x270   :  { %v1728_v39 = vadd.f32 %v1727_v40, %v1705_v17  ;;  %1959 = vmatmul.f32.gmra.mxu1 %v4319_v8  ;;  %2310 = vmatpush.msra.mxu3 %v2059_v53  ;;  %v380_v23 = vmul.f32 %v4757_v3, %v4756_v7  ;;  %v2105_v53 = vld [vmem:[#allocation16 + $0xab0] sm:$0xff]  ;;  %v2056_v17 = vld [vmem:[#allocation16 + $0x928] sm:$0xff]  ;;  %v2091_v40 = vld [vmem:[#allocation16 + $0xa40] sm:$0xff] }
 0x271   :  { %2330 = vmatpush.msra.mxu0 %v2078_v36  ;;  %2353 = vmatpush.msra.mxu1 %v2094_v28  ;;  %v2075_v28 = vld [vmem:[#allocation16 + $0x9c0] sm:$0xff]  ;;  %v4759_v42 = vld [vmem:[#allocation42_spill] sm:$0xff]  ;;  %v2073_v7 = vld [vmem:[#allocation16 + $0x9b0] sm:$0xff] }
 0x272   :  { %v1751_v48 = vadd.f32 %v1750_v61, %v1728_v39  ;;  %2379 = vmatpush.msra.mxu2 %v2107_v22  ;;  %2227 = vmatmul.f32.vlgmr.msrb.gmra.mxu3 %v4322_v50  ;;  %v2104_v39 = vld [vmem:[#allocation16 + $0xaa8] sm:$0xff]  ;;  %v4335_v61 = vadd.f32 %v384_v58, %v380_v23  ;;  %v2089_v3 = vld [vmem:[#allocation16 + $0xa30] sm:$0xff] }
 0x273   :  { %2296 = vmatmul.f32.vlgmr.msrb.gmra.mxu2 %v4758_v49  ;;  %2311 = vmatpush.msra.mxu3 %v2058_v38  ;;  %v2055_v38 = vld [vmem:[#allocation16 + $0x920] sm:$0xff]  ;;  %v2053_v23 = vld [vmem:[#allocation16 + $0x910] sm:$0xff] }
 0x274   :  { %2331 = vmatpush.msra.mxu0 %v2077_v56  ;;  %2354 = vmatpush.msra.mxu1 %v2093_v44  ;;  %v2074_v44 = vld [vmem:[#allocation16 + $0x9b8] sm:$0xff]  ;;  %v2101_v60 = vld [vmem:[#allocation16 + $0xa90] sm:$0xff] }
 0x275   :  { %v1707_v36 = vpop.f32.mrf.mxu2  ;;  %2380 = vmatpush.msra.mxu2 %v2106_v46  ;;  %2312 = vmatpush.msra.mxu3 %v2057_v47  ;;  %v2090_v46 = vld [vmem:[#allocation16 + $0xa38] sm:$0xff] }
 0x276   :  { %v1708_v22 = vadd.f32 %v1707_v36, %v1684_v41  ;;  %2332 = vmatpush.msra.mxu0 %v2076_v6  ;;  %2355 = vmatpush.msra.mxu1 %v2092_v0  ;;  %v1730_v62 = vpop.f32.mrf.mxu3  ;;  %v2054_v47 = vld [vmem:[#allocation16 + $0x918] sm:$0xff]  ;;  %v386_v6 = vmul.f32 %v3801_v43, %v3843_v2  ;;  %v4760_v0 = vld [vmem:[#allocation26_spill] sm:$0xff]  ;;  %v1753_v36 = vpop.f32.mrf.mxu0  ;;  %v2071_v43 = vld [vmem:[#allocation16 + $0x9a0] sm:$0xff] }
 0x277   :  { %2381 = vmatpush.msra.mxu2 %v2105_v53  ;;  %2313 = vmatpush.msra.mxu3 %v2056_v17  ;;  %v4761_v53 = vld [vmem:[#allocation28_spill] sm:$0xff]  ;;  %v2087_v2 = vld [vmem:[#allocation16 + $0xa20] sm:$0xff] }
 0x278   :  { %v1773_v56 = vpop.f32.mrf.mxu1  ;;  %2333 = vmatpush.msra.mxu0 %v2075_v28  ;;  %2356 = vmatpush.msra.mxu1 %v2091_v40  ;;  %v1731_v58 = vadd.f32 %v1730_v62, %v1708_v22  ;;  %v382_v17 = vmul.f32 %v4761_v53, %v4760_v0  ;;  %v4762_v28 = vld [vmem:[#allocation51_spill] sm:$0xff]  ;;  %v2072_v40 = vld [vmem:[#allocation16 + $0x9a8] sm:$0xff] }
 0x279   :  { %v1774_v41 = vadd.f32 %v1773_v56, %v1751_v48  ;;  %2382 = vmatpush.msra.mxu2 %v2104_v39  ;;  %2250 = vmatmul.f32.vlgmr.msrb.gmra.mxu0 %v4335_v61  ;;  %v2102_v48 = vld [vmem:[#allocation16 + $0xa98] sm:$0xff]  ;;  %v2088_v22 = vld [vmem:[#allocation16 + $0xa28] sm:$0xff] }
 0x27a   :  { %2273 = vmatmul.f32.vlgmr.msrb.gmra.mxu1 %v4759_v42  ;;  %2314 = vmatpush.msra.mxu3 %v2055_v38  ;;  %v2052_v39 = vld [vmem:[#allocation16 + $0x908] sm:$0xff]  ;;  %v1754_v56 = vadd.f32 %v1753_v36, %v1731_v58  ;;  %v2086_v58 = vld [vmem:[#allocation16 + $0xa18] sm:$0xff]  ;;  %v1321_v36 = vmul.f32 %v4169_v14, %v4031_v32  ;;  %v2129_v32 = vld [vmem:[#allocation16 + $0xb70] sm:$0xff] }
 0x27b   :  { %2334 = vmatpush.msra.mxu0 %v2074_v44  ;;  %2357 = vmatpush.msra.mxu1 %v2090_v46  ;;  %v2100_v46 = vld [vmem:[#allocation16 + $0xa88] sm:$0xff] }
 0x27c   :  { %2383 = vmatpush.msra.mxu2 %v2103_v45  ;;  %2230 = vmatmul.f32.gmra.mxu3 %v4339_v5  ;;  %v4763_v62 = vld [vmem:[#allocation30_spill] sm:$0xff] }
 0x27d   :  { %2299 = vmatmul.f32.gmra.mxu2 %v4762_v28  ;;  %2315 = vmatpush.msra.mxu3 %v2054_v47  ;;  %v4764_v47 = vld [vmem:[#allocation43_spill] sm:$0xff] }
 0x27e   :  { %v1796_v27 = vpop.f32.mrf.mxu2  ;;  %2335 = vmatpush.msra.mxu0 %v2073_v7  ;;  %2358 = vmatpush.msra.mxu1 %v2089_v3  ;;  %v698_v0 = vmul.f32 %v4764_v47, %v4763_v62  ;;  %v4351_v7 = vadd.f32 %v386_v6, %v382_v17  ;;  %v2051_v3 = vld [vmem:[#allocation16 + $0x900] sm:$0xff]  ;;  %v2178_v6 = vld [vmem:[#allocation16 + $0xcf8] sm:$0xff] }
 0x27f   :  { %v4347_v38 = vadd.f32 %v1796_v27, %v1774_v41  ;;  %2384 = vmatpush.msra.mxu2 %v2102_v48  ;;  %2316 = vmatpush.msra.mxu3 %v2053_v23  ;;  %v2070_v41 = vld [vmem:[#allocation16 + $0x998] sm:$0xff]  ;;  %v4765_v48 = vld [vmem:[#allocation34_spill] sm:$0xff]  ;;  %v4768_v62 = vld [vmem:[#allocation29_spill] sm:$0xff] }
 0x280   :  { %v1776_v44 = vpop.f32.mrf.mxu1  ;;  %2336 = vmatpush.msra.mxu0 %v2072_v40  ;;  %2359 = vmatpush.msra.mxu1 %v2088_v22  ;;  %v4766_v23 = vld [vmem:[#allocation38_spill] sm:$0xff]  ;;  %v2099_v40 = vld [vmem:[#allocation16 + $0xa80] sm:$0xff]  ;;  %v2130_v22 = vld [vmem:[#allocation16 + $0xb78] sm:$0xff] }
 0x281   :  { %v1777_v45 = vadd.f32 %v1776_v44, %v1754_v56  ;;  %2385 = vmatpush.msra.mxu2 %v2101_v60  ;;  %2317 = vmatpush.msra.mxu3 %v2052_v39  ;;  %v706_v53 = vmul.f32 %v4766_v23, %v4765_v48  ;;  %v4767_v27 = vld [vmem:[#allocation46_spill] sm:$0xff]  ;;  %v1337_v60 = vmul.f32 %v4139_v13, %v4081_v52  ;;  %v2069_v39 = vld [vmem:[#allocation16 + $0x990] sm:$0xff]  ;;  %v4769_v47 = vld [vmem:[#allocation41_spill] sm:$0xff] }
 0x282   :  { %2337 = vmatpush.msra.mxu0 %v2071_v43  ;;  %2360 = vmatpush.msra.mxu1 %v2087_v2  ;;  %v2085_v56 = vld [vmem:[#allocation16 + $0xa10] sm:$0xff]  ;;  %v2084_v52 = vld [vmem:[#allocation16 + $0xa08] sm:$0xff]  ;;  %v2127_v48 = vld [vmem:[#allocation16 + $0xb60] sm:$0xff] }
 0x283   :  { %2386 = vmatpush.msra.mxu2 %v2100_v46  ;;  %2253 = vmatmul.f32.gmra.mxu0 %v4351_v7  ;;  %v4359_v17 = vadd.f32 %v706_v53, %v698_v0  ;;  %v4365_v2 = vadd.f32 %v1337_v60, %v1321_v36  ;;  %v2177_v44 = vld [vmem:[#allocation16 + $0xcf0] sm:$0xff]  ;;  %v2068_v46 = vld [vmem:[#allocation16 + $0x988] sm:$0xff]  ;;  %v699_v0 = vmul.f32 %v4769_v47, %v4768_v62  ;;  %v4770_v23 = vld [vmem:[#allocation33_spill] sm:$0xff] }
 0x284   :  { %2276 = vmatmul.f32.gmra.mxu1 %v4767_v27  ;;  %2318 = vmatpush.msra.mxu3 %v2051_v3  ;;  %v2128_v13 = vld [vmem:[#allocation16 + $0xb68] sm:$0xff]  ;;  %v4771_v53 = vld [vmem:[#allocation37_spill] sm:$0xff]  ;;  %v4773_v60 = vld [vmem:[#allocation47_spill] sm:$0xff] }
 0x285   :  { %2338 = vmatpush.msra.mxu0 %v2070_v41  ;;  %2361 = vmatpush.msra.mxu1 %v2086_v58  ;;  %v2176_v3 = vld [vmem:[#allocation16 + $0xce8] sm:$0xff]  ;;  %v1320_v41 = vmul.f32 %v4151_v63, %v4002_v57  ;;  %v2083_v58 = vld [vmem:[#allocation16 + $0xa00] sm:$0xff]  ;;  %v707_v36 = vmul.f32 %v4771_v53, %v4770_v23  ;;  %v2145_v23 = vld [vmem:[#allocation16 + $0xbf0] sm:$0xff] }
 0x286   :  { %v1799_v43 = vpop.f32.mrf.mxu2  ;;  %2387 = vmatpush.msra.mxu2 %v2099_v40  ;;  %2395 = vmatpush.msrb.mxu3 %v2130_v22  ;;  %v2146_v40 = vld [vmem:[#allocation16 + $0xbf8] sm:$0xff]  ;;  %v2175_v63 = vld [vmem:[#allocation16 + $0xce0] sm:$0xff]  ;;  %v2161_v53 = vld [vmem:[#allocation16 + $0xc70] sm:$0xff] }
 0x287   :  { %v4363_v14 = vadd.f32 %v1799_v43, %v1777_v45  ;;  %2319 = vmatmul.f32.vlgmr.msra.gmra.mxu3 %v4359_v17  ;;  %2339 = vmatpush.msra.mxu0 %v2069_v39  ;;  %v2067_v45 = vld [vmem:[#allocation16 + $0x980] sm:$0xff]  ;;  %v2162_v22 = vld [vmem:[#allocation16 + $0xc78] sm:$0xff]  ;;  %v4379_v57 = vadd.f32 %v707_v36, %v699_v0 }
 0x288   :  { %2464 = vmatpush.msrb.mxu2 %v2178_v6  ;;  %2362 = vmatpush.msra.mxu1 %v2085_v56  ;;  %v4772_v6 = vld [vmem:[#allocation32_spill] sm:$0xff]  ;;  %v4774_v56 = vld [vmem:[#allocation61_spill] sm:$0xff] }
 0x289   :  { %2388 = vmatmul.f32.vlgmr.msra.gmra.mxu2 %v4365_v2  ;;  %2396 = vmatpush.msrb.mxu3 %v2129_v32  ;;  %v702_v39 = vmul.f32 %v4773_v60, %v4772_v6  ;;  %v4775_v43 = vld [vmem:[#allocation73_spill] sm:$0xff]  ;;  %v2174_v0 = vld [vmem:[#allocation16 + $0xcd8] sm:$0xff]  ;;  %v4780_v60 = vld [vmem:[#allocation83_spill] sm:$0xff] }
 0x28a   :  { %2465 = vmatpush.msrb.mxu2 %v2177_v44  ;;  %2340 = vmatpush.msra.mxu0 %v2068_v46  ;;  %v1336_v32 = vmul.f32 %v4775_v43, %v4774_v56  ;;  %v1329_v44 = vmul.f32 %v4204_v24, %v4059_v20  ;;  %v2126_v46 = vld [vmem:[#allocation16 + $0xb58] sm:$0xff]  ;;  %v2125_v24 = vld [vmem:[#allocation16 + $0xb50] sm:$0xff]  ;;  %v4779_v36 = vld [vmem:[#allocation45_spill] sm:$0xff] }
 0x28b   :  { %2363 = vmatpush.msra.mxu1 %v2084_v52  ;;  %2397 = vmatpush.msrb.mxu3 %v2128_v13  ;;  %v4776_v52 = vld [vmem:[#allocation36_spill] sm:$0xff]  ;;  %v2159_v6 = vld [vmem:[#allocation16 + $0xc60] sm:$0xff]  ;;  %v2172_v56 = vld [vmem:[#allocation16 + $0xcc8] sm:$0xff] }
 0x28c   :  { %2466 = vmatpush.msrb.mxu2 %v2176_v3  ;;  %2341 = vmatpush.msra.mxu0 %v2067_v45  ;;  %v4777_v13 = vld [vmem:[#allocation40_spill] sm:$0xff]  ;;  %v4385_v47 = vadd.f32 %v1336_v32, %v1320_v41  ;;  %v1345_v3 = vmul.f32 %v4147_v10, %v4099_v19  ;;  %v2144_v41 = vld [vmem:[#allocation16 + $0xbe8] sm:$0xff]  ;;  %v2173_v19 = vld [vmem:[#allocation16 + $0xcd0] sm:$0xff] }
 0x28d   :  { %2364 = vmatpush.msra.mxu1 %v2083_v58  ;;  %2398 = vmatpush.msrb.mxu3 %v2127_v48  ;;  %v710_v62 = vmul.f32 %v4777_v13, %v4776_v52  ;;  %v2160_v58 = vld [vmem:[#allocation16 + $0xc68] sm:$0xff]  ;;  %v4778_v48 = vld [vmem:[#allocation31_spill] sm:$0xff]  ;;  %v2123_v43 = vld [vmem:[#allocation16 + $0xb40] sm:$0xff] }
 0x28e   :  { %2418 = vmatpush.msrb.mxu0 %v2146_v40  ;;  %2467 = vmatpush.msrb.mxu2 %v2175_v63  ;;  %v4393_v45 = vadd.f32 %v1345_v3, %v1329_v44  ;;  %v2124_v10 = vld [vmem:[#allocation16 + $0xb48] sm:$0xff]  ;;  %v703_v40 = vmul.f32 %v4779_v36, %v4778_v48  ;;  %v4781_v32 = vld [vmem:[#allocation35_spill] sm:$0xff]  ;;  %v2158_v52 = vld [vmem:[#allocation16 + $0xc58] sm:$0xff] }
 0x28f   :  { %2441 = vmatpush.msrb.mxu1 %v2162_v22  ;;  %2342 = vmatmul.f32.vlgmr.msra.gmra.mxu0 %v4379_v57  ;;  %v4391_v20 = vadd.f32 %v710_v62, %v702_v39  ;;  %v2143_v22 = vld [vmem:[#allocation16 + $0xbe0] sm:$0xff]  ;;  %v1328_v39 = vmul.f32 %v4780_v60, %v4039_v29  ;;  %v4782_v63 = vld [vmem:[#allocation39_spill] sm:$0xff]  ;;  %v4783_v13 = vld [vmem:[#allocation66_spill] sm:$0xff] }
 0x290   :  { %2365 = vmatmul.f32.vlgmr.msra.gmra.mxu1 %v4385_v47  ;;  %2399 = vmatpush.msrb.mxu3 %v2126_v46  ;;  %v711_v44 = vmul.f32 %v4782_v63, %v4781_v32  ;;  %v2142_v46 = vld [vmem:[#allocation16 + $0xbd8] sm:$0xff]  ;;  %v2156_v48 = vld [vmem:[#allocation16 + $0xc48] sm:$0xff]  ;;  %v2169_v36 = vld [vmem:[#allocation16 + $0xcb0] sm:$0xff] }
 0x291   :  { %2419 = vmatpush.msrb.mxu0 %v2145_v23  ;;  %2442 = vmatpush.msrb.mxu1 %v2161_v53  ;;  %v4784_v62 = vld [vmem:[#allocation76_spill] sm:$0xff]  ;;  %v2171_v53 = vld [vmem:[#allocation16 + $0xcc0] sm:$0xff]  ;;  %v2168_v60 = vld [vmem:[#allocation16 + $0xca8] sm:$0xff] }
 0x292   :  { %2468 = vmatpush.msrb.mxu2 %v2174_v0  ;;  %2322 = vmatmul.f32.gmra.mxu3 %v4391_v20  ;;  %v1344_v23 = vmul.f32 %v4784_v62, %v4783_v13  ;;  %v4405_v29 = vadd.f32 %v711_v44, %v703_v40  ;;  %v2122_v3 = vld [vmem:[#allocation16 + $0xb38] sm:$0xff]  ;;  %v2120_v40 = vld [vmem:[#allocation16 + $0xb28] sm:$0xff]  ;;  %v2167_v32 = vld [vmem:[#allocation16 + $0xca0] sm:$0xff] }
 0x293   :  { %2391 = vmatmul.f32.gmra.mxu2 %v4393_v45  ;;  %2400 = vmatpush.msrb.mxu3 %v2125_v24  ;;  %v2141_v24 = vld [vmem:[#allocation16 + $0xbd0] sm:$0xff]  ;;  %v2118_v63 = vld [vmem:[#allocation16 + $0xb18] sm:$0xff]  ;;  %v2136_v62 = vld [vmem:[#allocation16 + $0xba8] sm:$0xff] }
 0x294   :  { %2420 = vmatpush.msrb.mxu0 %v2144_v41  ;;  %2443 = vmatpush.msrb.mxu1 %v2160_v58  ;;  %v4407_v0 = vadd.f32 %v1344_v23, %v1328_v39  ;;  %v2157_v41 = vld [vmem:[#allocation16 + $0xc50] sm:$0xff]  ;;  %v2170_v58 = vld [vmem:[#allocation16 + $0xcb8] sm:$0xff]  ;;  %v2119_v39 = vld [vmem:[#allocation16 + $0xb20] sm:$0xff] }
 0x295   :  { %2469 = vmatpush.msrb.mxu2 %v2173_v19  ;;  %2401 = vmatpush.msrb.mxu3 %v2124_v10  ;;  %v2121_v19 = vld [vmem:[#allocation16 + $0xb30] sm:$0xff]  ;;  %v2140_v10 = vld [vmem:[#allocation16 + $0xbc8] sm:$0xff] }
 0x296   :  { %2421 = vmatpush.msrb.mxu0 %v2143_v22  ;;  %2444 = vmatpush.msrb.mxu1 %v2159_v6  ;;  %v2139_v22 = vld [vmem:[#allocation16 + $0xbc0] sm:$0xff]  ;;  %v2137_v44 = vld [vmem:[#allocation16 + $0xbb0] sm:$0xff]  ;;  %v2152_v23 = vld [vmem:[#allocation16 + $0xc28] sm:$0xff] }
 0x297   :  { %2470 = vmatpush.msrb.mxu2 %v2172_v56  ;;  %2402 = vmatpush.msrb.mxu3 %v2123_v43  ;;  %v2155_v6 = vld [vmem:[#allocation16 + $0xc40] sm:$0xff]  ;;  %v2138_v56 = vld [vmem:[#allocation16 + $0xbb8] sm:$0xff]  ;;  %v2117_v13 = vld [vmem:[#allocation16 + $0xb10] sm:$0xff] }
 0x298   :  { %2422 = vmatpush.msrb.mxu0 %v2142_v46  ;;  %2445 = vmatpush.msrb.mxu1 %v2158_v52  ;;  %v2154_v43 = vld [vmem:[#allocation16 + $0xc38] sm:$0xff]  ;;  %v2153_v46 = vld [vmem:[#allocation16 + $0xc30] sm:$0xff] }
 0x299   :  { %2471 = vmatpush.msrb.mxu2 %v2171_v53  ;;  %2345 = vmatmul.f32.gmra.mxu0 %v4405_v29  ;;  %v2166_v52 = vld [vmem:[#allocation16 + $0xc98] sm:$0xff]  ;;  %v2165_v53 = vld [vmem:[#allocation16 + $0xc90] sm:$0xff] }
 0x29a   :  { %2368 = vmatmul.f32.gmra.mxu1 %v4407_v0  ;;  %2403 = vmatpush.msrb.mxu3 %v2122_v3  ;;  %v2116_v3 = vld [vmem:[#allocation16 + $0xb08] sm:$0xff] }
 0x29b   :  { %2423 = vmatpush.msrb.mxu0 %v2141_v24  ;;  %2446 = vmatpush.msrb.mxu1 %v2157_v41  ;;  %v4785_v24 = vld [vmem:[#allocation54_spill] sm:$0xff] }
 0x29c   :  { %2472 = vmatpush.msrb.mxu2 %v2170_v58  ;;  %2404 = vmatpush.msrb.mxu3 %v2121_v19  ;;  %v4786_v41 = vld [vmem:[#allocation82_spill] sm:$0xff]  ;;  %v2135_v19 = vld [vmem:[#allocation16 + $0xba0] sm:$0xff] }
 0x29d   :  { %2424 = vmatpush.msrb.mxu0 %v2140_v10  ;;  %2447 = vmatpush.msrb.mxu1 %v2156_v48  ;;  %v1322_v58 = vmul.f32 %v4786_v41, %v4785_v24  ;;  %v2151_v10 = vld [vmem:[#allocation16 + $0xc20] sm:$0xff]  ;;  %v1325_v48 = vmul.f32 %v4257_v51, %v4107_v18  ;;  %v2194_v18 = vld [vmem:[#allocation16 + $0xd78] sm:$0xff] }
 0x29e   :  { %2473 = vmatpush.msrb.mxu2 %v2169_v36  ;;  %2405 = vmatpush.msrb.mxu3 %v2120_v40  ;;  %v2164_v36 = vld [vmem:[#allocation16 + $0xc88] sm:$0xff]  ;;  %v2115_v40 = vld [vmem:[#allocation16 + $0xb00] sm:$0xff] }
 0x29f   :  { %2425 = vmatpush.msrb.mxu0 %v2139_v22  ;;  %2448 = vmatpush.msrb.mxu1 %v2155_v6  ;;  %v4787_v22 = vld [vmem:[#allocation65_spill] sm:$0xff]  ;;  %v4788_v6 = vld [vmem:[#allocation75_spill] sm:$0xff] }
 0x2a0   :  { %2474 = vmatpush.msrb.mxu2 %v2168_v60  ;;  %2406 = vmatpush.msrb.mxu3 %v2119_v39  ;;  %v1338_v60 = vmul.f32 %v4788_v6, %v4787_v22  ;;  %v2134_v39 = vld [vmem:[#allocation16 + $0xb98] sm:$0xff]  ;;  %v4792_v24 = vld [vmem:[#allocation93_spill] sm:$0xff] }
 0x2a1   :  { %2426 = vmatpush.msrb.mxu0 %v2138_v56  ;;  %2449 = vmatpush.msrb.mxu1 %v2154_v43  ;;  %v2150_v56 = vld [vmem:[#allocation16 + $0xc18] sm:$0xff]  ;;  %v1341_v43 = vmul.f32 %v4227_v25, %v4123_v15  ;;  %v4789_v15 = vld [vmem:[#allocation50_spill] sm:$0xff]  ;;  %v4790_v25 = vld [vmem:[#allocation79_spill] sm:$0xff] }
 0x2a2   :  { %2475 = vmatpush.msrb.mxu2 %v2167_v32  ;;  %2407 = vmatpush.msrb.mxu3 %v2118_v63  ;;  %v2163_v32 = vld [vmem:[#allocation16 + $0xc80] sm:$0xff]  ;;  %v4419_v63 = vadd.f32 %v1338_v60, %v1322_v58  ;;  %v2148_v58 = vld [vmem:[#allocation16 + $0xc08] sm:$0xff]  ;;  %v4795_v6 = vld [vmem:[#allocation60_spill] sm:$0xff] }
 0x2a3   :  { %2427 = vmatpush.msrb.mxu0 %v2137_v44  ;;  %2450 = vmatpush.msrb.mxu1 %v2153_v46  ;;  %v4421_v51 = vadd.f32 %v1341_v43, %v1325_v48  ;;  %v2593_v44 = vld [vmem:[#allocation16 + $0xef8] sm:$0xff]  ;;  %v2133_v46 = vld [vmem:[#allocation16 + $0xb90] sm:$0xff]  ;;  %v4794_v48 = vld [vmem:[#allocation74_spill] sm:$0xff] }
 0x2a4   :  { %2476 = vmatpush.msrb.mxu2 %v2166_v52  ;;  %2408 = vmatpush.msrb.mxu3 %v2117_v13  ;;  %v2149_v52 = vld [vmem:[#allocation16 + $0xc10] sm:$0xff]  ;;  %v2131_v22 = vld [vmem:[#allocation16 + $0xb80] sm:$0xff]  ;;  %v4798_v43 = vld [vmem:[#allocation90_spill] sm:$0xff] }
 0x2a5   :  { %2428 = vmatpush.msrb.mxu0 %v2136_v62  ;;  %2451 = vmatpush.msrb.mxu1 %v2152_v23  ;;  %v2193_v13 = vld [vmem:[#allocation16 + $0xd70] sm:$0xff]  ;;  %v1323_v62 = vmul.f32 %v4790_v25, %v4789_v15  ;;  %v4796_v60 = vld [vmem:[#allocation89_spill] sm:$0xff]  ;;  %v4800_v15 = vld [vmem:[#allocation78_spill] sm:$0xff] }
 0x2a6   :  { %2477 = vmatpush.msrb.mxu2 %v2165_v53  ;;  %2409 = vmatpush.msrb.mxu3 %v2116_v3  ;;  %v2592_v23 = vld [vmem:[#allocation16 + $0xef0] sm:$0xff]  ;;  %v2132_v53 = vld [vmem:[#allocation16 + $0xb88] sm:$0xff] }
 0x2a7   :  { %2429 = vmatpush.msrb.mxu0 %v2135_v19  ;;  %2452 = vmatpush.msrb.mxu1 %v2151_v10  ;;  %v4791_v3 = vld [vmem:[#allocation71_spill] sm:$0xff]  ;;  %v2192_v19 = vld [vmem:[#allocation16 + $0xd68] sm:$0xff] }
 0x2a8   :  { %2478 = vmatpush.msrb.mxu2 %v2164_v36  ;;  %2410 = vmatpush.msrb.mxu3 %v2115_v40  ;;  %v1324_v41 = vmul.f32 %v4792_v24, %v4791_v3  ;;  %v4793_v10 = vld [vmem:[#allocation62_spill] sm:$0xff]  ;;  %v2210_v24 = vld [vmem:[#allocation16 + $0xdf8] sm:$0xff] }
 0x2a9   :  { %2430 = vmatpush.msrb.mxu0 %v2134_v39  ;;  %2453 = vmatpush.msrb.mxu1 %v2150_v56  ;;  %v1339_v36 = vmul.f32 %v4794_v48, %v4793_v10  ;;  %v2591_v40 = vld [vmem:[#allocation16 + $0xee8] sm:$0xff]  ;;  %v1330_v39 = vmul.f32 %v4796_v60, %v4795_v6  ;;  %v4797_v56 = vld [vmem:[#allocation72_spill] sm:$0xff]  ;;  %v4802_v48 = vld [vmem:[#allocation85_spill] sm:$0xff]  ;;  %v1332_v6 = vmul.f32 %v4266_v9, %v4111_v30 }
 0x2aa   :  { %2479 = vmatpush.msrb.mxu2 %v2163_v32  ;;  %2411 = vmatmul.f32.vlgmr.msrb.gmra.mxu3 %v4419_v63  ;;  %v1340_v32 = vmul.f32 %v4798_v43, %v4797_v56  ;;  %v2577_v10 = vld [vmem:[#allocation16 + $0xe78] sm:$0xff]  ;;  %v2588_v60 = vld [vmem:[#allocation16 + $0xed0] sm:$0xff]  ;;  %v4804_v43 = vld [vmem:[#allocation77_spill] sm:$0xff] }
 0x2ab   :  { %2480 = vmatmul.f32.vlgmr.msrb.gmra.mxu2 %v4421_v51  ;;  %2487 = vmatpush.msra.mxu3 %v2194_v18  ;;  %v2147_v18 = vld [vmem:[#allocation16 + $0xc00] sm:$0xff]  ;;  %v4803_v56 = vld [vmem:[#allocation67_spill] sm:$0xff] }
 0x2ac   :  { %2809 = vmatpush.msra.mxu2 %v2593_v44  ;;  %2431 = vmatpush.msrb.mxu0 %v2133_v46  ;;  %v4435_v44 = vadd.f32 %v1339_v36, %v1323_v62  ;;  %v1333_v46 = vmul.f32 %v4293_v21, %v4115_v16  ;;  %v4441_v3 = vadd.f32 %v1340_v32, %v1324_v41  ;;  %v2590_v62 = vld [vmem:[#allocation16 + $0xee0] sm:$0xff]  ;;  %v2190_v21 = vld [vmem:[#allocation16 + $0xd58] sm:$0xff]  ;;  %v2209_v41 = vld [vmem:[#allocation16 + $0xdf0] sm:$0xff] }
 0x2ad   :  { %2454 = vmatpush.msrb.mxu1 %v2149_v52  ;;  %2488 = vmatpush.msra.mxu3 %v2193_v13  ;;  %v2191_v52 = vld [vmem:[#allocation16 + $0xd60] sm:$0xff]  ;;  %v4799_v13 = vld [vmem:[#allocation70_spill] sm:$0xff]  ;;  %v1347_v32 = vmul.f32 %v4804_v43, %v4803_v56  ;;  %v2202_v56 = vld [vmem:[#allocation16 + $0xdb8] sm:$0xff] }
 0x2ae   :  { %2810 = vmatpush.msra.mxu2 %v2592_v23  ;;  %2432 = vmatpush.msrb.mxu0 %v2132_v53  ;;  %v1346_v25 = vmul.f32 %v4800_v15, %v4799_v13  ;;  %v1349_v23 = vmul.f32 %v4235_v34, %v4131_v11  ;;  %v2589_v11 = vld [vmem:[#allocation16 + $0xed8] sm:$0xff]  ;;  %v2189_v34 = vld [vmem:[#allocation16 + $0xd50] sm:$0xff]  ;;  %v2587_v13 = vld [vmem:[#allocation16 + $0xec8] sm:$0xff] }
 0x2af   :  { %2455 = vmatpush.msrb.mxu1 %v2148_v58  ;;  %2489 = vmatpush.msra.mxu3 %v2192_v19  ;;  %v2576_v58 = vld [vmem:[#allocation16 + $0xe70] sm:$0xff]  ;;  %v2187_v9 = vld [vmem:[#allocation16 + $0xd40] sm:$0xff]  ;;  %v2569_v43 = vld [vmem:[#allocation16 + $0xe38] sm:$0xff] }
 0x2b0   :  { %2811 = vmatpush.msra.mxu2 %v2591_v40  ;;  %2433 = vmatpush.msrb.mxu0 %v2131_v22  ;;  %v4447_v16 = vadd.f32 %v1346_v25, %v1330_v39  ;;  %v4449_v53 = vadd.f32 %v1349_v23, %v1333_v46  ;;  %v4801_v19 = vld [vmem:[#allocation55_spill] sm:$0xff]  ;;  %v2208_v40 = vld [vmem:[#allocation16 + $0xde8] sm:$0xff]  ;;  %v2574_v46 = vld [vmem:[#allocation16 + $0xe60] sm:$0xff] }
 0x2b1   :  { %2456 = vmatpush.msrb.mxu1 %v2147_v18  ;;  %2434 = vmatmul.f32.vlgmr.msrb.gmra.mxu0 %v4435_v44  ;;  %v1331_v36 = vmul.f32 %v4802_v48, %v4801_v19  ;;  %v2575_v22 = vld [vmem:[#allocation16 + $0xe68] sm:$0xff]  ;;  %v2207_v18 = vld [vmem:[#allocation16 + $0xde0] sm:$0xff]  ;;  %v2206_v25 = vld [vmem:[#allocation16 + $0xdd8] sm:$0xff] }
 0x2b2   :  { %2457 = vmatmul.f32.vlgmr.msrb.gmra.mxu1 %v4441_v3  ;;  %2490 = vmatpush.msra.mxu3 %v2191_v52  ;;  %v2188_v39 = vld [vmem:[#allocation16 + $0xd48] sm:$0xff]  ;;  %v1348_v52 = vmul.f32 %v4231_v31, %v4127_v35  ;;  %v2186_v23 = vld [vmem:[#allocation16 + $0xd38] sm:$0xff]  ;;  %v2205_v35 = vld [vmem:[#allocation16 + $0xdd0] sm:$0xff] }
 0x2b3   :  { %2510 = vmatpush.msra.mxu0 %v2210_v24  ;;  %2786 = vmatpush.msra.mxu1 %v2577_v10  ;;  %v4461_v30 = vadd.f32 %v1347_v32, %v1331_v36  ;;  %v2573_v24 = vld [vmem:[#allocation16 + $0xe58] sm:$0xff]  ;;  %v2586_v10 = vld [vmem:[#allocation16 + $0xec0] sm:$0xff]  ;;  %v2572_v31 = vld [vmem:[#allocation16 + $0xe50] sm:$0xff] }
 0x2b4   :  { %2812 = vmatpush.msra.mxu2 %v2590_v62  ;;  %2414 = vmatmul.f32.gmra.mxu3 %v4447_v16  ;;  %v4463_v15 = vadd.f32 %v1348_v52, %v1332_v6  ;;  %v2585_v62 = vld [vmem:[#allocation16 + $0xeb8] sm:$0xff]  ;;  %v2184_v19 = vld [vmem:[#allocation16 + $0xd28] sm:$0xff]  ;;  %v2582_v32 = vld [vmem:[#allocation16 + $0xea0] sm:$0xff] }
 0x2b5   :  { %2483 = vmatmul.f32.gmra.mxu2 %v4449_v53  ;;  %2491 = vmatpush.msra.mxu3 %v2190_v21  ;;  %v2185_v21 = vld [vmem:[#allocation16 + $0xd30] sm:$0xff]  ;;  %v2583_v6 = vld [vmem:[#allocation16 + $0xea8] sm:$0xff]  ;;  %v2581_v52 = vld [vmem:[#allocation16 + $0xe98] sm:$0xff] }
 0x2b6   :  { %2511 = vmatpush.msra.mxu0 %v2209_v41  ;;  %2787 = vmatpush.msra.mxu1 %v2576_v58  ;;  %v2204_v41 = vld [vmem:[#allocation16 + $0xdc8] sm:$0xff] }
 0x2b7   :  { %2813 = vmatpush.msra.mxu2 %v2589_v11  ;;  %2492 = vmatpush.msra.mxu3 %v2189_v34  ;;  %v2571_v58 = vld [vmem:[#allocation16 + $0xe48] sm:$0xff]  ;;  %v2584_v34 = vld [vmem:[#allocation16 + $0xeb0] sm:$0xff] }
 0x2b8   :  { %2512 = vmatpush.msra.mxu0 %v2208_v40  ;;  %2788 = vmatpush.msra.mxu1 %v2575_v22  ;;  %v2203_v40 = vld [vmem:[#allocation16 + $0xdc0] sm:$0xff] }
 0x2b9   :  { %2814 = vmatpush.msra.mxu2 %v2588_v60  ;;  %2493 = vmatpush.msra.mxu3 %v2188_v39  ;;  %v2570_v22 = vld [vmem:[#allocation16 + $0xe40] sm:$0xff] }
 0x2ba   :  { %2513 = vmatpush.msra.mxu0 %v2207_v18  ;;  %2789 = vmatpush.msra.mxu1 %v2574_v46  ;;  %v2183_v60 = vld [vmem:[#allocation16 + $0xd20] sm:$0xff]  ;;  %v2182_v18 = vld [vmem:[#allocation16 + $0xd18] sm:$0xff]  ;;  %v2568_v46 = vld [vmem:[#allocation16 + $0xe30] sm:$0xff] }
 0x2bb   :  { %2815 = vmatpush.msra.mxu2 %v2587_v13  ;;  %2437 = vmatmul.f32.gmra.mxu0 %v4461_v30  ;;  %v2181_v13 = vld [vmem:[#allocation16 + $0xd10] sm:$0xff] }
 0x2bc   :  { %2460 = vmatmul.f32.gmra.mxu1 %v4463_v15  ;;  %2494 = vmatpush.msra.mxu3 %v2187_v9  ;;  %v2200_v9 = vld [vmem:[#allocation16 + $0xda8] sm:$0xff] }
 0x2bd   :  { %2514 = vmatpush.msra.mxu0 %v2206_v25  ;;  %2790 = vmatpush.msra.mxu1 %v2573_v24  ;;  %v2567_v25 = vld [vmem:[#allocation16 + $0xe28] sm:$0xff]  ;;  %v2580_v24 = vld [vmem:[#allocation16 + $0xe90] sm:$0xff] }
 0x2be   :  { %2816 = vmatpush.msra.mxu2 %v2586_v10  ;;  %2495 = vmatpush.msra.mxu3 %v2186_v23  ;;  %v1819_v11 = vpop.f32.mrf.mxu3  ;;  %v1842_v36 = vpop.f32.mrf.mxu0  ;;  %v2180_v10 = vld [vmem:[#allocation16 + $0xd08] sm:$0xff] }
 0x2bf   :  { %2515 = vmatpush.msra.mxu0 %v2205_v35  ;;  %2791 = vmatpush.msra.mxu1 %v2572_v31  ;;  %v1820_v48 = vadd.f32 %v1819_v11, %v4347_v38  ;;  %v2201_v38 = vld [vmem:[#allocation16 + $0xdb0] sm:$0xff]  ;;  %v2199_v35 = vld [vmem:[#allocation16 + $0xda0] sm:$0xff]  ;;  %v2198_v11 = vld [vmem:[#allocation16 + $0xd98] sm:$0xff] }
 0x2c0   :  { %2817 = vmatpush.msra.mxu2 %v2585_v62  ;;  %2496 = vmatpush.msra.mxu3 %v2185_v21  ;;  %v2566_v31 = vld [vmem:[#allocation16 + $0xe20] sm:$0xff]  ;;  %v2579_v21 = vld [vmem:[#allocation16 + $0xe88] sm:$0xff] }
 0x2c1   :  { %2516 = vmatpush.msra.mxu0 %v2204_v41  ;;  %2792 = vmatpush.msra.mxu1 %v2571_v58  ;;  %v4468_v39 = vadd.f32 %v1842_v36, %v1820_v48  ;;  %v2179_v41 = vld [vmem:[#allocation16 + $0xd00] sm:$0xff]  ;;  %v2609_v36 = vld [vmem:[#allocation16 + $0xf78] sm:$0xff] }
 0x2c2   :  { %2818 = vmatpush.msra.mxu2 %v2584_v34  ;;  %2497 = vmatpush.msra.mxu3 %v2184_v19  ;;  %v2565_v34 = vld [vmem:[#allocation16 + $0xe18] sm:$0xff]  ;;  %v2578_v48 = vld [vmem:[#allocation16 + $0xe80] sm:$0xff] }
 0x2c3   :  { %2517 = vmatpush.msra.mxu0 %v2203_v40  ;;  %2793 = vmatpush.msra.mxu1 %v2570_v22  ;;  %v4805_v40 = vld [vmem:[#allocation49_spill] sm:$0xff]  ;;  %v2657_v22 = vld [vmem:[#allocation16 + $0x10f8] sm:$0xff] }
 0x2c4   :  { %2819 = vmatpush.msra.mxu2 %v2583_v6  ;;  %2498 = vmatpush.msra.mxu3 %v2183_v60  ;;  %v2197_v6 = vld [vmem:[#allocation16 + $0xd90] sm:$0xff] }
 0x2c5   :  { %2518 = vmatpush.msra.mxu0 %v2202_v56  ;;  %2794 = vmatpush.msra.mxu1 %v2569_v43  ;;  %v2564_v60 = vld [vmem:[#allocation16 + $0xe10] sm:$0xff] }
 0x2c6   :  { %2820 = vmatpush.msra.mxu2 %v2582_v32  ;;  %2499 = vmatpush.msra.mxu3 %v2182_v18  ;;  %v2608_v56 = vld [vmem:[#allocation16 + $0xf70] sm:$0xff]  ;;  %v2196_v32 = vld [vmem:[#allocation16 + $0xd88] sm:$0xff] }
 0x2c7   :  { %2519 = vmatpush.msra.mxu0 %v2201_v38  ;;  %2795 = vmatpush.msra.mxu1 %v2568_v46  ;;  %v1822_v23 = vpop.f32.mrf.mxu3  ;;  %v2656_v43 = vld [vmem:[#allocation16 + $0x10f0] sm:$0xff]  ;;  %v2563_v18 = vld [vmem:[#allocation16 + $0xe08] sm:$0xff]  ;;  %v2195_v46 = vld [vmem:[#allocation16 + $0xd80] sm:$0xff] }
 0x2c8   :  { %2821 = vmatpush.msra.mxu2 %v2581_v52  ;;  %2500 = vmatpush.msra.mxu3 %v2181_v13  ;;  %v1823_v62 = vadd.f32 %v1822_v23, %v4363_v14  ;;  %v1845_v58 = vpop.f32.mrf.mxu0  ;;  %v2534_v14 = vadd.f32 %v4335_v61, %v4805_v40  ;;  %v2607_v38 = vld [vmem:[#allocation16 + $0xf68] sm:$0xff]  ;;  %v2562_v52 = vld [vmem:[#allocation16 + $0xe00] sm:$0xff] }
 0x2c9   :  { %2520 = vmatpush.msra.mxu0 %v2200_v9  ;;  %2796 = vmatpush.msra.mxu1 %v2567_v25  ;;  %v2655_v61 = vld [vmem:[#allocation16 + $0x10e8] sm:$0xff]  ;;  %v2606_v13 = vld [vmem:[#allocation16 + $0xf60] sm:$0xff]  ;;  %v4806_v9 = vld [vmem:[#allocation48_spill] sm:$0xff] }
 0x2ca   :  { %2822 = vmatpush.msra.mxu2 %v2580_v24  ;;  %2501 = vmatpush.msra.mxu3 %v2180_v10  ;;  %v4471_v19 = vadd.f32 %v1845_v58, %v1823_v62  ;;  %v2533_v25 = vadd.f32 %v4322_v50, %v4806_v9  ;;  %v2625_v24 = vld [vmem:[#allocation16 + $0xff8] sm:$0xff]  ;;  %v2654_v23 = vld [vmem:[#allocation16 + $0x10e0] sm:$0xff]  ;;  %v2604_v58 = vld [vmem:[#allocation16 + $0xf50] sm:$0xff] }
 0x2cb   :  { %2521 = vmatpush.msra.mxu0 %v2199_v35  ;;  %2797 = vmatpush.msra.mxu1 %v2566_v31  ;;  %v2641_v10 = vld [vmem:[#allocation16 + $0x1078] sm:$0xff]  ;;  %v4807_v31 = vld [vmem:[#allocation57_spill] sm:$0xff]  ;;  %v2635_v9 = vld [vmem:[#allocation16 + $0x1048] sm:$0xff] }
 0x2cc   :  { %2823 = vmatpush.msra.mxu2 %v2579_v21  ;;  %2502 = vmatpush.msra.mxu3 %v2179_v41  ;;  %v2605_v35 = vld [vmem:[#allocation16 + $0xf58] sm:$0xff]  ;;  %v2548_v62 = vadd.f32 %v4351_v7, %v4807_v31  ;;  %v2624_v21 = vld [vmem:[#allocation16 + $0xff0] sm:$0xff]  ;;  %v2622_v40 = vld [vmem:[#allocation16 + $0xfe0] sm:$0xff] }
 0x2cd   :  { %2522 = vmatpush.msra.mxu0 %v2198_v11  ;;  %2798 = vmatpush.msra.mxu1 %v2565_v34  ;;  %v2640_v41 = vld [vmem:[#allocation16 + $0x1070] sm:$0xff]  ;;  %v2653_v50 = vld [vmem:[#allocation16 + $0x10d8] sm:$0xff]  ;;  %v2623_v11 = vld [vmem:[#allocation16 + $0xfe8] sm:$0xff] }
 0x2ce   :  { %2824 = vmatpush.msra.mxu2 %v2578_v48  ;;  %2503 = vmatmul.f32.vlgmr.msra.gmra.mxu3 %v4273_v12  ;;  %v2639_v34 = vld [vmem:[#allocation16 + $0x1068] sm:$0xff]  ;;  %v2652_v48 = vld [vmem:[#allocation16 + $0x10d0] sm:$0xff]  ;;  %v2617_v31 = vld [vmem:[#allocation16 + $0xfb8] sm:$0xff] }
 0x2cf   :  { %2825 = vmatmul.f32.vlgmr.msra.gmra.mxu2 %v2534_v14  ;;  %2832 = vmatpush.msrb.mxu3 %v2609_v36  ;;  %v2603_v36 = vld [vmem:[#allocation16 + $0xf48] sm:$0xff]  ;;  %v2638_v14 = vld [vmem:[#allocation16 + $0x1060] sm:$0xff] }
 0x2d0   :  { %2901 = vmatpush.msrb.mxu2 %v2657_v22  ;;  %2523 = vmatpush.msra.mxu0 %v2197_v6  ;;  %v2651_v7 = vld [vmem:[#allocation16 + $0x10c8] sm:$0xff]  ;;  %v2602_v22 = vld [vmem:[#allocation16 + $0xf40] sm:$0xff]  ;;  %v4808_v6 = vld [vmem:[#allocation56_spill] sm:$0xff] }
 0x2d1   :  { %2799 = vmatpush.msra.mxu1 %v2564_v60  ;;  %2833 = vmatpush.msrb.mxu3 %v2608_v56  ;;  %v2547_v60 = vadd.f32 %v4339_v5, %v4808_v6  ;;  %v2621_v56 = vld [vmem:[#allocation16 + $0xfd8] sm:$0xff]  ;;  %v2648_v5 = vld [vmem:[#allocation16 + $0x10b0] sm:$0xff]  ;;  %v2643_v6 = vld [vmem:[#allocation16 + $0x1088] sm:$0xff] }
 0x2d2   :  { %2902 = vmatpush.msrb.mxu2 %v2656_v43  ;;  %2524 = vmatpush.msra.mxu0 %v2196_v32  ;;  %v2637_v43 = vld [vmem:[#allocation16 + $0x1058] sm:$0xff]  ;;  %v2650_v32 = vld [vmem:[#allocation16 + $0x10c0] sm:$0xff] }
 0x2d3   :  { %2800 = vmatpush.msra.mxu1 %v2563_v18  ;;  %2834 = vmatpush.msrb.mxu3 %v2607_v38  ;;  %v2601_v18 = vld [vmem:[#allocation16 + $0xf38] sm:$0xff]  ;;  %v2620_v38 = vld [vmem:[#allocation16 + $0xfd0] sm:$0xff] }
 0x2d4   :  { %2903 = vmatpush.msrb.mxu2 %v2655_v61  ;;  %2525 = vmatpush.msra.mxu0 %v2195_v46  ;;  %v2636_v61 = vld [vmem:[#allocation16 + $0x1050] sm:$0xff]  ;;  %v2649_v46 = vld [vmem:[#allocation16 + $0x10b8] sm:$0xff] }
 0x2d5   :  { %2801 = vmatpush.msra.mxu1 %v2562_v52  ;;  %2526 = vmatmul.f32.vlgmr.msra.gmra.mxu0 %v4253_v59  ;;  %v2600_v52 = vld [vmem:[#allocation16 + $0xf30] sm:$0xff] }
 0x2d6   :  { %2802 = vmatmul.f32.vlgmr.msra.gmra.mxu1 %v2533_v25  ;;  %2835 = vmatpush.msrb.mxu3 %v2606_v13  ;;  %v2619_v13 = vld [vmem:[#allocation16 + $0xfc8] sm:$0xff] }
 0x2d7   :  { %2855 = vmatpush.msrb.mxu0 %v2625_v24  ;;  %2878 = vmatpush.msrb.mxu1 %v2641_v10  ;;  %v2599_v25 = vld [vmem:[#allocation16 + $0xf28] sm:$0xff]  ;;  %v2618_v24 = vld [vmem:[#allocation16 + $0xfc0] sm:$0xff] }
 0x2d8   :  { %2904 = vmatpush.msrb.mxu2 %v2654_v23  ;;  %2506 = vmatmul.f32.gmra.mxu3 %v4306_v1  ;;  %v2634_v10 = vld [vmem:[#allocation16 + $0x1040] sm:$0xff]  ;;  %v2647_v23 = vld [vmem:[#allocation16 + $0x10a8] sm:$0xff] }
 0x2d9   :  { %2828 = vmatmul.f32.gmra.mxu2 %v2548_v62  ;;  %2836 = vmatpush.msrb.mxu3 %v2605_v35  ;;  %v2598_v35 = vld [vmem:[#allocation16 + $0xf20] sm:$0xff]  ;;  %v2633_v62 = vld [vmem:[#allocation16 + $0x1038] sm:$0xff] }
 0x2da   :  { %2856 = vmatpush.msrb.mxu0 %v2624_v21  ;;  %2879 = vmatpush.msrb.mxu1 %v2640_v41  ;;  %v2646_v21 = vld [vmem:[#allocation16 + $0x10a0] sm:$0xff]  ;;  %v2597_v41 = vld [vmem:[#allocation16 + $0xf18] sm:$0xff] }
 0x2db   :  { %2905 = vmatpush.msrb.mxu2 %v2653_v50  ;;  %2837 = vmatpush.msrb.mxu3 %v2604_v58  ;;  %v2616_v50 = vld [vmem:[#allocation16 + $0xfb0] sm:$0xff] }
 0x2dc   :  { %2857 = vmatpush.msrb.mxu0 %v2623_v11  ;;  %2880 = vmatpush.msrb.mxu1 %v2639_v34  ;;  %v2632_v58 = vld [vmem:[#allocation16 + $0x1030] sm:$0xff]  ;;  %v2645_v11 = vld [vmem:[#allocation16 + $0x1098] sm:$0xff] }
 0x2dd   :  { %2906 = vmatpush.msrb.mxu2 %v2652_v48  ;;  %2838 = vmatpush.msrb.mxu3 %v2603_v36  ;;  %v2596_v34 = vld [vmem:[#allocation16 + $0xf10] sm:$0xff]  ;;  %v2615_v48 = vld [vmem:[#allocation16 + $0xfa8] sm:$0xff] }
 0x2de   :  { %2858 = vmatpush.msrb.mxu0 %v2622_v40  ;;  %2881 = vmatpush.msrb.mxu1 %v2638_v14  ;;  %v2631_v36 = vld [vmem:[#allocation16 + $0x1028] sm:$0xff]  ;;  %v2644_v40 = vld [vmem:[#allocation16 + $0x1090] sm:$0xff] }
 0x2df   :  { %2907 = vmatpush.msrb.mxu2 %v2651_v7  ;;  %2529 = vmatmul.f32.gmra.mxu0 %v4291_v33  ;;  %v2595_v14 = vld [vmem:[#allocation16 + $0xf08] sm:$0xff]  ;;  %v2614_v7 = vld [vmem:[#allocation16 + $0xfa0] sm:$0xff] }
 0x2e0   :  { %2805 = vmatmul.f32.gmra.mxu1 %v2547_v60  ;;  %2839 = vmatpush.msrb.mxu3 %v2602_v22  ;;  %v2630_v22 = vld [vmem:[#allocation16 + $0x1020] sm:$0xff] }
 0x2e1   :  { %2859 = vmatpush.msrb.mxu0 %v2621_v56  ;;  %2882 = vmatpush.msrb.mxu1 %v2637_v43  ;;  %v2594_v60 = vld [vmem:[#allocation16 + $0xf00] sm:$0xff]  ;;  %v2613_v56 = vld [vmem:[#allocation16 + $0xf98] sm:$0xff] }
 0x2e2   :  { %2908 = vmatpush.msrb.mxu2 %v2650_v32  ;;  %2840 = vmatpush.msrb.mxu3 %v2601_v18  ;;  %v2629_v43 = vld [vmem:[#allocation16 + $0x1018] sm:$0xff]  ;;  %v2642_v32 = vld [vmem:[#allocation16 + $0x1080] sm:$0xff] }
 0x2e3   :  { %2860 = vmatpush.msrb.mxu0 %v2620_v38  ;;  %2883 = vmatpush.msrb.mxu1 %v2636_v61  ;;  %v4809_v18 = vld [vmem:[#allocation52_spill] sm:$0xff] }
 0x2e4   :  { %2909 = vmatpush.msrb.mxu2 %v2649_v46  ;;  %2841 = vmatpush.msrb.mxu3 %v2600_v52  ;;  %v2535_v38 = vadd.f32 %v4759_v42, %v4809_v18  ;;  %v2673_v61 = vld [vmem:[#allocation16 + $0x1178] sm:$0xff]  ;;  %v4810_v46 = vld [vmem:[#allocation63_spill] sm:$0xff]  ;;  %v2627_v42 = vld [vmem:[#allocation16 + $0x1008] sm:$0xff]  ;;  %v4497_v18 = vpop.f32.mrf.mxu1 }
 0x2e5   :  { %2861 = vmatpush.msrb.mxu0 %v2619_v13  ;;  %2884 = vmatpush.msrb.mxu1 %v2635_v9  ;;  %v2538_v52 = vadd.f32 %v4379_v57, %v4810_v46  ;;  %v2721_v13 = vld [vmem:[#allocation16 + $0x12f8] sm:$0xff]  ;;  %v2612_v9 = vld [vmem:[#allocation16 + $0xf90] sm:$0xff]  ;;  %v2610_v57 = vld [vmem:[#allocation16 + $0xf80] sm:$0xff] }
 0x2e6   :  { %2910 = vmatpush.msrb.mxu2 %v2648_v5  ;;  %2842 = vmatpush.msrb.mxu3 %v2599_v25  ;;  %v2628_v5 = vld [vmem:[#allocation16 + $0x1010] sm:$0xff] }
 0x2e7   :  { %2862 = vmatpush.msrb.mxu0 %v2618_v24  ;;  %2885 = vmatpush.msrb.mxu1 %v2634_v10  ;;  %v2672_v25 = vld [vmem:[#allocation16 + $0x1170] sm:$0xff]  ;;  %v2611_v10 = vld [vmem:[#allocation16 + $0xf88] sm:$0xff] }
 0x2e8   :  { %2911 = vmatpush.msrb.mxu2 %v2647_v23  ;;  %2843 = vmatpush.msrb.mxu3 %v2598_v35  ;;  %v2720_v24 = vld [vmem:[#allocation16 + $0x12f0] sm:$0xff]  ;;  %v2671_v23 = vld [vmem:[#allocation16 + $0x1168] sm:$0xff] }
 0x2e9   :  { %2863 = vmatpush.msrb.mxu0 %v2617_v31  ;;  %2886 = vmatpush.msrb.mxu1 %v2633_v62  ;;  %v2719_v35 = vld [vmem:[#allocation16 + $0x12e8] sm:$0xff]  ;;  %v2626_v31 = vld [vmem:[#allocation16 + $0x1000] sm:$0xff]  ;;  %v4815_v46 = vld [vmem:[#allocation59_spill] sm:$0xff] }
 0x2ea   :  { %2912 = vmatpush.msrb.mxu2 %v2646_v21  ;;  %2844 = vmatpush.msrb.mxu3 %v2597_v41  ;;  %v4811_v62 = vld [vmem:[#allocation53_spill] sm:$0xff] }
 0x2eb   :  { %2864 = vmatpush.msrb.mxu0 %v2616_v50  ;;  %2887 = vmatpush.msrb.mxu1 %v2632_v58  ;;  %v2536_v21 = vadd.f32 %v4758_v49, %v4811_v62  ;;  %v2670_v41 = vld [vmem:[#allocation16 + $0x1160] sm:$0xff]  ;;  %v4812_v50 = vld [vmem:[#allocation64_spill] sm:$0xff]  ;;  %v2664_v62 = vld [vmem:[#allocation16 + $0x1130] sm:$0xff] }
 0x2ec   :  { %2913 = vmatpush.msrb.mxu2 %v2645_v11  ;;  %2845 = vmatpush.msrb.mxu3 %v2596_v34  ;;  %v2537_v58 = vadd.f32 %v4359_v17, %v4812_v50  ;;  %v2689_v11 = vld [vmem:[#allocation16 + $0x11f8] sm:$0xff]  ;;  %v4814_v49 = vld [vmem:[#allocation69_spill] sm:$0xff]  ;;  %v2704_v17 = vld [vmem:[#allocation16 + $0x1270] sm:$0xff] }
 0x2ed   :  { %2865 = vmatpush.msrb.mxu0 %v2615_v48  ;;  %2888 = vmatpush.msrb.mxu1 %v2631_v36  ;;  %v2705_v34 = vld [vmem:[#allocation16 + $0x1278] sm:$0xff]  ;;  %v2718_v48 = vld [vmem:[#allocation16 + $0x12e0] sm:$0xff]  ;;  %v4813_v36 = vld [vmem:[#allocation58_spill] sm:$0xff] }
 0x2ee   :  { %2914 = vmatpush.msrb.mxu2 %v2644_v40  ;;  %2846 = vmatpush.msrb.mxu3 %v2595_v14  ;;  %v2549_v40 = vadd.f32 %v4767_v27, %v4813_v36  ;;  %v2669_v14 = vld [vmem:[#allocation16 + $0x1158] sm:$0xff]  ;;  %v2667_v27 = vld [vmem:[#allocation16 + $0x1148] sm:$0xff]  ;;  %v2712_v50 = vld [vmem:[#allocation16 + $0x12b0] sm:$0xff] }
 0x2ef   :  { %2866 = vmatpush.msrb.mxu0 %v2614_v7  ;;  %2889 = vmatpush.msrb.mxu1 %v2630_v22  ;;  %v2552_v7 = vadd.f32 %v4405_v29, %v4814_v49  ;;  %v2688_v22 = vld [vmem:[#allocation16 + $0x11f0] sm:$0xff]  ;;  %v2702_v29 = vld [vmem:[#allocation16 + $0x1260] sm:$0xff]  ;;  %v2711_v36 = vld [vmem:[#allocation16 + $0x12a8] sm:$0xff] }
 0x2f0   :  { %2915 = vmatpush.msrb.mxu2 %v2643_v6  ;;  %2847 = vmatpush.msrb.mxu3 %v2594_v60  ;;  %v2717_v6 = vld [vmem:[#allocation16 + $0x12d8] sm:$0xff]  ;;  %v2668_v60 = vld [vmem:[#allocation16 + $0x1150] sm:$0xff] }
 0x2f1   :  { %2867 = vmatpush.msrb.mxu0 %v2613_v56  ;;  %2890 = vmatpush.msrb.mxu1 %v2629_v43  ;;  %v2687_v56 = vld [vmem:[#allocation16 + $0x11e8] sm:$0xff]  ;;  %v2697_v49 = vld [vmem:[#allocation16 + $0x1238] sm:$0xff] }
 0x2f2   :  { %2916 = vmatpush.msrb.mxu2 %v2642_v32  ;;  %2848 = vmatmul.f32.vlgmr.msrb.gmra.mxu3 %v2535_v38  ;;  %v2703_v43 = vld [vmem:[#allocation16 + $0x1268] sm:$0xff]  ;;  %v2716_v32 = vld [vmem:[#allocation16 + $0x12d0] sm:$0xff]  ;;  %v2686_v38 = vld [vmem:[#allocation16 + $0x11e0] sm:$0xff] }
 0x2f3   :  { %2917 = vmatmul.f32.vlgmr.msrb.gmra.mxu2 %v2538_v52  ;;  %2924 = vmatpush.msra.mxu3 %v2673_v61  ;;  %v2715_v61 = vld [vmem:[#allocation16 + $0x12c8] sm:$0xff]  ;;  %v2550_v52 = vadd.f32 %v4762_v28, %v4815_v46  ;;  %v2713_v28 = vld [vmem:[#allocation16 + $0x12b8] sm:$0xff]  ;;  %v2678_v46 = vld [vmem:[#allocation16 + $0x11a0] sm:$0xff] }
 0x2f4   :  { %2993 = vmatpush.msra.mxu2 %v2721_v13  ;;  %2868 = vmatpush.msrb.mxu0 %v2612_v9  ;;  %v2666_v13 = vld [vmem:[#allocation16 + $0x1140] sm:$0xff]  ;;  %v4816_v9 = vld [vmem:[#allocation68_spill] sm:$0xff] }
 0x2f5   :  { %2891 = vmatpush.msrb.mxu1 %v2628_v5  ;;  %2925 = vmatpush.msra.mxu3 %v2672_v25  ;;  %v2551_v5 = vadd.f32 %v4391_v20, %v4816_v9  ;;  %v2685_v25 = vld [vmem:[#allocation16 + $0x11d8] sm:$0xff]  ;;  %v2683_v20 = vld [vmem:[#allocation16 + $0x11c8] sm:$0xff] }
 0x2f6   :  { %2994 = vmatpush.msra.mxu2 %v2720_v24  ;;  %2869 = vmatpush.msrb.mxu0 %v2611_v10  ;;  %v2701_v24 = vld [vmem:[#allocation16 + $0x1258] sm:$0xff]  ;;  %v4503_v10 = vpop.f32.mrf.mxu2 }
 0x2f7   :  { %2892 = vmatpush.msrb.mxu1 %v2627_v42  ;;  %2926 = vmatpush.msra.mxu3 %v2671_v23  ;;  %v2714_v42 = vld [vmem:[#allocation16 + $0x12c0] sm:$0xff]  ;;  %v2665_v23 = vld [vmem:[#allocation16 + $0x1138] sm:$0xff] }
 0x2f8   :  { %2995 = vmatpush.msra.mxu2 %v2719_v35  ;;  %2870 = vmatpush.msrb.mxu0 %v2610_v57  ;;  %v2684_v35 = vld [vmem:[#allocation16 + $0x11d0] sm:$0xff] }
 0x2f9   :  { %2893 = vmatpush.msrb.mxu1 %v2626_v31  ;;  %2871 = vmatmul.f32.vlgmr.msrb.gmra.mxu0 %v2536_v21  ;;  %v2700_v57 = vld [vmem:[#allocation16 + $0x1250] sm:$0xff]  ;;  %v4505_v31 = vpop.f32.mrf.mxu3  ;;  %v2699_v21 = vld [vmem:[#allocation16 + $0x1248] sm:$0xff] }
 0x2fa   :  { %2894 = vmatmul.f32.vlgmr.msrb.gmra.mxu1 %v2537_v58  ;;  %2927 = vmatpush.msra.mxu3 %v2670_v41  ;;  %v4507_v41 = vpop.f32.mrf.mxu0  ;;  %v2663_v58 = vld [vmem:[#allocation16 + $0x1128] sm:$0xff] }
 0x2fb   :  { %2947 = vmatpush.msra.mxu0 %v2689_v11  ;;  %2970 = vmatpush.msra.mxu1 %v2705_v34  ;;  %v2682_v11 = vld [vmem:[#allocation16 + $0x11c0] sm:$0xff] }
 0x2fc   :  { %2996 = vmatpush.msra.mxu2 %v2718_v48  ;;  %2851 = vmatmul.f32.gmra.mxu3 %v2549_v40  ;;  %v2698_v34 = vld [vmem:[#allocation16 + $0x1240] sm:$0xff]  ;;  %v4509_v48 = vpop.f32.mrf.mxu1 }
 0x2fd   :  { %2920 = vmatmul.f32.gmra.mxu2 %v2552_v7  ;;  %2928 = vmatpush.msra.mxu3 %v2669_v14  ;;  %v2662_v40 = vld [vmem:[#allocation16 + $0x1120] sm:$0xff]  ;;  %v2681_v14 = vld [vmem:[#allocation16 + $0x11b8] sm:$0xff] }
 0x2fe   :  { %2948 = vmatpush.msra.mxu0 %v2688_v22  ;;  %2971 = vmatpush.msra.mxu1 %v2704_v17  ;;  %v2710_v7 = vld [vmem:[#allocation16 + $0x12a0] sm:$0xff]  ;;  %v2661_v22 = vld [vmem:[#allocation16 + $0x1118] sm:$0xff]  ;;  %v2680_v17 = vld [vmem:[#allocation16 + $0x11b0] sm:$0xff] }
 0x2ff   :  { %2997 = vmatpush.msra.mxu2 %v2717_v6  ;;  %2929 = vmatpush.msra.mxu3 %v2668_v60  ;;  %v2696_v6 = vld [vmem:[#allocation16 + $0x1230] sm:$0xff]  ;;  %v4511_v60 = vpop.f32.mrf.mxu2 }
 0x300   :  { %2949 = vmatpush.msra.mxu0 %v2687_v56  ;;  %2972 = vmatpush.msra.mxu1 %v2703_v43  ;;  %v2709_v56 = vld [vmem:[#allocation16 + $0x1298] sm:$0xff]  ;;  %v2660_v43 = vld [vmem:[#allocation16 + $0x1110] sm:$0xff] }
 0x301   :  { %2998 = vmatpush.msra.mxu2 %v2716_v32  ;;  %2930 = vmatpush.msra.mxu3 %v2667_v27  ;;  %v2679_v32 = vld [vmem:[#allocation16 + $0x11a8] sm:$0xff] }
 0x302   :  { %2950 = vmatpush.msra.mxu0 %v2686_v38  ;;  %2973 = vmatpush.msra.mxu1 %v2702_v29  ;;  %v2695_v27 = vld [vmem:[#allocation16 + $0x1228] sm:$0xff]  ;;  %v4513_v38 = vpop.f32.mrf.mxu3  ;;  %v2708_v29 = vld [vmem:[#allocation16 + $0x1290] sm:$0xff]  ;;  %v4517_v9 = vpop.f32.mrf.mxu0 }
 0x303   :  { %2999 = vmatpush.msra.mxu2 %v2715_v61  ;;  %2874 = vmatmul.f32.gmra.mxu0 %v2550_v52  ;;  %v2659_v61 = vld [vmem:[#allocation16 + $0x1108] sm:$0xff]  ;;  %v2694_v52 = vld [vmem:[#allocation16 + $0x1220] sm:$0xff] }
 0x304   :  { %2897 = vmatmul.f32.gmra.mxu1 %v2551_v5  ;;  %2931 = vmatpush.msra.mxu3 %v2666_v13  ;;  %v4515_v13 = vpop.f32.mrf.mxu1  ;;  %v2707_v5 = vld [vmem:[#allocation16 + $0x1288] sm:$0xff] }
 0x305   :  { %2951 = vmatpush.msra.mxu0 %v2685_v25  ;;  %2974 = vmatpush.msra.mxu1 %v2701_v24  ;;  %v2658_v25 = vld [vmem:[#allocation16 + $0x1100] sm:$0xff]  ;;  %v2677_v24 = vld [vmem:[#allocation16 + $0x1198] sm:$0xff] }
 0x306   :  { %3000 = vmatpush.msra.mxu2 %v2714_v42  ;;  %2932 = vmatpush.msra.mxu3 %v2665_v23  ;;  %v2693_v42 = vld [vmem:[#allocation16 + $0x1218] sm:$0xff]  ;;  %v2706_v23 = vld [vmem:[#allocation16 + $0x1280] sm:$0xff] }
 0x307   :  { %2952 = vmatpush.msra.mxu0 %v2684_v35  ;;  %2975 = vmatpush.msra.mxu1 %v2700_v57  ;;  %v4817_v35 = vld [vmem:[#allocation80_spill] sm:$0xff] }
 0x308   :  { %3001 = vmatpush.msra.mxu2 %v2713_v28  ;;  %2933 = vmatpush.msra.mxu3 %v2664_v62  ;;  %v2539_v57 = vadd.f32 %v4385_v47, %v4817_v35  ;;  %v2737_v28 = vld [vmem:[#allocation16 + $0x1378] sm:$0xff]  ;;  %v4818_v62 = vld [vmem:[#allocation81_spill] sm:$0xff]  ;;  %v2675_v47 = vld [vmem:[#allocation16 + $0x1188] sm:$0xff] }
 0x309   :  { %2953 = vmatpush.msra.mxu0 %v2683_v20  ;;  %2976 = vmatpush.msra.mxu1 %v2699_v21  ;;  %v2542_v20 = vadd.f32 %v4435_v44, %v4818_v62  ;;  %v4523_v21 = vpop.f32.mrf.mxu2  ;;  %v2783_v44 = vld [vmem:[#allocation16 + $0x14e8] sm:$0xff]  ;;  %v2768_v35 = vld [vmem:[#allocation16 + $0x1470] sm:$0xff] }
 0x30a   :  { %3002 = vmatpush.msra.mxu2 %v2712_v50  ;;  %2934 = vmatpush.msra.mxu3 %v2663_v58  ;;  %v2785_v50 = vld [vmem:[#allocation16 + $0x14f8] sm:$0xff]  ;;  %v2676_v58 = vld [vmem:[#allocation16 + $0x1190] sm:$0xff]  ;;  %v2751_v62 = vld [vmem:[#allocation16 + $0x13e8] sm:$0xff] }
 0x30b   :  { %2954 = vmatpush.msra.mxu0 %v2682_v11  ;;  %2977 = vmatpush.msra.mxu1 %v2698_v34  ;;  %v2692_v11 = vld [vmem:[#allocation16 + $0x1210] sm:$0xff] }
 0x30c   :  { %3003 = vmatpush.msra.mxu2 %v2711_v36  ;;  %2935 = vmatpush.msra.mxu3 %v2662_v40  ;;  %v2736_v34 = vld [vmem:[#allocation16 + $0x1370] sm:$0xff]  ;;  %v2691_v40 = vld [vmem:[#allocation16 + $0x1208] sm:$0xff] }
 0x30d   :  { %2955 = vmatpush.msra.mxu0 %v2681_v14  ;;  %2978 = vmatpush.msra.mxu1 %v2697_v49  ;;  %v2784_v36 = vld [vmem:[#allocation16 + $0x14f0] sm:$0xff]  ;;  %v2735_v14 = vld [vmem:[#allocation16 + $0x1368] sm:$0xff]  ;;  %v4525_v49 = vpop.f32.mrf.mxu3 }
 0x30e   :  { %3004 = vmatpush.msra.mxu2 %v2710_v7  ;;  %2936 = vmatpush.msra.mxu3 %v2661_v22  ;;  %v2674_v7 = vld [vmem:[#allocation16 + $0x1180] sm:$0xff] }
 0x30f   :  { %2956 = vmatpush.msra.mxu0 %v2680_v17  ;;  %2979 = vmatpush.msra.mxu1 %v2696_v6  ;;  %v2690_v22 = vld [vmem:[#allocation16 + $0x1200] sm:$0xff]  ;;  %v4819_v17 = vld [vmem:[#allocation84_spill] sm:$0xff] }
 0x310   :  { %3005 = vmatpush.msra.mxu2 %v2709_v56  ;;  %2937 = vmatpush.msra.mxu3 %v2660_v43  ;;  %v2540_v6 = vadd.f32 %v4365_v2, %v4819_v17  ;;  %v4529_v56 = vpop.f32.mrf.mxu1  ;;  %v4531_v43 = vpop.f32.mrf.mxu0  ;;  %v4821_v2 = vld [vmem:[#allocation87_spill] sm:$0xff]  ;;  %v2749_v17 = vld [vmem:[#allocation16 + $0x13d8] sm:$0xff] }
 0x311   :  { %2957 = vmatpush.msra.mxu0 %v2679_v32  ;;  %2980 = vmatpush.msra.mxu1 %v2695_v27  ;;  %v2734_v32 = vld [vmem:[#allocation16 + $0x1360] sm:$0xff]  ;;  %v4820_v27 = vld [vmem:[#allocation86_spill] sm:$0xff] }
 0x312   :  { %3006 = vmatpush.msra.mxu2 %v2708_v29  ;;  %2938 = vmatpush.msra.mxu3 %v2659_v61  ;;  %v2541_v29 = vadd.f32 %v4419_v63, %v4820_v27  ;;  %v2753_v61 = vld [vmem:[#allocation16 + $0x13f8] sm:$0xff] }
 0x313   :  { %2958 = vmatpush.msra.mxu0 %v2678_v46  ;;  %2981 = vmatpush.msra.mxu1 %v2694_v52  ;;  %v2769_v46 = vld [vmem:[#allocation16 + $0x1478] sm:$0xff]  ;;  %v2782_v52 = vld [vmem:[#allocation16 + $0x14e0] sm:$0xff] }
 0x314   :  { %3007 = vmatpush.msra.mxu2 %v2707_v5  ;;  %2939 = vmatpush.msra.mxu3 %v2658_v25  ;;  %v2553_v5 = vadd.f32 %v4407_v0, %v4821_v2  ;;  %v2733_v25 = vld [vmem:[#allocation16 + $0x1358] sm:$0xff]  ;;  %v2780_v0 = vld [vmem:[#allocation16 + $0x14d0] sm:$0xff]  ;;  %v2747_v2 = vld [vmem:[#allocation16 + $0x13c8] sm:$0xff] }
 0x315   :  { %2959 = vmatpush.msra.mxu0 %v2677_v24  ;;  %2982 = vmatpush.msra.mxu1 %v2693_v42  ;;  %v4537_v24 = vpop.f32.mrf.mxu2  ;;  %v4822_v42 = vld [vmem:[#allocation88_spill] sm:$0xff] }
 0x316   :  { %3008 = vmatpush.msra.mxu2 %v2706_v23  ;;  %2940 = vmatmul.f32.vlgmr.msra.gmra.mxu3 %v2539_v57  ;;  %v2556_v63 = vadd.f32 %v4461_v30, %v4822_v42  ;;  %v2752_v23 = vld [vmem:[#allocation16 + $0x13f0] sm:$0xff]  ;;  %v2781_v57 = vld [vmem:[#allocation16 + $0x14d8] sm:$0xff]  ;;  %v2766_v30 = vld [vmem:[#allocation16 + $0x1460] sm:$0xff]  ;;  %v2252_v42 = vadd.f32 %v4531_v43, %v4525_v49 }
 0x317   :  { %3009 = vmatmul.f32.vlgmr.msra.gmra.mxu2 %v2542_v20  ;;  %3016 = vmatpush.msrb.mxu3 %v2737_v28  ;;  %v2732_v28 = vld [vmem:[#allocation16 + $0x1350] sm:$0xff]  ;;  %v2767_v20 = vld [vmem:[#allocation16 + $0x1468] sm:$0xff]  ;;  %v2729_v27 = vld [vmem:[#allocation16 + $0x1338] sm:$0xff] }
 0x318   :  { %3085 = vmatpush.msrb.mxu2 %v2785_v50  ;;  %2960 = vmatpush.msra.mxu0 %v2676_v58  ;;  %v2731_v50 = vld [vmem:[#allocation16 + $0x1348] sm:$0xff]  ;;  %v4541_v58 = vpop.f32.mrf.mxu3  ;;  %v2744_v43 = vld [vmem:[#allocation16 + $0x13b0] sm:$0xff] }
 0x319   :  { %2983 = vmatpush.msra.mxu1 %v2692_v11  ;;  %3017 = vmatpush.msrb.mxu3 %v2736_v34  ;;  %v2750_v11 = vld [vmem:[#allocation16 + $0x13e0] sm:$0xff]  ;;  %v2779_v34 = vld [vmem:[#allocation16 + $0x14c8] sm:$0xff] }
 0x31a   :  { %3086 = vmatpush.msrb.mxu2 %v2784_v36  ;;  %2961 = vmatpush.msra.mxu0 %v2675_v47  ;;  %v2274_v36 = vpop.f32.mrf.mxu1  ;;  %v4543_v47 = vpop.f32.mrf.mxu0 }
 0x31b   :  { %2984 = vmatpush.msra.mxu1 %v2691_v40  ;;  %3018 = vmatpush.msrb.mxu3 %v2735_v14  ;;  %v4823_v40 = vld [vmem:[#allocation91_spill] sm:$0xff]  ;;  %v2275_v49 = vadd.f32 %v2274_v36, %v2252_v42  ;;  %v2742_v36 = vld [vmem:[#allocation16 + $0x13a0] sm:$0xff] }
 0x31c   :  { %3087 = vmatpush.msrb.mxu2 %v2783_v44  ;;  %2962 = vmatpush.msra.mxu0 %v2674_v7  ;;  %v2554_v14 = vadd.f32 %v4393_v45, %v4823_v40  ;;  %v2730_v44 = vld [vmem:[#allocation16 + $0x1340] sm:$0xff]  ;;  %v4824_v7 = vld [vmem:[#allocation92_spill] sm:$0xff] }
 0x31d   :  { %2985 = vmatpush.msra.mxu1 %v2690_v22  ;;  %2963 = vmatmul.f32.vlgmr.msra.gmra.mxu0 %v2540_v6  ;;  %v2555_v22 = vadd.f32 %v4447_v16, %v4824_v7  ;;  %v2765_v6 = vld [vmem:[#allocation16 + $0x1458] sm:$0xff]  ;;  %v2776_v16 = vld [vmem:[#allocation16 + $0x14b0] sm:$0xff]  ;;  %v2759_v7 = vld [vmem:[#allocation16 + $0x1428] sm:$0xff] }
 0x31e   :  { %2986 = vmatmul.f32.vlgmr.msra.gmra.mxu1 %v2541_v29  ;;  %3019 = vmatpush.msrb.mxu3 %v2734_v32  ;;  %v2778_v32 = vld [vmem:[#allocation16 + $0x14c0] sm:$0xff]  ;;  %v2748_v29 = vld [vmem:[#allocation16 + $0x13d0] sm:$0xff]  ;;  %v2777_v45 = vld [vmem:[#allocation16 + $0x14b8] sm:$0xff] }
 0x31f   :  { %3039 = vmatpush.msrb.mxu0 %v2753_v61  ;;  %3062 = vmatpush.msrb.mxu1 %v2769_v46  ;;  %v2764_v61 = vld [vmem:[#allocation16 + $0x1450] sm:$0xff]  ;;  %v2297_v46 = vpop.f32.mrf.mxu2  ;;  %v2773_v40 = vld [vmem:[#allocation16 + $0x1498] sm:$0xff] }
 0x320   :  { %3088 = vmatpush.msrb.mxu2 %v2782_v52  ;;  %2943 = vmatmul.f32.gmra.mxu3 %v2553_v5  ;;  %v2728_v52 = vld [vmem:[#allocation16 + $0x1330] sm:$0xff]  ;;  %v2763_v5 = vld [vmem:[#allocation16 + $0x1448] sm:$0xff] }
 0x321   :  { %3012 = vmatmul.f32.gmra.mxu2 %v2556_v63  ;;  %3020 = vmatpush.msrb.mxu3 %v2733_v25  ;;  %v2727_v25 = vld [vmem:[#allocation16 + $0x1328] sm:$0xff]  ;;  %v2746_v63 = vld [vmem:[#allocation16 + $0x13c0] sm:$0xff] }
 0x322   :  { %3040 = vmatpush.msrb.mxu0 %v2752_v23  ;;  %3063 = vmatpush.msrb.mxu1 %v2768_v35  ;;  %v2762_v23 = vld [vmem:[#allocation16 + $0x1440] sm:$0xff]  ;;  %v2320_v35 = vpop.f32.mrf.mxu3 }
 0x323   :  { %3089 = vmatpush.msrb.mxu2 %v2781_v57  ;;  %3021 = vmatpush.msrb.mxu3 %v2732_v28  ;;  %v2775_v57 = vld [vmem:[#allocation16 + $0x14a8] sm:$0xff]  ;;  %v2726_v28 = vld [vmem:[#allocation16 + $0x1320] sm:$0xff] }
 0x324   :  { %3041 = vmatpush.msrb.mxu0 %v2751_v62  ;;  %3064 = vmatpush.msrb.mxu1 %v2767_v20  ;;  %v2745_v62 = vld [vmem:[#allocation16 + $0x13b8] sm:$0xff] }
 0x325   :  { %3090 = vmatpush.msrb.mxu2 %v2780_v0  ;;  %3022 = vmatpush.msrb.mxu3 %v2731_v50  ;;  %v2761_v20 = vld [vmem:[#allocation16 + $0x1438] sm:$0xff]  ;;  %v2277_v0 = vpop.f32.mrf.mxu1  ;;  %v2343_v50 = vpop.f32.mrf.mxu0 }
 0x326   :  { %3042 = vmatpush.msrb.mxu0 %v2750_v11  ;;  %3065 = vmatpush.msrb.mxu1 %v2766_v30  ;;  %v2774_v11 = vld [vmem:[#allocation16 + $0x14a0] sm:$0xff]  ;;  %v2725_v30 = vld [vmem:[#allocation16 + $0x1318] sm:$0xff] }
 0x327   :  { %3091 = vmatpush.msrb.mxu2 %v2779_v34  ;;  %2966 = vmatmul.f32.gmra.mxu0 %v2554_v14  ;;  %v2760_v34 = vld [vmem:[#allocation16 + $0x1430] sm:$0xff] }
 0x328   :  { %2989 = vmatmul.f32.gmra.mxu1 %v2555_v22  ;;  %3023 = vmatpush.msrb.mxu3 %v2730_v44  ;;  %v2724_v14 = vld [vmem:[#allocation16 + $0x1310] sm:$0xff]  ;;  %v2743_v44 = vld [vmem:[#allocation16 + $0x13a8] sm:$0xff]  ;;  %v2300_v22 = vpop.f32.mrf.mxu2 }
 0x329   :  { %3043 = vmatpush.msrb.mxu0 %v2749_v17  ;;  %3066 = vmatpush.msrb.mxu1 %v2765_v6  ;;  %v2772_v17 = vld [vmem:[#allocation16 + $0x1490] sm:$0xff]  ;;  %v2723_v6 = vld [vmem:[#allocation16 + $0x1308] sm:$0xff] }
 0x32a   :  { %3092 = vmatpush.msrb.mxu2 %v2778_v32  ;;  %3024 = vmatpush.msrb.mxu3 %v2729_v27  ;;  %v2298_v32 = vadd.f32 %v2297_v46, %v2275_v49  ;;  %v2758_v27 = vld [vmem:[#allocation16 + $0x1420] sm:$0xff] }
 0x32b   :  { %3044 = vmatpush.msrb.mxu0 %v2748_v29  ;;  %3067 = vmatpush.msrb.mxu1 %v2764_v61  ;;  %v2771_v29 = vld [vmem:[#allocation16 + $0x1488] sm:$0xff]  ;;  %v2722_v61 = vld [vmem:[#allocation16 + $0x1300] sm:$0xff] }
 0x32c   :  { %3093 = vmatpush.msrb.mxu2 %v2777_v45  ;;  %3025 = vmatpush.msrb.mxu3 %v2728_v52  ;;  %v2255_v45 = vadd.f32 %v4543_v47, %v4541_v58  ;;  %v2321_v52 = vadd.f32 %v2320_v35, %v2298_v32  ;;  %v2770_v46 = vld [vmem:[#allocation16 + $0x1480] sm:$0xff]  ;;  %v2756_v47 = vld [vmem:[#allocation16 + $0x1410] sm:$0xff] }
 0x32d   :  { %3045 = vmatpush.msrb.mxu0 %v2747_v2  ;;  %3068 = vmatpush.msrb.mxu1 %v2763_v5  ;;  %v2741_v2 = vld [vmem:[#allocation16 + $0x1398] sm:$0xff]  ;;  %v2346_v58 = vpop.f32.mrf.mxu0  ;;  %v2754_v49 = vld [vmem:[#allocation16 + $0x1400] sm:$0xff] }
 0x32e   :  { %3094 = vmatpush.msrb.mxu2 %v2776_v16  ;;  %3026 = vmatpush.msrb.mxu3 %v2727_v25  ;;  %v2757_v5 = vld [vmem:[#allocation16 + $0x1418] sm:$0xff]  ;;  %v2323_v16 = vpop.f32.mrf.mxu3  ;;  %v4825_v25 = vld [vmem:[#allocation94_spill] sm:$0xff]  ;;  %v2278_v35 = vadd.f32 %v2277_v0, %v2255_v45  ;;  %v2545_v0 = vadd.f32 %v4273_v12, %v4284_v54 }
 0x32f   :  { %3046 = vmatpush.msrb.mxu0 %v2746_v63  ;;  %3069 = vmatpush.msrb.mxu1 %v2762_v23  ;;  %v2543_v42 = vadd.f32 %v4441_v3, %v4825_v25  ;;  %v2740_v63 = vld [vmem:[#allocation16 + $0x1390] sm:$0xff]  ;;  %v2738_v3 = vld [vmem:[#allocation16 + $0x1380] sm:$0xff] }
 0x330   :  { %3095 = vmatpush.msrb.mxu2 %v2775_v57  ;;  %3027 = vmatpush.msrb.mxu3 %v2726_v28  ;;  %v4826_v23 = vld [vmem:[#allocation95_spill] sm:$0xff]  ;;  %v2366_v28 = vpop.f32.mrf.mxu1 }
 0x331   :  { %3047 = vmatpush.msrb.mxu0 %v2745_v62  ;;  %3070 = vmatpush.msrb.mxu1 %v2761_v20  ;;  %v2546_v57 = vadd.f32 %v4253_v59, %v4826_v23  ;;  %v2344_v62 = vadd.f32 %v2343_v50, %v2321_v52  ;;  %v2739_v20 = vld [vmem:[#allocation16 + $0x1388] sm:$0xff]  ;;  %v2544_v59 = vadd.f32 %v4421_v51, %v4279_v4 }
 0x332   :  { %3096 = vmatpush.msrb.mxu2 %v2774_v11  ;;  %3028 = vmatpush.msrb.mxu3 %v2725_v30  ;;  %v2755_v11 = vld [vmem:[#allocation16 + $0x1408] sm:$0xff]  ;;  %v2389_v30 = vpop.f32.mrf.mxu2  ;;  %v1866_v4 = vadd.f32 %v4497_v18, %v4468_v39 }
 0x333   :  { %3048 = vmatpush.msrb.mxu0 %v2744_v43  ;;  %3071 = vmatpush.msrb.mxu1 %v2760_v34  ;;  %v2301_v43 = vadd.f32 %v2300_v22, %v2278_v35  ;;  %v2367_v34 = vadd.f32 %v2366_v28, %v2344_v62 }
 0x334   :  { %3097 = vmatpush.msrb.mxu2 %v2773_v40  ;;  %3029 = vmatpush.msrb.mxu3 %v2724_v14  ;;  %v2557_v14 = vadd.f32 %v4463_v15, %v4289_v37  ;;  %v2559_v15 = vadd.f32 %v4306_v1, %v4319_v8 }
 0x335   :  { %3049 = vmatpush.msrb.mxu0 %v2743_v44  ;;  %3072 = vmatpush.msrb.mxu1 %v2759_v7  ;;  %v2324_v40 = vadd.f32 %v2323_v16, %v2301_v43  ;;  %v2435_v44 = vpop.f32.mrf.mxu0  ;;  %v2560_v7 = vadd.f32 %v4291_v33, %v4295_v55  ;;  %v2390_v51 = vadd.f32 %v2389_v30, %v2367_v34 }
 0x336   :  { %3098 = vmatpush.msrb.mxu2 %v2772_v17  ;;  %3030 = vmatpush.msrb.mxu3 %v2723_v6  ;;  %v2412_v50 = vpop.f32.mrf.mxu3  ;;  %v1889_v17 = vadd.f32 %v4503_v10, %v1866_v4  ;;  %v2558_v6 = vadd.f32 %v4449_v53, %v4313_v26 }
 0x337   :  { %3050 = vmatpush.msrb.mxu0 %v2742_v36  ;;  %3073 = vmatpush.msrb.mxu1 %v2758_v27  ;;  %v2347_v12 = vadd.f32 %v2346_v58, %v2324_v40  ;;  %v2413_v54 = vadd.f32 %v2412_v50, %v2390_v51  ;;  %v1869_v27 = vadd.f32 %v4509_v48, %v4471_v19 }
 0x338   :  { %3099 = vmatpush.msrb.mxu2 %v2771_v29  ;;  %3031 = vmatpush.msrb.mxu3 %v2722_v61  ;;  %v2369_v22 = vpop.f32.mrf.mxu1  ;;  %v1912_v33 = vadd.f32 %v4505_v31, %v1889_v17 }
 0x339   :  { %3051 = vmatpush.msrb.mxu0 %v2741_v2  ;;  %3074 = vmatpush.msrb.mxu1 %v2757_v5  ;;  %v2370_v55 = vadd.f32 %v2369_v22, %v2347_v12  ;;  %v2436_v32 = vadd.f32 %v2435_v44, %v2413_v54  ;;  %v1892_v1 = vadd.f32 %v4511_v60, %v1869_v27 }
 0x33a   :  { %3100 = vmatpush.msrb.mxu2 %v2770_v46  ;;  %3032 = vmatmul.f32.vlgmr.msrb.gmra.mxu3 %v2543_v42  ;;  %v2392_v37 = vpop.f32.mrf.mxu2  ;;  %v1935_v10 = vadd.f32 %v4507_v41, %v1912_v33 }
 0x33b   :  { %3101 = vmatmul.f32.vlgmr.msrb.gmra.mxu2 %v2546_v57  ;;  %3052 = vmatpush.msrb.mxu0 %v2740_v63  ;;  %v2393_v29 = vadd.f32 %v2392_v37, %v2370_v55  ;;  %v1915_v52 = vadd.f32 %v4513_v38, %v1892_v1 }
 0x33c   :  { %3075 = vmatpush.msrb.mxu1 %v2756_v47  ;;  %v1958_v8 = vadd.f32 %v4515_v13, %v1935_v10 }
 0x33d   :  { %3053 = vmatpush.msrb.mxu0 %v2739_v20  ;;  %v2438_v36 = vpop.f32.mrf.mxu0  ;;  %v1938_v48 = vadd.f32 %v4517_v9, %v1915_v52 }
 0x33e   :  { %3076 = vmatpush.msrb.mxu1 %v2755_v11  ;;  %v2415_v39 = vpop.f32.mrf.mxu3  ;;  %v4580_v46 = vadd.f32 %v4523_v21, %v1958_v8 }
 0x33f   :  { %3054 = vmatpush.msrb.mxu0 %v2738_v3  ;;  %v2416_v53 = vadd.f32 %v2415_v39, %v2393_v29  ;;  %v1961_v42 = vadd.f32 %v4529_v56, %v1938_v48 }
 0x340   :  { %3077 = vmatpush.msrb.mxu1 %v2754_v49  ;;  %3055 = vmatmul.f32.vlgmr.msrb.gmra.mxu0 %v2544_v59  ;;  %v2458_v18 = vpop.f32.mrf.mxu1 }
 0x341   :  { %3078 = vmatmul.f32.vlgmr.msrb.gmra.mxu1 %v2545_v0  ;;  %v2459_v26 = vadd.f32 %v2458_v18, %v2436_v32  ;;  %v2439_v2 = vadd.f32 %v2438_v36, %v2416_v53  ;;  %v4589_v21 = vadd.f32 %v4537_v24, %v1961_v42 }
 0x342   :  { %3035 = vmatmul.f32.gmra.mxu3 %v2557_v14  ;;  %v2481_v61 = vpop.f32.mrf.mxu2 }
 0x343   :  { %3104 = vmatmul.f32.gmra.mxu2 %v2560_v7  ;;  %v2482_v31 = vadd.f32 %v2481_v61, %v2459_v26 }
 0x348   :  { %3058 = vmatmul.f32.gmra.mxu0 %v2558_v6  ;;  %v2461_v41 = vpop.f32.mrf.mxu1 }
 0x349   :  { %3081 = vmatmul.f32.gmra.mxu1 %v2559_v15  ;;  %v2462_v25 = vadd.f32 %v2461_v41, %v2439_v2 }
 0x34a   :  { %v2484_v13 = vpop.f32.mrf.mxu2 }
 0x34b   :  { %v2485_v38 = vadd.f32 %v2484_v13, %v2462_v25 }
 0x351   :  { %v2504_v45 = vpop.f32.mrf.mxu3 }
 0x352   :  { %v2505_v5 = vadd.f32 %v2504_v45, %v2482_v31  ;;  %v2527_v16 = vpop.f32.mrf.mxu0  ;;  %v2826_v47 = vpop.f32.mrf.mxu2 }
 0x353   :  { %v2803_v58 = vpop.f32.mrf.mxu1 }
 0x354   :  { %v4582_v19 = vadd.f32 %v2527_v16, %v2505_v5  ;;  %v2827_v30 = vadd.f32 %v2826_v47, %v2803_v58 }
 0x356   :  { %v3108_v60 = vsub.f32 %v4580_v46, %v4582_v19 }
 0x358   :  { %3110 = vst [vmem:[#allocation18] sm:$0xff] %v3108_v60 }
 0x35b   :  { %v2507_v63 = vpop.f32.mrf.mxu3 }
 0x35c   :  { %v2508_v23 = vadd.f32 %v2507_v63, %v2485_v38  ;;  %v2530_v57 = vpop.f32.mrf.mxu0  ;;  %v2829_v62 = vpop.f32.mrf.mxu2 }
 0x35d   :  { %v2806_v35 = vpop.f32.mrf.mxu1 }
 0x35e   :  { %v4591_v28 = vadd.f32 %v2530_v57, %v2508_v23  ;;  %v2830_v50 = vadd.f32 %v2829_v62, %v2806_v35 }
 0x360   :  { %v3109_v9 = vsub.f32 %v4589_v21, %v4591_v28 }
 0x362   :  { %3111 = vst [vmem:[#allocation18 + $0x8] sm:$0xff] %v3109_v9 }
 0x375   :  { %v2849_v20 = vpop.f32.mrf.mxu3 }
 0x376   :  { %v2872_v11 = vpop.f32.mrf.mxu0  ;;  %v2918_v3 = vpop.f32.mrf.mxu2  ;;  %v2850_v49 = vadd.f32 %v2849_v20, %v2827_v30 }
 0x377   :  { %v2895_v56 = vpop.f32.mrf.mxu1 }
 0x378   :  { %v2873_v34 = vadd.f32 %v2872_v11, %v2850_v49 }
 0x37a   :  { %v2896_v40 = vadd.f32 %v2895_v56, %v2873_v34 }
 0x37c   :  { %v2919_v51 = vadd.f32 %v2918_v3, %v2896_v40 }
 0x37f   :  { %v2852_v59 = vpop.f32.mrf.mxu3 }
 0x380   :  { %v2875_v43 = vpop.f32.mrf.mxu0  ;;  %v2921_v0 = vpop.f32.mrf.mxu2  ;;  %v2853_v14 = vadd.f32 %v2852_v59, %v2830_v50 }
 0x381   :  { %v2898_v24 = vpop.f32.mrf.mxu1 }
 0x382   :  { %v2876_v22 = vadd.f32 %v2875_v43, %v2853_v14 }
 0x384   :  { %v2899_v17 = vadd.f32 %v2898_v24, %v2876_v22 }
 0x386   :  { %v2922_v33 = vadd.f32 %v2921_v0, %v2899_v17 }
 0x399   :  { %v2941_v44 = vpop.f32.mrf.mxu3 }
 0x39a   :  { %v2964_v7 = vpop.f32.mrf.mxu0  ;;  %v3010_v12 = vpop.f32.mrf.mxu2  ;;  %v2942_v54 = vadd.f32 %v2941_v44, %v2919_v51 }
 0x39b   :  { %v2987_v4 = vpop.f32.mrf.mxu1 }
 0x39c   :  { %v2965_v6 = vadd.f32 %v2964_v7, %v2942_v54 }
 0x39e   :  { %v2988_v32 = vadd.f32 %v2987_v4, %v2965_v6 }
 0x3a0   :  { %v3011_v36 = vadd.f32 %v3010_v12, %v2988_v32 }
 0x3a3   :  { %v2944_v37 = vpop.f32.mrf.mxu3 }
 0x3a4   :  { %v2967_v15 = vpop.f32.mrf.mxu0  ;;  %v2945_v39 = vadd.f32 %v2944_v37, %v2922_v33  ;;  %v3013_v18 = vpop.f32.mrf.mxu2 }
 0x3a5   :  { %v2990_v55 = vpop.f32.mrf.mxu1 }
 0x3a6   :  { %v2968_v27 = vadd.f32 %v2967_v15, %v2945_v39 }
 0x3a8   :  { %v2991_v61 = vadd.f32 %v2990_v55, %v2968_v27 }
 0x3aa   :  { %v3014_v45 = vadd.f32 %v3013_v18, %v2991_v61 }
 0x3bd   :  { %v3033_v10 = vpop.f32.mrf.mxu3  ;;  %v3056_v29 = vpop.f32.mrf.mxu0 }
 0x3be   :  { %v3034_v26 = vadd.f32 %v3033_v10, %v3011_v36  ;;  %v3079_v53 = vpop.f32.mrf.mxu1  ;;  %v3102_v8 = vpop.f32.mrf.mxu2 }
 0x3c0   :  { %v3057_v1 = vadd.f32 %v3056_v29, %v3034_v26 }
 0x3c2   :  { %v3080_v31 = vadd.f32 %v3079_v53, %v3057_v1 }
 0x3c4   :  { %v3103_v52 = vadd.f32 %v3102_v8, %v3080_v31 }
 0x3c5   :  { %v3036_v2 = vpop.f32.mrf.mxu3  ;;  %v3059_v41 = vpop.f32.mrf.mxu0 }
 0x3c6   :  { %v3112_v5 = vsub.f32 %v3103_v52, %v4580_v46  ;;  %v3037_v16 = vadd.f32 %v3036_v2, %v3014_v45  ;;  %v3082_v60 = vpop.f32.mrf.mxu1  ;;  %v3105_v42 = vpop.f32.mrf.mxu2 }
 0x3c8   :  { %v3114_v48 = vsub.f32 %v3112_v5, %v4582_v19  ;;  %v3060_v25 = vadd.f32 %v3059_v41, %v3037_v16 }
 0x3ca   :  { %3117 = vst [vmem:[#allocation18 + $0x10] sm:$0xff] %v3114_v48  ;;  %v3083_v13 = vadd.f32 %v3082_v60, %v3060_v25 }
 0x3cc   :  { %v3106_v38 = vadd.f32 %v3105_v42, %v3083_v13 }
 0x3ce   :  { %v3113_v63 = vsub.f32 %v3106_v38, %v4589_v21 }
 0x3d0   :  { %v3115_v46 = vsub.f32 %v3113_v63, %v4591_v28 }
 0x3d2   :  { %3118 = vst [vmem:[#allocation18 + $0x18] sm:$0xff] %v3115_v46 }
 0x3d3   :  { %3131 = dma.vmem_to_hbm [thread:$0]  %s3124_s1, 512, %s3126_s26, [#allocation6], %s3509_s13, %s3509_s13, %s3510_s14  }
 0x3d4   :  { %3506 = dma.done.wait [#allocation6], 512  }
 0x3d5   :  { %3507 = vsyncadd [#allocation6], 4294966784 }
 0x3d6   :  { %3136 = vsyncpa [#allocation5], 1 }
 0x3d7   :  { %3137 = vsyncpa [#allocation8], 1 }
 0x3d8   :  { %3138 = vsyncpa [#allocation11], 1 }
 0x3d9   :  { %3139 = vsyncpa [#allocation14], 1 }
 0x3da   :  { %3140 = vsyncpa [#allocation17], 1 }
 0x3db   :  { %3141 = vsyncpa [#allocation6], 1 }

</bundles_post_ra>
